<compile_context>
chip_gen: v7x
topology: tpu7x:2x2x1
jax: 0.10.0
libtpu: 0.0.40
codegen_flags: <defaults>
</compile_context>

<pallas_src>
import math
import numpy as np

import jax
import jax.numpy as jnp
from jax import lax
from jax.experimental import pallas as pl
from jax.experimental.pallas import tpu as pltpu


# ----------------------------- small helpers (from the torch module) ---------

def to_list(x, n):
    if isinstance(x, (list, tuple)):
        assert len(x) == n, (x, n)
        return list(x)
    return [x] * n


def to_pair(x):
    return tuple(to_list(x, 2))


def _pad_trim(x, pool_size, pad_side):
    """Glue: reproduce Pad(side=pad_side) + Trim(side='both') of Pool2d.forward."""
    pf, pt = pool_size
    B, C, F, T = x.shape
    pad_size = [pf - 1 - (F - 1) % pf, pt - 1 - (T - 1) % pt]
    pad_size = [0 if side is None else p for side, p in zip(pad_side, pad_size)]

    pads = [(0, 0), (0, 0)]
    for side, p in zip(pad_side, pad_size):
        if side is None or p < 1:
            assert p == 0, pad_size
            pads.append((0, 0))
        elif side == 'front':
            pads.append((p, 0))
        elif side == 'both':
            pads.append((p // 2, int(math.ceil(p / 2))))
        elif side == 'end':
            pads.append((0, p))
        else:
            raise ValueError(f'pad side {side} unknown')
    if any(p[0] > 0 or p[1] > 0 for p in pads):
        x = jnp.pad(x, pads)

    trims = [s % k for s, k in zip(x.shape[2:], pool_size)]
    slcs = [slice(None), slice(None)]
    for t in trims:
        if t < 1:
            slcs.append(slice(None))
        else:
            slcs.append(slice(t // 2, -int(math.ceil(t / 2))))
    return x[tuple(slcs)]


# ----------------------------- tiling heuristics ------------------------------

_VMEM_BLOCK_BUDGET = 4 * 1024 * 1024   # bytes of (double-buffered) blocks
_VMEM_LIMIT = 32 * 1024 * 1024         # scoped VMEM limit, safe on v5e..v7x


def _round_up(a, b):
    return -(-a // b) * b


def _pick_tile_t(Tp, pt, cap):
    """Largest time block keeping input lane blocks 128-aligned and pooled
    output blocks a multiple of 128 lanes (lane-dense stores).  Falls back to
    the full (unblocked) time axis when Tp is small or not divisible."""
    step = 128 * pt
    if Tp <= cap or Tp % step != 0:
        return Tp
    best = step
    tt = 2 * step
    while tt <= cap:
        if Tp % tt == 0:
            best = tt
        tt += step
    return best
    # TODO(synk): for very large Tp not divisible by 128*pt the max-path
    # selection matmuls are O(Tp) flops/element; a lane-gather downsample
    # would remove that ceiling.


def _pick_tile_rows(R, pf, tile_t, tile_to, itemsize, with_indices, t_steps):
    """Largest row tile that (a) divides R, (b) keeps the output block's
    sublane dim legal (multiple of 8 or the full dim), (c) fits the VMEM block
    budget with double buffering, (d) leaves >= 2 grid steps when possible so
    a v7x megacore can use both TensorCores."""
    def block_bytes(tr):
        inp = tr * _round_up(pf, 8) * _round_up(tile_t, 128) * itemsize
        out = _round_up(tr, 8) * _round_up(tile_to, 128) * itemsize
        if with_indices:
            out += _round_up(tr, 8) * _round_up(tile_to, 128) * 4
        return 2 * (inp + out)

    legal = [R] + [d for d in range(8, R, 8) if R % d == 0]
    fitting = [d for d in legal if block_bytes(d) <= _VMEM_BLOCK_BUDGET]
    if not fitting:
        return min(legal)
    if t_steps >= 2:
        return max(fitting)
    multi = [d for d in fitting if R // d >= 2]
    return max(multi) if multi else max(fitting)


# ----------------------------- Pallas kernels ---------------------------------

def _make_max_kernel(pf, pt, Fo, Tp, tile_r, tile_t, tile_to):
    """Max pool + argmax (flat row-major indices into the padded (Fp, Tp)
    plane, like torch.nn.MaxPool2d(return_indices=True))."""
    f32, bf16, i32 = jnp.float32, jnp.bfloat16, jnp.int32

    def kernel(x_ref, o_ref, i_ref):
        # ---- reduce over the pf frequency offsets (lazy per-offset loads) ----
        best = x_ref[:, 0, :].astype(f32)                      # (tile_r, tile_t)
        arg_i = jnp.zeros((tile_r, tile_t), f32)
        for i in range(1, pf):
            v = x_ref[:, i, :].astype(f32)
            take = (v > best) | (jnp.isnan(v) & ~jnp.isnan(best))
            arg_i = jnp.where(take, float(i), arg_i)
            best = jnp.where(take, v, best)

        if pt == 1:
            best_v, best_i = best, arg_i
            best_j = jnp.zeros_like(best_v)
        else:
            # ---- exact lane downsample by pt via 0/1 selection matmuls -------
            # The f32 winners travel as 4 byte planes (exact even in bf16 MXU
            # passes) and are reassembled bit-exactly afterwards; NaN/+-inf
            # survive exactly.  arg_i is a small exact int plane.
            bits = pltpu.bitcast(best, i32)
            planes = [((jnp.right_shift(bits, 8 * k) & 0xFF)).astype(bf16)
                      for k in range(4)]
            planes.append(arg_i.astype(bf16))
            r = lax.broadcasted_iota(i32, (tile_t, tile_to), 0)
            c = lax.broadcasted_iota(i32, (tile_t, tile_to), 1)

            def extract(j):
                sel = (r == c * pt + j).astype(bf16)           # picks lane to*pt+j
                e = [jnp.dot(p, sel, preferred_element_type=f32) for p in planes]
                v_bits = e[0].astype(i32)
                for k in range(1, 4):
                    v_bits = v_bits | jnp.left_shift(e[k].astype(i32), 8 * k)
                return pltpu.bitcast(v_bits, f32), e[4]

            best_v, best_i = extract(0)
            best_j = jnp.zeros_like(best_v)
            for j in range(1, pt):
                v, i_j = extract(j)
                # strict '>' keeps the first maximum; the (==, i_j < best_i)
                # clause reproduces torch's row-major tie-break; NaN dominates.
                take = ((v > best_v)
                        | (jnp.isnan(v) & ~jnp.isnan(best_v))
                        | ((v == best_v) & (i_j < best_i)))
                best_v = jnp.where(take, v, best_v)
                best_i = jnp.where(take, i_j, best_i)
                best_j = jnp.where(take, float(j), best_j)

        # ---- flat indices into the padded (Fp, Tp) plane (torch order) -------
        row = pl.program_id(0) * tile_r + lax.broadcasted_iota(
            i32, (tile_r, tile_to), 0)
        fo = row % Fo
        to = pl.program_id(1) * tile_to + lax.broadcasted_iota(
            i32, (tile_r, tile_to), 1)
        o_ref[...] = best_v.astype(o_ref.dtype)
        # TODO(synk): torch returns int64 indices; int32 used here (jax x64 off).
        i_ref[...] = ((fo * pf + best_i.astype(i32)) * Tp
                      + (to * pt + best_j.astype(i32)))

    return kernel


def _make_avg_kernel(pf, pt, tile_t, tile_to):
    f32, bf16, i32 = jnp.float32, jnp.bfloat16, jnp.int32
    inv = 1.0 / float(pf * pt)

    def kernel(x_ref, o_ref):
        acc = x_ref[:, 0, :].astype(f32)                       # lazy loads
        for i in range(1, pf):
            acc = acc + x_ref[:, i, :].astype(f32)
        if pt == 1:
            s = acc
        else:
            # Pooling along lanes as a (tile_t, tile_to) 0/1 matmul on the idle
            # MXU; bf16x3 split keeps ~f32 accuracy through bf16 MXU passes.
            # TODO(synk): a +-inf/NaN input pollutes the other windows of its
            # row through the 0*inf terms of this matmul (torch keeps it local).
            r = lax.broadcasted_iota(i32, (tile_t, tile_to), 0)
            c = lax.broadcasted_iota(i32, (tile_t, tile_to), 1)
            pool = (r // pt == c).astype(bf16)
            hi = acc.astype(bf16)
            rem = acc - hi.astype(f32)
            mid = rem.astype(bf16)
            lo = (rem - mid.astype(f32)).astype(bf16)
            s = (jnp.dot(hi, pool, preferred_element_type=f32)
                 + jnp.dot(mid, pool, preferred_element_type=f32)
                 + jnp.dot(lo, pool, preferred_element_type=f32))
        o_ref[...] = (s * inv).astype(o_ref.dtype)

    return kernel


# ----------------------------- Pool2d wrapper ---------------------------------

class Pool2d:
    """JAX/Pallas port of padertorch Pool2d (max/avg pooling with padding)."""

    def __init__(self, pool_type, pool_size, pad_side='both'):
        self.pool_type = pool_type
        self.pool_size = to_pair(pool_size)
        self.pad_side = to_pair(pad_side)

    def __call__(self, x, seq_len=None):
        pf, pt = self.pool_size
        if pf < 2 and pt < 2:
            return x, seq_len, None
        if self.pool_type not in ('max', 'avg'):
            raise ValueError(f'{self.pool_type} pooling unknown.')

        x = _pad_trim(x, self.pool_size, self.pad_side)
        B, C, Fp, Tp = x.shape
        Fo, To = Fp // pf, Tp // pt
        assert Fp * Tp < 2 ** 31, 'flat pool indices would overflow int32'
        R = B * C * Fo

        # Free relayout: pure row-major dim split/merge, no HBM transpose.
        xr = x.reshape(R, pf, Tp)

        is_max = self.pool_type == 'max'
        tile_t = _pick_tile_t(Tp, pt, cap=256 if is_max else 512)
        tile_to = tile_t // pt
        t_steps = Tp // tile_t
        tile_r = _pick_tile_rows(R, pf, tile_t, tile_to, x.dtype.itemsize,
                                 with_indices=is_max, t_steps=t_steps)
        grid = (R // tile_r, t_steps)

        in_spec = pl.BlockSpec((tile_r, pf, tile_t), lambda n, t: (n, 0, t))
        out_spec = pl.BlockSpec((tile_r, tile_to), lambda n, t: (n, t))
        cp = pltpu.CompilerParams(
            dimension_semantics=("parallel", "parallel"),
            vmem_limit_bytes=_VMEM_LIMIT,
        )

        if is_max:
            pooled, idx = pl.pallas_call(
                _make_max_kernel(pf, pt, Fo, Tp, tile_r, tile_t, tile_to),
                grid=grid,
                in_specs=[in_spec],
                out_specs=(out_spec, out_spec),
                out_shape=(jax.ShapeDtypeStruct((R, To), x.dtype),
                           jax.ShapeDtypeStruct((R, To), jnp.int32)),
                compiler_params=cp,
            )(xr)
            pooled = pooled.reshape(B, C, Fo, To)
            pool_indices = idx.reshape(B, C, Fo, To)
        else:
            pooled = pl.pallas_call(
                _make_avg_kernel(pf, pt, tile_t, tile_to),
                grid=grid,
                in_specs=[in_spec],
                out_specs=out_spec,
                out_shape=jax.ShapeDtypeStruct((R, To), x.dtype),
                compiler_params=cp,
            )(xr)
            pooled = pooled.reshape(B, C, Fo, To)
            pool_indices = None

        if seq_len is not None:
            seq_len = np.asarray(seq_len) / self.pool_size[-1]
            if self.pad_side[-1] is None:
                seq_len = np.floor(seq_len).astype(np.int32)
            else:
                seq_len = np.ceil(seq_len).astype(np.int32)

        return pooled, seq_len, pool_indices


# ----------------------------- reference (plain JAX) --------------------------

def _ref_pool(x, pool_type, pool_size, pad_side):
    pf, pt = to_pair(pool_size)
    xp = _pad_trim(x, (pf, pt), to_pair(pad_side))
    B, C, Fp, Tp = xp.shape
    xr = xp.reshape(B, C, Fp // pf, pf, Tp // pt, pt)
    if pool_type == 'max':
        return xp, jnp.max(xr, axis=(3, 5))
    return xp, jnp.mean(xr, axis=(3, 5))


# ----------------------------- main --------------------------------------------

if __name__ == "__main__":
    key = jax.random.PRNGKey(0)
    x = jax.random.normal(key, (2, 4, 16, 16), dtype=jnp.float32)
    seq_len = np.array([16, 11])

    # --- max pooling with asymmetric pool size (exercises padding path) -------
    max_pool = Pool2d('max', (3, 2), pad_side='both')
    y_max, sl_max, idx = max_pool(x, seq_len)
    jax.block_until_ready(y_max)
    jax.block_until_ready(idx)

    xp, y_ref = _ref_pool(x, 'max', (3, 2), 'both')
    np.testing.assert_allclose(np.asarray(y_max), np.asarray(y_ref), rtol=0, atol=0)
    # indices must point at the max values inside the padded plane
    B, C, Fp, Tp = xp.shape
    flat = np.asarray(xp).reshape(B, C, Fp * Tp)
    gathered = np.take_along_axis(
        flat, np.asarray(idx).reshape(B, C, -1), axis=-1
    ).reshape(np.asarray(y_max).shape)
    np.testing.assert_allclose(gathered, np.asarray(y_max), rtol=0, atol=0)
    assert sl_max.tolist() == [8, 6]

    # --- avg pooling -----------------------------------------------------------
    avg_pool = Pool2d('avg', 2, pad_side='both')
    y_avg, sl_avg, idx_avg = avg_pool(x, seq_len)
    jax.block_until_ready(y_avg)
    _, y_avg_ref = _ref_pool(x, 'avg', 2, 'both')
    np.testing.assert_allclose(np.asarray(y_avg), np.asarray(y_avg_ref),
                               rtol=1e-6, atol=1e-6)
    assert idx_avg is None
    assert sl_avg.tolist() == [8, 6]

    # --- pool_size < 2: pass-through -------------------------------------------
    y_id, sl_id, idx_id = Pool2d('max', 1)(x, seq_len)
    assert y_id.shape == x.shape and idx_id is None

    print("KERNEL_OK")
</pallas_src>

<mosaic_0001>
module attributes {stable_mosaic.version = 11 : i64} {
  func.func @kernel(%arg0: i32, %arg1: i32, %arg2: memref<24x3x16xf32, #tpu.memory_space<vmem>>, %arg3: memref<24x8xf32, #tpu.memory_space<vmem>>, %arg4: memref<24x8xi32, #tpu.memory_space<vmem>>) attributes {dimension_semantics = [#tpu.dimension_semantics<parallel>, #tpu.dimension_semantics<parallel>], iteration_bounds = array<i64: 2, 1>, scalar_prefetch = 0 : i64, scratch_operands = 0 : i64, tpu.core_type = #tpu.core_type<tc>, window_params = [{transform_indices = @transform_0, window_bounds = array<i64: 24, 3, 16>}, {transform_indices = @transform_1, window_bounds = array<i64: 24, 8>}, {transform_indices = @transform_2, window_bounds = array<i64: 24, 8>}]} {
    %c0 = arith.constant 0 : index
    %c0_0 = arith.constant 0 : index
    %c0_1 = arith.constant 0 : index
    %0 = vector.load %arg2[%c0, %c0_0, %c0_1] : memref<24x3x16xf32, #tpu.memory_space<vmem>>, vector<24x1x16xf32>
    %1 = vector.shape_cast %0 : vector<24x1x16xf32> to vector<24x16xf32>
    %cst = arith.constant 0.000000e+00 : f32
    %2 = vector.broadcast %cst : f32 to vector<24x16xf32>
    %c0_2 = arith.constant 0 : index
    %c1 = arith.constant 1 : index
    %c0_3 = arith.constant 0 : index
    %3 = vector.load %arg2[%c0_2, %c1, %c0_3] : memref<24x3x16xf32, #tpu.memory_space<vmem>>, vector<24x1x16xf32>
    %4 = vector.shape_cast %3 : vector<24x1x16xf32> to vector<24x16xf32>
    %5 = arith.cmpf ogt, %4, %1 : vector<24x16xf32>
    %6 = arith.cmpf one, %4, %4 : vector<24x16xf32>
    %7 = arith.cmpf one, %1, %1 : vector<24x16xf32>
    %cst_4 = arith.constant dense<true> : vector<24x16xi1>
    %8 = arith.xori %7, %cst_4 : vector<24x16xi1>
    %9 = arith.andi %6, %8 : vector<24x16xi1>
    %10 = arith.ori %5, %9 : vector<24x16xi1>
    %cst_5 = arith.constant 1.000000e+00 : f32
    %11 = vector.broadcast %cst_5 : f32 to vector<24x16xf32>
    %12 = arith.select %10, %11, %2 : vector<24x16xi1>, vector<24x16xf32>
    %13 = arith.select %10, %4, %1 : vector<24x16xi1>, vector<24x16xf32>
    %c0_6 = arith.constant 0 : index
    %c2 = arith.constant 2 : index
    %c0_7 = arith.constant 0 : index
    %14 = vector.load %arg2[%c0_6, %c2, %c0_7] : memref<24x3x16xf32, #tpu.memory_space<vmem>>, vector<24x1x16xf32>
    %15 = vector.shape_cast %14 : vector<24x1x16xf32> to vector<24x16xf32>
    %16 = arith.cmpf ogt, %15, %13 : vector<24x16xf32>
    %17 = arith.cmpf one, %15, %15 : vector<24x16xf32>
    %18 = arith.cmpf one, %13, %13 : vector<24x16xf32>
    %cst_8 = arith.constant dense<true> : vector<24x16xi1>
    %19 = arith.xori %18, %cst_8 : vector<24x16xi1>
    %20 = arith.andi %17, %19 : vector<24x16xi1>
    %21 = arith.ori %16, %20 : vector<24x16xi1>
    %cst_9 = arith.constant 2.000000e+00 : f32
    %22 = vector.broadcast %cst_9 : f32 to vector<24x16xf32>
    %23 = arith.select %21, %22, %12 : vector<24x16xi1>, vector<24x16xf32>
    %24 = arith.select %21, %15, %13 : vector<24x16xi1>, vector<24x16xf32>
    %25 = tpu.bitcast %24 : vector<24x16xf32> -> vector<24x16xi32>
    %c0_i32 = arith.constant 0 : i32
    %26 = vector.broadcast %c0_i32 : i32 to vector<24x16xi32>
    %27 = arith.shrsi %25, %26 : vector<24x16xi32>
    %c255_i32 = arith.constant 255 : i32
    %28 = vector.broadcast %c255_i32 : i32 to vector<24x16xi32>
    %29 = arith.andi %27, %28 : vector<24x16xi32>
    %30 = arith.sitofp %29 : vector<24x16xi32> to vector<24x16xbf16>
    %c8_i32 = arith.constant 8 : i32
    %31 = vector.broadcast %c8_i32 : i32 to vector<24x16xi32>
    %32 = arith.shrsi %25, %31 : vector<24x16xi32>
    %c255_i32_10 = arith.constant 255 : i32
    %33 = vector.broadcast %c255_i32_10 : i32 to vector<24x16xi32>
    %34 = arith.andi %32, %33 : vector<24x16xi32>
    %35 = arith.sitofp %34 : vector<24x16xi32> to vector<24x16xbf16>
    %c16_i32 = arith.constant 16 : i32
    %36 = vector.broadcast %c16_i32 : i32 to vector<24x16xi32>
    %37 = arith.shrsi %25, %36 : vector<24x16xi32>
    %c255_i32_11 = arith.constant 255 : i32
    %38 = vector.broadcast %c255_i32_11 : i32 to vector<24x16xi32>
    %39 = arith.andi %37, %38 : vector<24x16xi32>
    %40 = arith.sitofp %39 : vector<24x16xi32> to vector<24x16xbf16>
    %c24_i32 = arith.constant 24 : i32
    %41 = vector.broadcast %c24_i32 : i32 to vector<24x16xi32>
    %42 = arith.shrsi %25, %41 : vector<24x16xi32>
    %c255_i32_12 = arith.constant 255 : i32
    %43 = vector.broadcast %c255_i32_12 : i32 to vector<24x16xi32>
    %44 = arith.andi %42, %43 : vector<24x16xi32>
    %45 = arith.sitofp %44 : vector<24x16xi32> to vector<24x16xbf16>
    %46 = arith.truncf %23 : vector<24x16xf32> to vector<24x16xbf16>
    %47 = tpu.iota {dimensions = array<i32: 0>} : vector<16x8xi32>
    %48 = tpu.iota {dimensions = array<i32: 1>} : vector<16x8xi32>
    %c2_i32 = arith.constant 2 : i32
    %49 = vector.broadcast %c2_i32 : i32 to vector<16x8xi32>
    %50 = arith.muli %48, %49 : vector<16x8xi32>
    %c0_i32_13 = arith.constant 0 : i32
    %51 = vector.broadcast %c0_i32_13 : i32 to vector<16x8xi32>
    %52 = arith.addi %50, %51 : vector<16x8xi32>
    %53 = arith.cmpi eq, %47, %52 : vector<16x8xi32>
    %54 = arith.extui %53 : vector<16x8xi1> to vector<16x8xi32>
    %55 = arith.sitofp %54 : vector<16x8xi32> to vector<16x8xf32>
    %56 = arith.truncf %55 : vector<16x8xf32> to vector<16x8xbf16>
    %cst_14 = arith.constant dense<0.000000e+00> : vector<24x8xf32>
    %57 = tpu.matmul %30, %56, %cst_14 {dimension_numbers = #tpu.dot_dimension_numbers<[1], [0], [0], [1], [0, 0, 1, 1], [], []>} : vector<24x16xbf16>, vector<16x8xbf16>, vector<24x8xf32> -> vector<24x8xf32>
    %cst_15 = arith.constant dense<0.000000e+00> : vector<24x8xf32>
    %58 = tpu.matmul %35, %56, %cst_15 {dimension_numbers = #tpu.dot_dimension_numbers<[1], [0], [0], [1], [0, 0, 1, 1], [], []>} : vector<24x16xbf16>, vector<16x8xbf16>, vector<24x8xf32> -> vector<24x8xf32>
    %cst_16 = arith.constant dense<0.000000e+00> : vector<24x8xf32>
    %59 = tpu.matmul %40, %56, %cst_16 {dimension_numbers = #tpu.dot_dimension_numbers<[1], [0], [0], [1], [0, 0, 1, 1], [], []>} : vector<24x16xbf16>, vector<16x8xbf16>, vector<24x8xf32> -> vector<24x8xf32>
    %cst_17 = arith.constant dense<0.000000e+00> : vector<24x8xf32>
    %60 = tpu.matmul %45, %56, %cst_17 {dimension_numbers = #tpu.dot_dimension_numbers<[1], [0], [0], [1], [0, 0, 1, 1], [], []>} : vector<24x16xbf16>, vector<16x8xbf16>, vector<24x8xf32> -> vector<24x8xf32>
    %cst_18 = arith.constant dense<0.000000e+00> : vector<24x8xf32>
    %61 = tpu.matmul %46, %56, %cst_18 {dimension_numbers = #tpu.dot_dimension_numbers<[1], [0], [0], [1], [0, 0, 1, 1], [], []>} : vector<24x16xbf16>, vector<16x8xbf16>, vector<24x8xf32> -> vector<24x8xf32>
    %62 = arith.fptosi %57 : vector<24x8xf32> to vector<24x8xi32>
    %63 = arith.fptosi %58 : vector<24x8xf32> to vector<24x8xi32>
    %c8_i32_19 = arith.constant 8 : i32
    %64 = vector.broadcast %c8_i32_19 : i32 to vector<24x8xi32>
    %65 = arith.shli %63, %64 : vector<24x8xi32>
    %66 = arith.ori %62, %65 : vector<24x8xi32>
    %67 = arith.fptosi %59 : vector<24x8xf32> to vector<24x8xi32>
    %c16_i32_20 = arith.constant 16 : i32
    %68 = vector.broadcast %c16_i32_20 : i32 to vector<24x8xi32>
    %69 = arith.shli %67, %68 : vector<24x8xi32>
    %70 = arith.ori %66, %69 : vector<24x8xi32>
    %71 = arith.fptosi %60 : vector<24x8xf32> to vector<24x8xi32>
    %c24_i32_21 = arith.constant 24 : i32
    %72 = vector.broadcast %c24_i32_21 : i32 to vector<24x8xi32>
    %73 = arith.shli %71, %72 : vector<24x8xi32>
    %74 = arith.ori %70, %73 : vector<24x8xi32>
    %75 = tpu.bitcast %74 : vector<24x8xi32> -> vector<24x8xf32>
    %cst_22 = arith.constant 0.000000e+00 : f32
    %76 = vector.broadcast %cst_22 : f32 to vector<24x8xf32>
    %c2_i32_23 = arith.constant 2 : i32
    %77 = vector.broadcast %c2_i32_23 : i32 to vector<16x8xi32>
    %78 = arith.muli %48, %77 : vector<16x8xi32>
    %c1_i32 = arith.constant 1 : i32
    %79 = vector.broadcast %c1_i32 : i32 to vector<16x8xi32>
    %80 = arith.addi %78, %79 : vector<16x8xi32>
    %81 = arith.cmpi eq, %47, %80 : vector<16x8xi32>
    %82 = arith.extui %81 : vector<16x8xi1> to vector<16x8xi32>
    %83 = arith.sitofp %82 : vector<16x8xi32> to vector<16x8xf32>
    %84 = arith.truncf %83 : vector<16x8xf32> to vector<16x8xbf16>
    %cst_24 = arith.constant dense<0.000000e+00> : vector<24x8xf32>
    %85 = tpu.matmul %30, %84, %cst_24 {dimension_numbers = #tpu.dot_dimension_numbers<[1], [0], [0], [1], [0, 0, 1, 1], [], []>} : vector<24x16xbf16>, vector<16x8xbf16>, vector<24x8xf32> -> vector<24x8xf32>
    %cst_25 = arith.constant dense<0.000000e+00> : vector<24x8xf32>
    %86 = tpu.matmul %35, %84, %cst_25 {dimension_numbers = #tpu.dot_dimension_numbers<[1], [0], [0], [1], [0, 0, 1, 1], [], []>} : vector<24x16xbf16>, vector<16x8xbf16>, vector<24x8xf32> -> vector<24x8xf32>
    %cst_26 = arith.constant dense<0.000000e+00> : vector<24x8xf32>
    %87 = tpu.matmul %40, %84, %cst_26 {dimension_numbers = #tpu.dot_dimension_numbers<[1], [0], [0], [1], [0, 0, 1, 1], [], []>} : vector<24x16xbf16>, vector<16x8xbf16>, vector<24x8xf32> -> vector<24x8xf32>
    %cst_27 = arith.constant dense<0.000000e+00> : vector<24x8xf32>
    %88 = tpu.matmul %45, %84, %cst_27 {dimension_numbers = #tpu.dot_dimension_numbers<[1], [0], [0], [1], [0, 0, 1, 1], [], []>} : vector<24x16xbf16>, vector<16x8xbf16>, vector<24x8xf32> -> vector<24x8xf32>
    %cst_28 = arith.constant dense<0.000000e+00> : vector<24x8xf32>
    %89 = tpu.matmul %46, %84, %cst_28 {dimension_numbers = #tpu.dot_dimension_numbers<[1], [0], [0], [1], [0, 0, 1, 1], [], []>} : vector<24x16xbf16>, vector<16x8xbf16>, vector<24x8xf32> -> vector<24x8xf32>
    %90 = arith.fptosi %85 : vector<24x8xf32> to vector<24x8xi32>
    %91 = arith.fptosi %86 : vector<24x8xf32> to vector<24x8xi32>
    %c8_i32_29 = arith.constant 8 : i32
    %92 = vector.broadcast %c8_i32_29 : i32 to vector<24x8xi32>
    %93 = arith.shli %91, %92 : vector<24x8xi32>
    %94 = arith.ori %90, %93 : vector<24x8xi32>
    %95 = arith.fptosi %87 : vector<24x8xf32> to vector<24x8xi32>
    %c16_i32_30 = arith.constant 16 : i32
    %96 = vector.broadcast %c16_i32_30 : i32 to vector<24x8xi32>
    %97 = arith.shli %95, %96 : vector<24x8xi32>
    %98 = arith.ori %94, %97 : vector<24x8xi32>
    %99 = arith.fptosi %88 : vector<24x8xf32> to vector<24x8xi32>
    %c24_i32_31 = arith.constant 24 : i32
    %100 = vector.broadcast %c24_i32_31 : i32 to vector<24x8xi32>
    %101 = arith.shli %99, %100 : vector<24x8xi32>
    %102 = arith.ori %98, %101 : vector<24x8xi32>
    %103 = tpu.bitcast %102 : vector<24x8xi32> -> vector<24x8xf32>
    %104 = arith.cmpf ogt, %103, %75 : vector<24x8xf32>
    %105 = arith.cmpf one, %103, %103 : vector<24x8xf32>
    %106 = arith.cmpf one, %75, %75 : vector<24x8xf32>
    %cst_32 = arith.constant dense<true> : vector<24x8xi1>
    %107 = arith.xori %106, %cst_32 : vector<24x8xi1>
    %108 = arith.andi %105, %107 : vector<24x8xi1>
    %109 = arith.ori %104, %108 : vector<24x8xi1>
    %110 = arith.cmpf oeq, %103, %75 : vector<24x8xf32>
    %111 = arith.cmpf olt, %89, %61 : vector<24x8xf32>
    %112 = arith.andi %110, %111 : vector<24x8xi1>
    %113 = arith.ori %109, %112 : vector<24x8xi1>
    %114 = arith.select %113, %103, %75 : vector<24x8xi1>, vector<24x8xf32>
    %115 = arith.select %113, %89, %61 : vector<24x8xi1>, vector<24x8xf32>
    %cst_33 = arith.constant 1.000000e+00 : f32
    %116 = vector.broadcast %cst_33 : f32 to vector<24x8xf32>
    %117 = arith.select %113, %116, %76 : vector<24x8xi1>, vector<24x8xf32>
    %c24_i32_34 = arith.constant 24 : i32
    %118 = arith.muli %arg0, %c24_i32_34 : i32
    %119 = tpu.iota {dimensions = array<i32: 0>} : vector<24x8xi32>
    %120 = vector.broadcast %118 : i32 to vector<24x8xi32>
    %121 = arith.addi %120, %119 : vector<24x8xi32>
    %c6_i32 = arith.constant 6 : i32
    %c0_i32_35 = arith.constant 0 : i32
    %122 = arith.cmpi eq, %c6_i32, %c0_i32_35 : i32
    %c1_i32_36 = arith.constant 1 : i32
    %123 = arith.select %122, %c1_i32_36, %c6_i32 : i32
    %124 = vector.broadcast %123 : i32 to vector<24x8xi32>
    %125 = arith.remsi %121, %124 : vector<24x8xi32>
    %c0_i32_37 = arith.constant 0 : i32
    %126 = vector.broadcast %c0_i32_37 : i32 to vector<24x8xi32>
    %127 = arith.cmpi ne, %125, %126 : vector<24x8xi32>
    %c0_i32_38 = arith.constant 0 : i32
    %128 = vector.broadcast %c0_i32_38 : i32 to vector<24x8xi32>
    %129 = arith.cmpi slt, %125, %128 : vector<24x8xi32>
    %c0_i32_39 = arith.constant 0 : i32
    %130 = arith.cmpi slt, %123, %c0_i32_39 : i32
    %131 = vector.broadcast %130 : i1 to vector<24x8xi1>
    %132 = vector.broadcast %131 : vector<24x8xi1> to vector<24x8xi1>
    %133 = arith.xori %129, %132 : vector<24x8xi1>
    %134 = arith.andi %133, %127 : vector<24x8xi1>
    %135 = vector.broadcast %123 : i32 to vector<24x8xi32>
    %136 = arith.addi %125, %135 : vector<24x8xi32>
    %137 = arith.select %134, %136, %125 : vector<24x8xi1>, vector<24x8xi32>
    %c8_i32_40 = arith.constant 8 : i32
    %138 = arith.muli %arg1, %c8_i32_40 : i32
    %139 = tpu.iota {dimensions = array<i32: 1>} : vector<24x8xi32>
    %140 = vector.broadcast %138 : i32 to vector<24x8xi32>
    %141 = arith.addi %140, %139 : vector<24x8xi32>
    %c0_41 = arith.constant 0 : index
    %c0_42 = arith.constant 0 : index
    %142 = vector.load %arg3[%c0_41, %c0_42] : memref<24x8xf32, #tpu.memory_space<vmem>>, vector<24x8xf32>
    tpu.vector_store %arg3[%c0_41, %c0_42], %114 {strides = array<i32>} : memref<24x8xf32, #tpu.memory_space<vmem>>, vector<24x8xf32>,
    %c3_i32 = arith.constant 3 : i32
    %143 = vector.broadcast %c3_i32 : i32 to vector<24x8xi32>
    %144 = arith.muli %137, %143 : vector<24x8xi32>
    %145 = arith.fptosi %115 : vector<24x8xf32> to vector<24x8xi32>
    %146 = arith.addi %144, %145 : vector<24x8xi32>
    %c16_i32_43 = arith.constant 16 : i32
    %147 = vector.broadcast %c16_i32_43 : i32 to vector<24x8xi32>
    %148 = arith.muli %146, %147 : vector<24x8xi32>
    %c2_i32_44 = arith.constant 2 : i32
    %149 = vector.broadcast %c2_i32_44 : i32 to vector<24x8xi32>
    %150 = arith.muli %141, %149 : vector<24x8xi32>
    %151 = arith.fptosi %117 : vector<24x8xf32> to vector<24x8xi32>
    %152 = arith.addi %150, %151 : vector<24x8xi32>
    %153 = arith.addi %148, %152 : vector<24x8xi32>
    %c0_45 = arith.constant 0 : index
    %c0_46 = arith.constant 0 : index
    %154 = vector.load %arg4[%c0_45, %c0_46] : memref<24x8xi32, #tpu.memory_space<vmem>>, vector<24x8xi32>
    tpu.vector_store %arg4[%c0_45, %c0_46], %153 {strides = array<i32>} : memref<24x8xi32, #tpu.memory_space<vmem>>, vector<24x8xi32>,
    return
  }
  func.func @transform_0(%arg0: i32, %arg1: i32) -> (i32, i32, i32) {
    %c0_i32 = arith.constant 0 : i32
    %c0_i32_0 = arith.constant 0 : i32
    return %arg0, %c0_i32, %arg1 : i32, i32, i32
  }
  func.func @transform_1(%arg0: i32, %arg1: i32) -> (i32, i32) {
    %c0_i32 = arith.constant 0 : i32
    return %arg0, %arg1 : i32, i32
  }
  func.func @transform_2(%arg0: i32, %arg1: i32) -> (i32, i32) {
    %c0_i32 = arith.constant 0 : i32
    return %arg0, %arg1 : i32, i32
  }
}

</mosaic_0001>

<bundles_post_ra>
// kernel: tpu_custom_call.1
= control target key start
LH: loop header
LB: loop body
LE: loop exit
PB: predicated region body
PF: predicated region fallthrough
CT: control target
= control target key end

     0   :  { %s2683_s9 = smov 0   ;;  %s2685_s10 = smov 0   ;;  %s5322_s0 = inlined_call_operand.vmem [shape: f32[48,3,16], index: 0, kind: input, shape index: {}]   ;;  %s5323_s1 = inlined_call_operand.vmem [shape: f32[48,8], index: 1, kind: output, shape index: {0}]   ;;  %s5324_s2 = inlined_call_operand.vmem [shape: s32[48,8], index: 2, kind: output, shape index: {1}]  }
   0x1   :  { %s2687_s11 = smov 0  }
   0x2 LB: > { %s25_s12 = sadd.s32 1, %s2659_s10  ;;  %p2381_p0 = scmp.ge.s32.totalorder %s2663_s11, 1  ;;  %s2663_s11 = sphi %s2687_s11, %s13_s11   ;;  %s2659_s10 = sphi %s2685_s10, %s6150_s10   ;;  %s2655_s9 = sphi %s2683_s9, %s6149_s9  }
   0x3   : > { %p27_p1 = scmp.ge.s32.totalorder %s25_s12, 2  ;;  %p137_p2 = scmp.lt.s32.totalorder %s2663_s11, 3 }
   0x5   : > { %s6152_s12 = smov (%p27_p1, %s25_s12), 0  ;;  %p138_p3 = pnand %p2381_p0, %p137_p2 }
   0x7   : > { %141 = sbr.rel (%p138_p3) target bundleno = 631 (0x277), region = 24 }
   0xe   : > { %v1065_v0 = vlaneseq  ;;  %v5436_v5 = vmov 0  ;;  %v5345_v6 = vmov 1.0|1.0   ;;  %s2737_s13 = smul.u32 24, %s2655_s9  ;;  %vm5327_vm7 = vmmov 1  }
   0xf   : > { %v5453_v31 = vmov 0  ;;  %v5455_v34 = vmov 0  ;;  %v5458_v37 = vmov 0  ;;  %v5461_v39 = vmov 0  ;;  %s182_s19 = smul.u32 3, %s2655_s9 }
  0x10   : > { %v2703_v1 = vshrl.u32 %v1065_v0, 7  ;;  %v1069_v2 = vand.u32 127, %v1065_v0  ;;  %p174_p4 = scmp.lt.s32.totalorder %s2737_s13, 47  ;;  %v5463_v41 = vmov 0  ;;  %v5468_v44 = vmov 0 }
  0x11   : > { %v5471_v45 = vmov 0  ;;  %v5473_v47 = vmov 0  ;;  %v5476_v48 = vmov 0  ;;  %v5478_v50 = vmov 0  ;;  %p5183_p5 = scmp.lt.s32.totalorder %s182_s19, 5 }
  0x12   : > { %5433 = vst [vmem:[#allocation2_spill] sm:$0xff] %v2703_v1  ;;  %v2706_v3 = vadd.s32 8, %v2703_v1  ;;  %v2708_v4 = vmul.u32 2, %v1069_v2  ;;  %s175_s14 = scalar_select %p174_p4, %s2737_s13, 47  ;;  %v5481_v51 = vmov 0  ;;  %v5483_v53 = vmov 0 }
  0x13   : > { %v5486_v54 = vmov 0  ;;  %v5488_v56 = vmov 0  ;;  %v5490_v58 = vmov 0  ;;  %v5493_v60 = vmov 0  ;;  %s6154_s19 = smov (!%p5183_p5, %s182_s19), 5 }
  0x14   : > { %5434 = vst [vmem:[#allocation3_spill] sm:$0xff] %v2706_v3  ;;  %5435 = vst [vmem:[#allocation4_spill] sm:$0xff] %v2708_v4  ;;  %vm1071_vm0 = vcmp.eq.s32.totalorder %v2703_v1, %v2708_v4  ;;  %vm1072_vm1 = vcmp.eq.s32.totalorder %v2706_v3, %v2708_v4  ;;  %s2382_s15 = sshll.u32 %s175_s14, 2  ;;  %v5496_v62 = vmov 0  ;;  %v5499_v0 = vmov 0  ;;  %s2383_s21 = sshll.u32 %s6154_s19, 3 }
  0x15   : > { %vm2714_vm2 = vmpackc.low %vm1072_vm1, %vm1071_vm0  ;;  %s2744_s18 = scalar_lea.vmem %s5322_s0, %s2382_s15  ;;  %v5502_v2 = vmov 0  ;;  %v5505_v14 = vmov 0  ;;  %v5507_v16 = vmov 0  ;;  %v5511_v18 = vmov 0  ;;  %s5265_s24 = scalar_lea.vmem %s5323_s1, %s2383_s21 }
  0x16   : > { %v5437_v5 = vsel %vm2714_vm2, 4294967295, %v5436_v5  ;;  %2488 = vmatprep.subr.msk.bf16.mxu0 %vm2714_vm2, %v5345_v6  ;;  %2494 = vmatprep.subr.msk.bf16.mxu1 %vm2714_vm2, %v5345_v6  ;;  %v2747_v7 = vld [vmem:[%s2744_s18] sm:$0x1]  ;;  %v2750_v8 = vld [vmem:[%s2744_s18 + $0x4] sm:$0x1]  ;;  %v5514_v20 = vmov 0  ;;  %s198_s27 = scalar_lea.vmem %s5324_s2, %s2383_s21 }
  0x17   : > { %5438 = vst [vmem:[#allocation5_spill] sm:$0xff] %v5437_v5  ;;  %2489 = vmatpush3.bf16.msk.msra.mxu0 %vm2714_vm2, %v5345_v6  ;;  %2495 = vmatpush3.bf16.msk.msra.mxu1 %vm2714_vm2, %v5345_v6  ;;  %v2753_v9 = vld [vmem:[%s2744_s18 + $0x8] sm:$0x1]  ;;  %v2756_v10 = vld [vmem:[%s2744_s18 + $0xc] sm:$0x1]  ;;  %vm297_vm3 = vcmp.ne.f32.partialorder %v2747_v7, %v2747_v7  ;;  %vm298_vm4 = vcmp.ne.f32.partialorder %v2750_v8, %v2750_v8  ;;  %v5518_v22 = vmov 0 }
  0x18   : > { %2500 = vmatprep.subr.msk.bf16.mxu0 %vm2714_vm2, %v5345_v6  ;;  %2506 = vmatprep.subr.msk.bf16.mxu1 %vm2714_vm2, %v5345_v6  ;;  %v2761_v11 = vld [vmem:[%s2744_s18 + $0x10] sm:$0x1]  ;;  %v2766_v12 = vld [vmem:[%s2744_s18 + $0x14] sm:$0x1]  ;;  %vm299_vm5 = vcmp.ne.f32.partialorder %v2753_v9, %v2753_v9  ;;  %v2771_v13 = vld [vmem:[%s2744_s18 + $0x18] sm:$0x1]  ;;  %vm300_vm6 = vcmp.ne.f32.partialorder %v2756_v10, %v2756_v10 }
  0x19   : > { %vm2776_vm8 = vmxor %vm297_vm3, %vm5327_vm7  ;;  %v2781_v15 = vld [vmem:[%s2744_s18 + $0x1c] sm:$0x1]  ;;  %vm301_vm9 = vcmp.ne.f32.partialorder %v2761_v11, %v2761_v11  ;;  %v2791_v17 = vld [vmem:[%s2744_s18 + $0x20] sm:$0x1]  ;;  %vm302_vm11 = vcmp.ne.f32.partialorder %v2766_v12, %v2766_v12  ;;  %vm303_vm13 = vcmp.ne.f32.partialorder %v2771_v13, %v2771_v13  ;;  %v5521_v25 = vmov 0 }
  0x1a   : > { %vm2786_vm10 = vmxor %vm298_vm4, %vm5327_vm7  ;;  %v2801_v19 = vld [vmem:[%s2744_s18 + $0x24] sm:$0x1]  ;;  %v2811_v21 = vld [vmem:[%s2744_s18 + $0x28] sm:$0x1]  ;;  %vm304_vm15 = vcmp.ne.f32.partialorder %v2781_v15, %v2781_v15  ;;  %vm305_vm1 = vcmp.ne.f32.partialorder %v2791_v17, %v2791_v17  ;;  %v5525_v28 = vmov 0  ;;  %v5547_v42 = vmov 0 }
  0x1b   : > { %vm2796_vm12 = vmxor %vm299_vm5, %vm5327_vm7  ;;  %v2821_v23 = vld [vmem:[%s2744_s18 + $0x2c] sm:$0x1]  ;;  %v2824_v24 = vld [vmem:[%s2744_s18 + $0x1] sm:$0x1] }
  0x1c   : > { %vm2806_vm14 = vmxor %vm300_vm6, %vm5327_vm7  ;;  %v2834_v26 = vld [vmem:[%s2744_s18 + $0x30] sm:$0x1]  ;;  %v2837_v27 = vld [vmem:[%s2744_s18 + $0x5] sm:$0x1] }
  0x1d   : > { %vm2816_vm0 = vmxor %vm301_vm9, %vm5327_vm7  ;;  %v2847_v29 = vld [vmem:[%s2744_s18 + $0x34] sm:$0x1]  ;;  %v2850_v30 = vld [vmem:[%s2744_s18 + $0x9] sm:$0x1]  ;;  %vm309_vm6 = vcmp.ne.f32.partialorder %v2834_v26, %v2834_v26 }
  0x1e   : > { %vm2829_vm3 = vmxor %vm302_vm11, %vm5327_vm7  ;;  %v2860_v32 = vld [vmem:[%s2744_s18 + $0x38] sm:$0x1]  ;;  %v2863_v33 = vld [vmem:[%s2744_s18 + $0xd] sm:$0x1]  ;;  %vm5457_vm11 = vcmp.ne.f32.partialorder %v2801_v19, %v2801_v19 }
  0x1f   : > { %vm2842_vm5 = vmxor %vm303_vm13, %vm5327_vm7  ;;  %vm308_vm13 = vcmp.ne.f32.partialorder %v2821_v23, %v2821_v23  ;;  %v2875_v35 = vld [vmem:[%s2744_s18 + $0x3c] sm:$0x1]  ;;  %v2878_v36 = vld [vmem:[%s2744_s18 + $0x11] sm:$0x1] }
  0x20   : > { %vm2855_vm9 = vmxor %vm304_vm15, %vm5327_vm7  ;;  %v2893_v38 = vld [vmem:[%s2744_s18 + $0x15] sm:$0x1]  ;;  %vm310_vm15 = vcmp.ne.f32.partialorder %v2847_v29, %v2847_v29  ;;  %v2908_v40 = vld [vmem:[%s2744_s18 + $0x19] sm:$0x1] }
  0x21   : > { %v5454_v31 = vsel %vm2855_vm9, 4294967295, %v5453_v31  ;;  %vm2870_vm4 = vmxor %vm305_vm1, %vm5327_vm7  ;;  %vm311_vm1 = vcmp.ne.f32.partialorder %v2860_v32, %v2860_v32  ;;  %v2929_v43 = vld [vmem:[%s2744_s18 + $0x1d] sm:$0x1]  ;;  %v2950_v46 = vld [vmem:[%s2744_s18 + $0x21] sm:$0x1] }
  0x22   : > { %v5456_v34 = vsel %vm2870_vm4, 4294967295, %v5455_v34  ;;  %vm2888_vm2 = vmxor %vm5457_vm11, %vm5327_vm7  ;;  %vm5460_vm4 = vcmp.ne.f32.partialorder %v2811_v21, %v2811_v21  ;;  %vm278_vm11 = vcmp.ne.f32.partialorder %v2893_v38, %v2893_v38  ;;  %v2969_v49 = vld [vmem:[%s2744_s18 + $0x25] sm:$0x1]  ;;  %v2988_v52 = vld [vmem:[%s2744_s18 + $0x29] sm:$0x1] }
  0x23   : > { %v5459_v37 = vsel %vm2888_vm2, 4294967295, %v5458_v37  ;;  %vm2903_vm9 = vmxor %vm5460_vm4, %vm5327_vm7  ;;  %vm5465_vm4 = vcmp.ne.f32.partialorder %v2824_v24, %v2824_v24  ;;  %v3007_v55 = vld [vmem:[%s2744_s18 + $0x2d] sm:$0x1]  ;;  %v3018_v57 = vld [vmem:[%s2744_s18 + $0x31] sm:$0x1] }
  0x24   : > { %v5462_v39 = vsel %vm2903_vm9, 4294967295, %v5461_v39  ;;  %vm2915_vm2 = vmxor %vm308_vm13, %vm5327_vm7  ;;  %vm312_vm13 = vcmp.ne.f32.partialorder %v2875_v35, %v2875_v35  ;;  %v3029_v59 = vld [vmem:[%s2744_s18 + $0x35] sm:$0x1]  ;;  %v3040_v61 = vld [vmem:[%s2744_s18 + $0x39] sm:$0x1] }
  0x25   : > { %v5464_v41 = vsel %vm2915_vm2, 4294967295, %v5463_v41  ;;  %vm2924_vm9 = vmand %vm5465_vm4, %vm2776_vm8  ;;  %vm5470_vm8 = vcmp.ne.f32.partialorder %v2837_v27, %v2837_v27  ;;  %v3053_v63 = vld [vmem:[%s2744_s18 + $0x3d] sm:$0x1] }
  0x26   : > { %vm2936_vm2 = vmxor %vm309_vm6, %vm5327_vm7 }
  0x27   : > { %v5469_v44 = vsel %vm2936_vm2, 4294967295, %v5468_v44  ;;  %vm2945_vm4 = vmand %vm5470_vm8, %vm2786_vm10  ;;  %vm5475_vm2 = vcmp.ne.f32.partialorder %v2850_v30, %v2850_v30  ;;  %vm279_vm8 = vcmp.ne.f32.partialorder %v2908_v40, %v2908_v40 }
  0x28   : > { %v5472_v45 = vsel %vm2945_vm4, 4294967295, %v5471_v45  ;;  %vm2955_vm6 = vmxor %vm310_vm15, %vm5327_vm7 }
  0x29   : > { %v5474_v47 = vsel %vm2955_vm6, 4294967295, %v5473_v47  ;;  %vm2964_vm10 = vmand %vm5475_vm2, %vm2796_vm12  ;;  %vm5480_vm6 = vcmp.ne.f32.partialorder %v2863_v33, %v2863_v33  ;;  %vm280_vm12 = vcmp.ne.f32.partialorder %v2929_v43, %v2929_v43 }
  0x2a   : > { %v5477_v48 = vsel %vm2964_vm10, 4294967295, %v5476_v48  ;;  %vm2974_vm15 = vmxor %vm311_vm1, %vm5327_vm7 }
  0x2b   : > { %v5479_v50 = vsel %vm2974_vm15, 4294967295, %v5478_v50  ;;  %vm2983_vm2 = vmand %vm5480_vm6, %vm2806_vm14  ;;  %vm5485_vm15 = vcmp.ne.f32.partialorder %v2878_v36, %v2878_v36  ;;  %vm281_vm6 = vcmp.ne.f32.partialorder %v2950_v46, %v2950_v46 }
  0x2c   : > { %v5482_v51 = vsel %vm2983_vm2, 4294967295, %v5481_v51  ;;  %vm2993_vm1 = vmxor %vm312_vm13, %vm5327_vm7  ;;  %vm282_vm7 = vcmp.ne.f32.partialorder %v2969_v49, %v2969_v49  ;;  %vm252_vm2 = vcmp.gt.f32.partialorder %v2863_v33, %v2756_v10 }
  0x2d   : > { %v5484_v53 = vsel %vm2993_vm1, 4294967295, %v5483_v53  ;;  %vm3002_vm14 = vmand %vm5485_vm15, %vm2816_vm0  ;;  %vm283_vm15 = vcmp.ne.f32.partialorder %v2988_v52, %v2988_v52 }
  0x2e   : > { %v5487_v54 = vsel %vm3002_vm14, 4294967295, %v5486_v54  ;;  %vm3013_vm13 = vmand %vm278_vm11, %vm2829_vm3  ;;  %vm5492_vm3 = vnez %v5454_v31  ;;  %v5528_v31 = vmov 0 }
  0x2f   : > { %v5489_v56 = vsel %vm3013_vm13, 4294967295, %v5488_v56  ;;  %vm3024_vm0 = vmand %vm279_vm8, %vm2842_vm5  ;;  %vm249_vm13 = vcmp.gt.f32.partialorder %v2824_v24, %v2747_v7  ;;  %vm284_vm5 = vcmp.ne.f32.partialorder %v3007_v55, %v3007_v55  ;;  %vm5495_vm8 = vnez %v5456_v34 }
  0x30   : > { %v5491_v58 = vsel %vm3024_vm0, 4294967295, %v5490_v58  ;;  %vm3035_vm11 = vmand %vm280_vm12, %vm5492_vm3  ;;  %vm250_vm12 = vcmp.gt.f32.partialorder %v2837_v27, %v2750_v8  ;;  %vm285_vm3 = vcmp.ne.f32.partialorder %v3018_v57, %v3018_v57  ;;  %v5532_v34 = vmov 0 }
  0x31   : > { %v5494_v60 = vsel %vm3035_vm11, 4294967295, %v5493_v60  ;;  %vm3048_vm0 = vmand %vm281_vm6, %vm5495_vm8  ;;  %vm5498_vm11 = vnez %v5459_v37  ;;  %vm251_vm6 = vcmp.gt.f32.partialorder %v2850_v30, %v2753_v9  ;;  %vm286_vm8 = vcmp.ne.f32.partialorder %v3029_v59, %v3029_v59 }
  0x32   : > { %v5497_v62 = vsel %vm3048_vm0, 4294967295, %v5496_v62  ;;  %vm3061_vm14 = vmand %vm282_vm7, %vm5498_vm11  ;;  %vm5501_vm0 = vnez %v5462_v39  ;;  %vm287_vm7 = vcmp.ne.f32.partialorder %v3040_v61, %v3040_v61  ;;  %vm5504_vm11 = vnez %v5464_v41 }
  0x33   : > { %v5500_v0 = vsel %vm3061_vm14, 4294967295, %v5499_v0  ;;  %vm3071_vm1 = vmand %vm283_vm15, %vm5501_vm0  ;;  %vm253_vm0 = vcmp.gt.f32.partialorder %v2878_v36, %v2761_v11  ;;  %vm288_vm15 = vcmp.ne.f32.partialorder %v3053_v63, %v3053_v63  ;;  %v5535_v37 = vmov 0 }
  0x34   : > { %v5503_v2 = vsel %vm3071_vm1, 4294967295, %v5502_v2  ;;  %vm3081_vm14 = vmand %vm284_vm5, %vm5504_vm11  ;;  %vm5510_vm1 = vnez %v5469_v44  ;;  %vm5513_vm5 = vnez %v5472_v45  ;;  %v5539_v39 = vmov 0 }
  0x35   : > { %v5506_v14 = vsel %vm3081_vm14, 4294967295, %v5505_v14  ;;  %vm3087_vm10 = vmor %vm249_vm13, %vm2924_vm9  ;;  %vm254_vm9 = vcmp.gt.f32.partialorder %v2893_v38, %v2766_v12  ;;  %vm5517_vm13 = vnez %v5474_v47  ;;  %v5543_v41 = vmov 0 }
  0x36   : > { %v5508_v16 = vsel %vm3087_vm10, 4294967295, %v5507_v16  ;;  %vm3097_vm4 = vmand %vm285_vm3, %vm5510_vm1  ;;  %vm5520_vm1 = vnez %v5477_v48  ;;  %v5551_v44 = vmov 0  ;;  %v5555_v45 = vmov 0 }
  0x37   : > { %5509 = vst [vmem:[#allocation6_spill] sm:$0xff] %v5508_v16  ;;  %v5512_v18 = vsel %vm3097_vm4, 4294967295, %v5511_v18  ;;  %vm3103_vm11 = vmor %vm250_vm12, %vm5513_vm5  ;;  %vm255_vm12 = vcmp.gt.f32.partialorder %v2908_v40, %v2771_v13  ;;  %vm5524_vm5 = vnez %v5479_v50  ;;  %v5559_v47 = vmov 0 }
  0x38   : > { %v5515_v20 = vsel %vm3103_vm11, 4294967295, %v5514_v20  ;;  %vm3111_vm14 = vmand %vm286_vm8, %vm5517_vm13  ;;  %vm5527_vm8 = vnez %v5482_v51  ;;  %v3201_v48 = vsel %vm3087_vm10, %v2824_v24, %v2747_v7  ;;  %v5563_v50 = vmov 0 }
  0x39   : > { %5516 = vst [vmem:[#allocation7_spill] sm:$0xff] %v5515_v20  ;;  %v5519_v22 = vsel %vm3111_vm14, 4294967295, %v5518_v22  ;;  %vm3117_vm3 = vmor %vm251_vm6, %vm5520_vm1  ;;  %vm256_vm6 = vcmp.gt.f32.partialorder %v2929_v43, %v2781_v15  ;;  %vm5531_vm1 = vnez %v5484_v53  ;;  %v3215_v51 = vsel %vm3103_vm11, %v2837_v27, %v2750_v8  ;;  %v3361_v53 = vld [vmem:[%s2744_s18 + $0x6] sm:$0x1] }
  0x3a   : > { %v5522_v25 = vsel %vm3117_vm3, 4294967295, %v5521_v25  ;;  %vm3125_vm4 = vmand %vm287_vm7, %vm5524_vm5  ;;  %vm5534_vm7 = vnez %v5487_v54  ;;  %v5567_v7 = vmov 0  ;;  %v3229_v24 = vsel %vm3117_vm3, %v2850_v30, %v2753_v9 }
  0x3b   : > { %5523 = vst [vmem:[#allocation8_spill] sm:$0xff] %v5522_v25  ;;  %v5526_v28 = vsel %vm3125_vm4, 4294967295, %v5525_v28  ;;  %vm3131_vm13 = vmor %vm252_vm2, %vm5527_vm8  ;;  %vm257_vm2 = vcmp.gt.f32.partialorder %v2950_v46, %v2791_v17  ;;  %vm5538_vm8 = vnez %v5489_v56  ;;  %v5571_v8 = vmov 0 }
  0x3c   : > { %v5529_v31 = vsel %vm3131_vm13, 4294967295, %v5528_v31  ;;  %vm3139_vm14 = vmand %vm288_vm15, %vm5531_vm1  ;;  %vm258_vm15 = vcmp.gt.f32.partialorder %v2969_v49, %v2801_v19  ;;  %vm5542_vm1 = vnez %v5491_v58  ;;  %v3241_v27 = vsel %vm3131_vm13, %v2863_v33, %v2756_v10  ;;  %v3411_v58 = vld [vmem:[%s2744_s18 + $0x12] sm:$0x1] }
  0x3d   : > { %5530 = vst [vmem:[#allocation9_spill] sm:$0xff] %v5529_v31  ;;  %v5533_v34 = vsel %vm3139_vm14, 4294967295, %v5532_v34  ;;  %vm3145_vm5 = vmor %vm253_vm0, %vm5534_vm7  ;;  %vm259_vm0 = vcmp.gt.f32.partialorder %v2988_v52, %v2811_v21  ;;  %vm5546_vm7 = vnez %v5494_v60  ;;  %v5575_v9 = vmov 0  ;;  %v3426_v60 = vld [vmem:[%s2744_s18 + $0x16] sm:$0x1] }
  0x3e   : > { %v5536_v37 = vsel %vm3145_vm5, 4294967295, %v5535_v37  ;;  %vm3153_vm4 = vmor %vm254_vm9, %vm5538_vm8  ;;  %vm260_vm9 = vcmp.gt.f32.partialorder %v3007_v55, %v2821_v23  ;;  %vm5550_vm8 = vnez %v5497_v62  ;;  %vm5579_vm13 = vnez %v5533_v34  ;;  %v3502_v34 = vld [vmem:[%s2744_s18 + $0x26] sm:$0x1] }
  0x3f   : > { %5537 = vst [vmem:[#allocation10_spill] sm:$0xff] %v5536_v37  ;;  %v5540_v39 = vsel %vm3153_vm4, 4294967295, %v5539_v39  ;;  %vm3161_vm14 = vmor %vm255_vm12, %vm5542_vm1  ;;  %vm261_vm12 = vcmp.gt.f32.partialorder %v3018_v57, %v2834_v26  ;;  %vm5554_vm1 = vnez %v5500_v0  ;;  %v5580_v10 = vmov 0  ;;  %v3462_v0 = vld [vmem:[%s2744_s18 + $0x1e] sm:$0x1] }
  0x40   : > { %5541 = vst [vmem:[#allocation11_spill] sm:$0xff] %v5540_v39  ;;  %v5544_v41 = vsel %vm3161_vm14, 4294967295, %v5543_v41  ;;  %vm3169_vm5 = vmor %vm256_vm6, %vm5546_vm7  ;;  %vm262_vm6 = vcmp.gt.f32.partialorder %v3029_v59, %v2847_v29  ;;  %vm5558_vm7 = vnez %v5503_v2  ;;  %v5612_v62 = vmov 0 }
  0x41   : > { %5545 = vst [vmem:[#allocation12_spill] sm:$0xff] %v5544_v41  ;;  %v5548_v42 = vsel %vm3169_vm5, 4294967295, %v5547_v42  ;;  %vm3177_vm4 = vmor %vm257_vm2, %vm5550_vm8  ;;  %vm263_vm2 = vcmp.gt.f32.partialorder %v3040_v61, %v2860_v32  ;;  %v5617_v2 = vmov 0 }
  0x42   : > { %5549 = vst [vmem:[#allocation13_spill] sm:$0xff] %v5548_v42  ;;  %v5552_v44 = vsel %vm3177_vm4, 4294967295, %v5551_v44  ;;  %vm3185_vm14 = vmor %vm258_vm15, %vm5554_vm1  ;;  %vm5562_vm15 = vnez %v5506_v14  ;;  %vm5566_vm1 = vnez %v5512_v18  ;;  %v3483_v18 = vld [vmem:[%s2744_s18 + $0x22] sm:$0x1] }
  0x43   : > { %5553 = vst [vmem:[#allocation14_spill] sm:$0xff] %v5552_v44  ;;  %v5556_v45 = vsel %vm3185_vm14, 4294967295, %v5555_v45  ;;  %vm3193_vm5 = vmor %vm259_vm0, %vm5558_vm7  ;;  %vm264_vm0 = vcmp.gt.f32.partialorder %v3053_v63, %v2875_v35 }
  0x44   : > { %5557 = vst [vmem:[#allocation15_spill] sm:$0xff] %v5556_v45  ;;  %v5560_v47 = vsel %vm3193_vm5, 4294967295, %v5559_v47  ;;  %vm3207_vm8 = vmor %vm260_vm9, %vm5562_vm15  ;;  %vm5570_vm9 = vnez %v5519_v22  ;;  %v5622_v22 = vmov 0 }
  0x45   : > { %5561 = vst [vmem:[#allocation16_spill] sm:$0xff] %v5560_v47  ;;  %v5564_v50 = vsel %vm3207_vm8, 4294967295, %v5563_v50  ;;  %vm3221_vm7 = vmor %vm261_vm12, %vm5566_vm1  ;;  %vm513_vm12 = vcmp.ne.f32.partialorder %v3201_v48, %v3201_v48  ;;  %vm5574_vm1 = vnez %v5526_v28  ;;  %v5625_v28 = vmov 0  ;;  %v3576_v47 = vld [vmem:[%s2744_s18 + $0x3e] sm:$0x1] }
  0x46   : > { %5565 = vst [vmem:[#allocation17_spill] sm:$0xff] %v5564_v50  ;;  %v5568_v7 = vsel %vm3221_vm7, 4294967295, %v5567_v7  ;;  %vm3233_vm15 = vmor %vm262_vm6, %vm5570_vm9  ;;  %vm5578_vm6 = vnez %v5536_v37  ;;  %vm514_vm9 = vcmp.ne.f32.partialorder %v3215_v51, %v3215_v51  ;;  %v3573_v50 = vld [vmem:[%s2744_s18 + $0x3a] sm:$0x1] }
  0x47   : > { %5569 = vst [vmem:[#allocation18_spill] sm:$0xff] %v5568_v7  ;;  %v5572_v8 = vsel %vm3233_vm15, 4294967295, %v5571_v8  ;;  %vm3247_vm11 = vmor %vm263_vm2, %vm5574_vm1  ;;  %v3255_v30 = vsel %vm5578_vm6, %v2878_v36, %v2761_v11  ;;  %vm5583_vm2 = vnez %v5540_v39  ;;  %vm515_vm1 = vcmp.ne.f32.partialorder %v3229_v24, %v3229_v24  ;;  %v3562_v7 = vld [vmem:[%s2744_s18 + $0x36] sm:$0x1] }
  0x48   : > { %5573 = vst [vmem:[#allocation19_spill] sm:$0xff] %v5572_v8  ;;  %v5576_v9 = vsel %vm3247_vm11, 4294967295, %v5575_v9  ;;  %vm3261_vm3 = vmor %vm264_vm0, %vm5579_vm13  ;;  %v3269_v33 = vsel %vm5583_vm2, %v2893_v38, %v2766_v12  ;;  %vm5584_vm6 = vnez %v5544_v41  ;;  %vm516_vm13 = vcmp.ne.f32.partialorder %v3241_v27, %v3241_v27  ;;  %v3551_v8 = vld [vmem:[%s2744_s18 + $0x32] sm:$0x1] }
  0x49   : > { %5577 = vst [vmem:[#allocation20_spill] sm:$0xff] %v5576_v9  ;;  %v5581_v10 = vsel %vm3261_vm3, 4294967295, %v5580_v10  ;;  %v3277_v11 = vsel %vm5584_vm6, %v2908_v40, %v2771_v13  ;;  %vm5585_vm0 = vmmov 1   ;;  %vm5588_vm2 = vnez %v5548_v42  ;;  %v4016_v13 = vld [vmem:[%s2744_s18 + $0x55] sm:$0x1] }
  0x4a   : > { %5582 = vst [vmem:[#allocation21_spill] sm:$0xff] %v5581_v10  ;;  %vm3282_vm10 = vmxor %vm513_vm12, %vm5585_vm0  ;;  %v3290_v12 = vsel %vm5588_vm2, %v2929_v43, %v2781_v15  ;;  %vm517_vm3 = vcmp.ne.f32.partialorder %v3255_v30, %v3255_v30  ;;  %v3303_v38 = vsel %vm3177_vm4, %v2950_v46, %v2791_v17  ;;  %vm518_vm12 = vcmp.ne.f32.partialorder %v3269_v33, %v3269_v33  ;;  %v3521_v15 = vld [vmem:[%s2744_s18 + $0x2a] sm:$0x1] }
  0x4b   : > { %vm3295_vm6 = vmxor %vm514_vm9, %vm5585_vm0  ;;  %v3316_v40 = vsel %vm3185_vm14, %v2969_v49, %v2801_v19  ;;  %vm519_vm9 = vcmp.ne.f32.partialorder %v3277_v11, %v3277_v11  ;;  %v3329_v43 = vsel %vm3193_vm5, %v2988_v52, %v2811_v21  ;;  %v3342_v46 = vsel %vm3207_vm8, %v3007_v55, %v2821_v23  ;;  %v3345_v49 = vld [vmem:[%s2744_s18 + $0x2] sm:$0x1]  ;;  %v3377_v55 = vld [vmem:[%s2744_s18 + $0xa] sm:$0x1] }
  0x4c   : > { %vm3308_vm2 = vmxor %vm515_vm1, %vm5585_vm0  ;;  %vm520_vm1 = vcmp.ne.f32.partialorder %v3290_v12, %v3290_v12  ;;  %v3358_v52 = vsel %vm3221_vm7, %v3018_v57, %v2834_v26  ;;  %v3374_v54 = vsel %vm3233_vm15, %v3029_v59, %v2847_v29  ;;  %v5601_v26 = vmov 0  ;;  %v3393_v57 = vld [vmem:[%s2744_s18 + $0xe] sm:$0x1] }
  0x4d   : > { %vm3321_vm4 = vmxor %vm516_vm13, %vm5585_vm0  ;;  %vm521_vm13 = vcmp.ne.f32.partialorder %v3303_v38, %v3303_v38  ;;  %v3390_v56 = vsel %vm3247_vm11, %v3040_v61, %v2860_v32  ;;  %v5603_v29 = vmov 0  ;;  %vm5605_vm15 = vnez %v5581_v10  ;;  %v3441_v61 = vld [vmem:[%s2744_s18 + $0x1a] sm:$0x1]  ;;  %v3540_v10 = vld [vmem:[%s2744_s18 + $0x2e] sm:$0x1] }
  0x4e   : > { %vm3334_vm14 = vmxor %vm517_vm3, %vm5585_vm0  ;;  %v3408_v32 = vsel %vm5605_vm15, %v3053_v63, %v2875_v35  ;;  %vm525_vm11 = vcmp.ne.f32.partialorder %v3358_v52, %v3358_v52  ;;  %v5607_v59 = vmov 0  ;;  %v5610_v35 = vmov 0 }
  0x4f   : > { %vm3350_vm5 = vmxor %vm518_vm12, %vm5585_vm0  ;;  %vm524_vm12 = vcmp.ne.f32.partialorder %v3342_v46, %v3342_v46  ;;  %vm527_vm15 = vcmp.ne.f32.partialorder %v3390_v56, %v3390_v56  ;;  %v5627_v36 = vmov 0  ;;  %v5635_v17 = vmov 0 }
  0x50   : > { %vm3366_vm8 = vmxor %vm519_vm9, %vm5585_vm0  ;;  %vm526_vm9 = vcmp.ne.f32.partialorder %v3374_v54, %v3374_v54  ;;  %v5637_v9 = vmov 0  ;;  %v5639_v19 = vmov 0  ;;  %v5642_v21 = vmov 0 }
  0x51   : > { %vm3382_vm3 = vmxor %vm520_vm1, %vm5585_vm0  ;;  %v5645_v23 = vmov 0  ;;  %v5663_v63 = vmov 0 }
  0x52   : > { %v5602_v26 = vsel %vm3382_vm3, 4294967295, %v5601_v26  ;;  %vm3400_vm1 = vmxor %vm521_vm13, %vm5585_vm0  ;;  %vm5606_vm13 = vcmp.ne.f32.partialorder %v3316_v40, %v3316_v40 }
  0x53   : > { %v5604_v29 = vsel %vm3400_vm1, 4294967295, %v5603_v29  ;;  %vm3421_vm7 = vmxor %vm5606_vm13, %vm5585_vm0  ;;  %vm5609_vm1 = vcmp.ne.f32.partialorder %v3329_v43, %v3329_v43  ;;  %vm494_vm13 = vcmp.ne.f32.partialorder %v3426_v60, %v3426_v60 }
  0x54   : > { %v5608_v59 = vsel %vm3421_vm7, 4294967295, %v5607_v59  ;;  %vm3436_vm3 = vmxor %vm5609_vm1, %vm5585_vm0  ;;  %vm5614_vm1 = vcmp.ne.f32.partialorder %v3345_v49, %v3345_v49 }
  0x55   : > { %v5611_v35 = vsel %vm3436_vm3, 4294967295, %v5610_v35  ;;  %vm3448_vm7 = vmxor %vm524_vm12, %vm5585_vm0  ;;  %vm528_vm12 = vcmp.ne.f32.partialorder %v3408_v32, %v3408_v32 }
  0x56   : > { %v5613_v62 = vsel %vm3448_vm7, 4294967295, %v5612_v62  ;;  %vm3457_vm3 = vmand %vm5614_vm1, %vm3282_vm10  ;;  %vm5619_vm10 = vcmp.ne.f32.partialorder %v3361_v53, %v3361_v53 }
  0x57   : > { %vm3469_vm7 = vmxor %vm525_vm11, %vm5585_vm0 }
  0x58   : > { %v5618_v2 = vsel %vm3469_vm7, 4294967295, %v5617_v2  ;;  %vm3478_vm1 = vmand %vm5619_vm10, %vm3295_vm6  ;;  %vm5624_vm7 = vcmp.ne.f32.partialorder %v3377_v55, %v3377_v55  ;;  %vm495_vm10 = vcmp.ne.f32.partialorder %v3441_v61, %v3441_v61 }
  0x59   : > { %vm3488_vm11 = vmxor %vm526_vm9, %vm5585_vm0 }
  0x5a   : > { %v5623_v22 = vsel %vm3488_vm11, 4294967295, %v5622_v22  ;;  %vm3497_vm6 = vmand %vm5624_vm7, %vm3308_vm2  ;;  %vm5629_vm11 = vcmp.ne.f32.partialorder %v3393_v57, %v3393_v57  ;;  %vm496_vm2 = vcmp.ne.f32.partialorder %v3462_v0, %v3462_v0 }
  0x5b   : > { %v5626_v28 = vsel %vm3497_vm6, 4294967295, %v5625_v28  ;;  %vm3507_vm9 = vmxor %vm527_vm15, %vm5585_vm0 }
  0x5c   : > { %v5628_v36 = vsel %vm3507_vm9, 4294967295, %v5627_v36  ;;  %vm3516_vm7 = vmand %vm5629_vm11, %vm3321_vm4  ;;  %vm5634_vm9 = vcmp.ne.f32.partialorder %v3411_v58, %v3411_v58  ;;  %vm497_vm4 = vcmp.ne.f32.partialorder %v3483_v18, %v3483_v18  ;;  %vm498_vm11 = vcmp.ne.f32.partialorder %v3502_v34, %v3502_v34 }
  0x5d   : > { %vm3526_vm15 = vmxor %vm528_vm12, %vm5585_vm0  ;;  %vm5644_vm0 = vnez %v5604_v29 }
  0x5e   : > { %vm3535_vm6 = vmand %vm5634_vm9, %vm3334_vm14  ;;  %vm499_vm9 = vcmp.ne.f32.partialorder %v3521_v15, %v3521_v15 }
  0x5f   : > { %v5636_v17 = vsel %vm3535_vm6, 4294967295, %v5635_v17  ;;  %vm3546_vm12 = vmand %vm494_vm13, %vm3350_vm5  ;;  %vm5641_vm5 = vnez %v5602_v26  ;;  %v5648_v26 = vmov 0  ;;  %vm5666_vm6 = vnez %v5623_v22  ;;  %v3685_v22 = vld [vmem:[%s2744_s18 + $0x40] sm:$0x1] }
  0x60   : > { %v5638_v9 = vsel %vm3546_vm12, 4294967295, %v5637_v9  ;;  %vm3557_vm14 = vmand %vm495_vm10, %vm3366_vm8  ;;  %vm465_vm8 = vcmp.gt.f32.partialorder %v3345_v49, %v3201_v48  ;;  %vm500_vm10 = vcmp.ne.f32.partialorder %v3540_v10, %v3540_v10 }
  0x61   : > { %v5640_v19 = vsel %vm3557_vm14, 4294967295, %v5639_v19  ;;  %vm3568_vm13 = vmand %vm496_vm2, %vm5641_vm5  ;;  %vm501_vm5 = vcmp.ne.f32.partialorder %v3551_v8, %v3551_v8 }
  0x62   : > { %v5643_v21 = vsel %vm3568_vm13, 4294967295, %v5642_v21  ;;  %vm3584_vm14 = vmand %vm497_vm4, %vm5644_vm0  ;;  %vm5647_vm13 = vnez %v5608_v59  ;;  %vm5650_vm4 = vnez %v5611_v35  ;;  %vm5653_vm0 = vnez %v5613_v62 }
  0x63   : > { %v5646_v23 = vsel %vm3584_vm14, 4294967295, %v5645_v23  ;;  %vm3594_vm12 = vmand %vm498_vm11, %vm5647_vm13  ;;  %vm503_vm13 = vcmp.ne.f32.partialorder %v3573_v50, %v3573_v50  ;;  %v5656_v35 = vmov 0  ;;  %vm5670_vm11 = vnez %v5626_v28  ;;  %v3993_v28 = vld [vmem:[%s2744_s18 + $0x51] sm:$0x1] }
  0x64   : > { %v5649_v26 = vsel %vm3594_vm12, 4294967295, %v5648_v26  ;;  %vm3604_vm14 = vmand %vm499_vm9, %vm5650_vm4  ;;  %vm5671_vm4 = vcmp.gt.f32.partialorder %v3377_v55, %v3229_v24 }
  0x65   : > { %vm3618_vm12 = vmand %vm500_vm10, %vm5653_vm0  ;;  %vm5659_vm10 = vnez %v5618_v2  ;;  %v3970_v2 = vld [vmem:[%s2744_s18 + $0x4d] sm:$0x1] }
  0x66   : > { %vm3624_vm9 = vmor %vm465_vm8, %vm3457_vm3  ;;  %vm5662_vm3 = vcmp.gt.f32.partialorder %v3361_v53, %v3215_v51 }
  0x67   : > { %v5657_v35 = vsel %vm3624_vm9, 4294967295, %v5656_v35  ;;  %vm3636_vm0 = vmand %vm501_vm5, %vm5659_vm10  ;;  %v3653_v45 = vsel %vm3624_vm9, %v3345_v49, %v3201_v48  ;;  %v5672_v48 = vmov 0  ;;  %vm5679_vm10 = vcmp.gt.f32.partialorder %v3393_v57, %v3241_v27 }
  0x68   : > { %5658 = vst [vmem:[#allocation22_spill] sm:$0xff] %v5657_v35  ;;  %vm3645_vm8 = vmor %vm5662_vm3, %vm3478_vm1  ;;  %vm5667_vm1 = vcmp.ne.f32.partialorder %v3562_v7, %v3562_v7  ;;  %v681_v14 = vand.u32 255, %v3653_v45  ;;  %v3749_v35 = vld [vmem:[%s2744_s18 + $0x48] sm:$0x1] }
  0x69   : > { %v5664_v63 = vsel %vm3645_vm8, 4294967295, %v5663_v63  ;;  %vm3664_vm3 = vmand %vm5667_vm1, %vm5666_vm6  ;;  %v3681_v49 = vsel %vm3645_vm8, %v3361_v53, %v3215_v51  ;;  %v5680_v51 = vmov 0 }
  0x6a   : > { %5665 = vst [vmem:[#allocation23_spill] sm:$0xff] %v5664_v63  ;;  %vm3673_vm2 = vmor %vm5671_vm4, %vm5670_vm11  ;;  %vm5676_vm4 = vnez %v5628_v36  ;;  %v682_v36 = vand.u32 255, %v3681_v49  ;;  %v3717_v63 = vld [vmem:[%s2744_s18 + $0x44] sm:$0x1]  ;;  %vm5687_vm11 = vcmp.gt.f32.partialorder %v3411_v58, %v3255_v30 }
  0x6b   : > { %v5673_v48 = vsel %vm3673_vm2, 4294967295, %v5672_v48  ;;  %5675 = vst [vmem:[#allocation25_spill] sm:$0xff] %v3681_v49  ;;  %vm3696_vm1 = vmand %vm503_vm13, %vm5676_vm4  ;;  %v3713_v53 = vsel %vm3673_vm2, %v3377_v55, %v3229_v24  ;;  %vm5686_vm4 = vnez %v5636_v17  ;;  %v5688_v24 = vmov 0 }
  0x6c   : > { %5674 = vst [vmem:[#allocation24_spill] sm:$0xff] %v5673_v48  ;;  %vm3705_vm5 = vmor %vm5679_vm10, %vm3516_vm7  ;;  %vm5683_vm7 = vcmp.ne.f32.partialorder %v3576_v47, %v3576_v47  ;;  %v683_v55 = vand.u32 255, %v3713_v53  ;;  %v3746_v48 = vcvt.s32.f32 %v681_v14  ;;  %v5693_v17 = vmov 0 }
  0x6d   : > { %v5681_v51 = vsel %vm3705_vm5, 4294967295, %v5680_v51  ;;  %vm3726_vm10 = vmand %vm5683_vm7, %vm3526_vm15  ;;  %v3743_v6 = vsel %vm3705_vm5, %v3393_v57, %v3241_v27  ;;  %vm5692_vm7 = vcmp.gt.f32.partialorder %v3426_v60, %v3269_v33  ;;  %v3769_v14 = vcvt.s32.f32 %v682_v36 }
  0x6e   : > { %5682 = vst [vmem:[#allocation26_spill] sm:$0xff] %v5681_v51  ;;  %vm3735_vm6 = vmor %vm5687_vm11, %vm5686_vm4  ;;  %vm5691_vm11 = vnez %v5638_v9  ;;  %v684_v57 = vand.u32 255, %v3743_v6  ;;  %v3772_v51 = vld [vmem:[%s2744_s18 + $0x4c] sm:$0x1]  ;;  %vm5697_vm13 = vcmp.gt.f32.partialorder %v3441_v61, %v3277_v11  ;;  %v5698_v9 = vmov 0 }
  0x6f   : > { %v5689_v24 = vsel %vm3735_vm6, 4294967295, %v5688_v24  ;;  %vm3758_vm4 = vmor %vm5692_vm7, %vm5691_vm11  ;;  %v3766_v27 = vsel %vm3735_vm6, %v3411_v58, %v3255_v30  ;;  %vm5696_vm7 = vnez %v5640_v19  ;;  %v3794_v36 = vcvt.s32.f32 %v683_v55 }
  0x70   : > { %5690 = vst [vmem:[#allocation27_spill] sm:$0xff] %v5689_v24  ;;  %v5694_v17 = vsel %vm3758_vm4, 4294967295, %v5693_v17  ;;  %vm3783_vm6 = vmor %vm5697_vm13, %vm5696_vm7  ;;  %v3791_v30 = vsel %vm3758_vm4, %v3426_v60, %v3269_v33  ;;  %v685_v58 = vand.u32 255, %v3766_v27  ;;  %v3797_v24 = vld [vmem:[%s2744_s18 + $0x50] sm:$0x1]  ;;  %vm5701_vm7 = vnez %v5643_v21 }
  0x71   : > { %5695 = vst [vmem:[#allocation28_spill] sm:$0xff] %v5694_v17  ;;  %v5699_v9 = vsel %vm3783_vm6, 4294967295, %v5698_v9  ;;  %vm5702_vm11 = vcmp.gt.f32.partialorder %v3462_v0, %v3290_v12  ;;  %v5703_v33 = vmov 0  ;;  %v3816_v60 = vsel %vm3783_vm6, %v3441_v61, %v3277_v11  ;;  %v3822_v17 = vld [vmem:[%s2744_s18 + $0x54] sm:$0x1] }
  0x72   : > { %5700 = vst [vmem:[#allocation29_spill] sm:$0xff] %v5699_v9  ;;  %vm3808_vm4 = vmor %vm5702_vm11, %vm5701_vm7  ;;  %v686_v19 = vand.u32 255, %v3791_v30  ;;  %v3819_v55 = vcvt.s32.f32 %v684_v57  ;;  %vm5706_vm11 = vnez %v5646_v23  ;;  %vm5707_vm7 = vcmp.gt.f32.partialorder %v3483_v18, %v3303_v38  ;;  %v3847_v9 = vld [vmem:[%s2744_s18 + $0x58] sm:$0x1] }
  0x73   : > { %v5704_v33 = vsel %vm3808_vm4, 4294967295, %v5703_v33  ;;  %vm3831_vm13 = vmor %vm5707_vm7, %vm5706_vm11  ;;  %v5708_v21 = vmov 0  ;;  %v3839_v11 = vsel %vm3808_vm4, %v3462_v0, %v3290_v12  ;;  %v687_v61 = vand.u32 255, %v3816_v60 }
  0x74   : > { %5705 = vst [vmem:[#allocation30_spill] sm:$0xff] %v5704_v33  ;;  %v5709_v21 = vsel %vm3831_vm13, 4294967295, %v5708_v21  ;;  %v3842_v57 = vcvt.s32.f32 %v685_v58  ;;  %vm5711_vm7 = vnez %v5649_v26  ;;  %vm5712_vm15 = vcmp.gt.f32.partialorder %v3502_v34, %v3316_v40  ;;  %v3872_v33 = vld [vmem:[%s2744_s18 + $0x5c] sm:$0x1] }
  0x75   : > { %5710 = vst [vmem:[#allocation31_spill] sm:$0xff] %v5709_v21  ;;  %vm3856_vm4 = vmor %vm5712_vm15, %vm5711_vm7  ;;  %v5713_v12 = vmov 0  ;;  %v3864_v0 = vsel %vm3831_vm13, %v3483_v18, %v3303_v38  ;;  %v688_v58 = vand.u32 255, %v3839_v11  ;;  %v3867_v23 = vcvt.s32.f32 %v686_v19  ;;  %v3897_v21 = vld [vmem:[%s2744_s18 + $0x41] sm:$0x1] }
  0x76   : > { %v5714_v12 = vsel %vm3856_vm4, 4294967295, %v5713_v12  ;;  %vm5716_vm7 = vcmp.gt.f32.partialorder %v3521_v15, %v3329_v43  ;;  %v5717_v38 = vmov 0  ;;  %v3889_v18 = vsel %vm3856_vm4, %v3502_v34, %v3316_v40 }
  0x77   : > { %5715 = vst [vmem:[#allocation32_spill] sm:$0xff] %v5714_v12  ;;  %vm3881_vm11 = vmor %vm5716_vm7, %vm3604_vm14  ;;  %v689_v19 = vand.u32 255, %v3864_v0  ;;  %v3892_v26 = vcvt.s32.f32 %v687_v61  ;;  %vm5720_vm7 = vcmp.gt.f32.partialorder %v3540_v10, %v3342_v46  ;;  %v5721_v40 = vmov 0  ;;  %v3922_v12 = vld [vmem:[%s2744_s18 + $0x45] sm:$0x1] }
  0x78   : > { %v5718_v38 = vsel %vm3881_vm11, 4294967295, %v5717_v38  ;;  %vm3906_vm15 = vmor %vm5720_vm7, %vm3618_vm12  ;;  %v3914_v34 = vsel %vm3881_vm11, %v3521_v15, %v3329_v43  ;;  %v690_v61 = vand.u32 255, %v3889_v18  ;;  %v3917_v29 = vcvt.s32.f32 %v688_v58 }
  0x79   : > { %5719 = vst [vmem:[#allocation33_spill] sm:$0xff] %v5718_v38  ;;  %v5722_v40 = vsel %vm3906_vm15, 4294967295, %v5721_v40  ;;  %v732_v59 = vpack.c.bf16 %v3819_v55, %v3819_v55  ;;  %vm5724_vm7 = vcmp.gt.f32.partialorder %v3551_v8, %v3358_v52  ;;  %v5725_v43 = vmov 0  ;;  %v3947_v38 = vld [vmem:[%s2744_s18 + $0x49] sm:$0x1] }
  0x7a   : > { %5723 = vst [vmem:[#allocation34_spill] sm:$0xff] %v5722_v40  ;;  %vm3931_vm14 = vmor %vm5724_vm7, %vm3636_vm0  ;;  %v3939_v15 = vsel %vm3906_vm15, %v3540_v10, %v3342_v46  ;;  %v691_v55 = vand.u32 255, %v3914_v34  ;;  %v3942_v58 = vcvt.s32.f32 %v689_v19  ;;  %v733_v62 = vpack.c.bf16 %v3842_v57, %v3842_v57 }
  0x7b   : > { %v5726_v43 = vsel %vm3931_vm14, 4294967295, %v5725_v43  ;;  %vm5728_vm7 = vcmp.gt.f32.partialorder %v3562_v7, %v3374_v54  ;;  %v5729_v10 = vmov 0  ;;  %v3964_v46 = vsel %vm3931_vm14, %v3551_v8, %v3358_v52 }
  0x7c   : > { %5727 = vst [vmem:[#allocation35_spill] sm:$0xff] %v5726_v43  ;;  %vm3956_vm12 = vmor %vm5728_vm7, %vm3664_vm3  ;;  %v692_v57 = vand.u32 255, %v3939_v15  ;;  %v714_v19 = vcvt.s32.f32 %v690_v61  ;;  %v734_v40 = vpack.c.bf16 %v3867_v23, %v3867_v23  ;;  %vm5732_vm7 = vcmp.gt.f32.partialorder %v3573_v50, %v3390_v56 }
  0x7d   : > { %v5730_v10 = vsel %vm3956_vm12, 4294967295, %v5729_v10  ;;  %vm3979_vm0 = vmor %vm5732_vm7, %vm3696_vm1  ;;  %v5733_v8 = vmov 0  ;;  %v3987_v52 = vsel %vm3956_vm12, %v3562_v7, %v3374_v54  ;;  %v693_v23 = vand.u32 255, %v3964_v46 }
  0x7e   : > { %5731 = vst [vmem:[#allocation36_spill] sm:$0xff] %v5730_v10  ;;  %v5734_v8 = vsel %vm3979_vm0, 4294967295, %v5733_v8  ;;  %v715_v61 = vcvt.s32.f32 %v691_v55  ;;  %v735_v43 = vpack.c.bf16 %v3892_v26, %v3892_v26  ;;  %vm5736_vm7 = vcmp.gt.f32.partialorder %v3576_v47, %v3408_v32 }
  0x7f   : > { %5735 = vst [vmem:[#allocation37_spill] sm:$0xff] %v5734_v8  ;;  %vm4002_vm12 = vmor %vm5736_vm7, %vm3726_vm10  ;;  %v5737_v7 = vmov 0  ;;  %v4010_v54 = vsel %vm3979_vm0, %v3573_v50, %v3390_v56  ;;  %v694_v26 = vand.u32 255, %v3987_v52  ;;  %v716_v55 = vcvt.s32.f32 %v692_v57 }
  0x80   : > { %v5738_v7 = vsel %vm4002_vm12, 4294967295, %v5737_v7  ;;  %v736_v10 = vpack.c.bf16 %v3917_v29, %v3917_v29  ;;  %v4024_v8 = vsel %vm4002_vm12, %v3576_v47, %v3408_v32  ;;  %v695_v50 = vand.u32 255, %v4010_v54  ;;  %v4030_v29 = vld [vmem:[%s2744_s18 + $0x59] sm:$0x1] }
  0x81   : > { %5739 = vst [vmem:[#allocation38_spill] sm:$0xff] %v5738_v7  ;;  %v717_v56 = vcvt.s32.f32 %v693_v23  ;;  %v737_v57 = vpack.c.bf16 %v3942_v58, %v3942_v58  ;;  %vm5740_vm3 = vmmov 1   ;;  %vm5741_vm10 = vcmp.ne.f32.partialorder %v3685_v22, %v3685_v22  ;;  %v4044_v58 = vld [vmem:[%s2744_s18 + $0x5d] sm:$0x1] }
  0x82   : > { %vm4038_vm0 = vmxor %vm5741_vm10, %vm5740_vm3  ;;  %v696_v47 = vand.u32 255, %v4024_v8  ;;  %v718_v32 = vcvt.s32.f32 %v694_v26  ;;  %v738_v23 = vpack.c.bf16 %v714_v19, %v714_v19  ;;  %v739_v44 = vpack.c.bf16 %v715_v61, %v715_v61 }
  0x83   : > { %vm5744_vm1 = vcmp.ne.f32.partialorder %v3717_v63, %v3717_v63  ;;  %v719_v41 = vcvt.s32.f32 %v695_v50  ;;  %v740_v39 = vpack.c.bf16 %v716_v55, %v716_v55  ;;  %v741_v37 = vpack.c.bf16 %v717_v56, %v717_v56 }
  0x84   : > { %vm4052_vm14 = vmxor %vm5744_vm1, %vm5740_vm3  ;;  %v5747_v19 = vpack.c.bf16 %v3769_v14, %v3769_v14  ;;  %vm5748_vm7 = vcmp.ne.f32.partialorder %v3749_v35, %v3749_v35  ;;  %v720_v31 = vcvt.s32.f32 %v696_v47  ;;  %v742_v50 = vpack.c.bf16 %v718_v32, %v718_v32 }
  0x85   : > { %vm4065_vm15 = vmxor %vm5748_vm7, %vm5740_vm3  ;;  %v5751_v55 = vpack.c.bf16 %v3794_v36, %v3794_v36  ;;  %v1105_v14 = vunpack.c.l.b16 %v732_v59  ;;  %vm5752_vm12 = vcmp.ne.f32.partialorder %v3772_v51, %v3772_v51  ;;  %v743_v25 = vpack.c.bf16 %v719_v41, %v719_v41  ;;  %v4367_v59 = vld [vmem:[%s2744_s18 + $0x52] sm:$0x1] }
  0x86   : > { %v1103_v61 = vunpack.c.l.b16 %v5747_v19  ;;  %vm4078_vm11 = vmxor %vm5752_vm12, %vm5740_vm3  ;;  %v5755_v47 = vpack.c.bf16 %v3746_v48, %v3746_v48  ;;  %v1106_v36 = vunpack.c.l.b16 %v733_v62  ;;  %vm5756_vm10 = vcmp.ne.f32.partialorder %v3797_v24, %v3797_v24 }
  0x87   : > { %v1104_v56 = vunpack.c.l.b16 %v5751_v55  ;;  %v1107_v55 = vunpack.c.l.b16 %v734_v40  ;;  %vm4091_vm4 = vmxor %vm5756_vm10, %vm5740_vm3  ;;  %v744_v20 = vpack.c.bf16 %v720_v31, %v720_v31  ;;  %v1108_v41 = vunpack.c.l.b16 %v735_v43 }
  0x88   : > { %v1102_v32 = vunpack.c.l.b16 %v5755_v47  ;;  %v1111_v16 = vunpack.c.l.b16 %v738_v23  ;;  %v1112_v3 = vunpack.c.l.b16 %v739_v44  ;;  %vm5759_vm7 = vcmp.ne.f32.partialorder %v3822_v17, %v3822_v17 }
  0x89   : > { %vm4101_vm1 = vmxor %vm5759_vm7, %vm5740_vm3  ;;  %v1109_v40 = vunpack.c.l.b16 %v736_v10  ;;  %v1110_v62 = vunpack.c.l.b16 %v737_v57  ;;  %v1113_v47 = vunpack.c.l.b16 %v740_v39  ;;  %v1114_v1 = vunpack.c.l.b16 %v741_v37 }
  0x8a   : > { %vm5762_vm13 = vcmp.ne.f32.partialorder %v3847_v9, %v3847_v9  ;;  %v1115_v44 = vunpack.c.l.b16 %v742_v50  ;;  %v1126_v43 = vrot.slane %v1103_v61, 7  ;;  %v1129_v23 = vrot.slane %v1104_v56, 6 }
  0x8b   : > { %vm4111_vm12 = vmxor %vm5762_vm13, %vm5740_vm3  ;;  %v1132_v4 = vrot.slane %v1105_v14, 5  ;;  %vm5765_vm6 = vcmp.ne.f32.partialorder %v3872_v33, %v3872_v33  ;;  %v1116_v39 = vunpack.c.l.b16 %v743_v25  ;;  %v1117_v10 = vunpack.c.l.b16 %v744_v20 }
  0x8c   : > { %vm4121_vm10 = vmxor %vm5765_vm6, %vm5740_vm3  ;;  %v1135_v57 = vrot.slane %v1106_v36, 4  ;;  %v1138_v5 = vrot.slane %v1107_v55, 3  ;;  %vm5768_vm7 = vcmp.ne.f32.partialorder %v3897_v21, %v3897_v21  ;;  %vm5771_vm6 = vcmask 1041409  }
  0x8d   : > { %vm4132_vm5 = vmand %vm5768_vm7, %vm4038_vm0  ;;  %v1128_v50 = vsel %vm5771_vm6, %v1126_v43, %v1102_v32  ;;  %v1147_v56 = vrot.slane %v1111_v16, 7  ;;  %v1149_v14 = vrot.slane %v1112_v3, 6  ;;  %v1151_v25 = vrot.slane %v1113_v47, 5  ;;  %v4276_v3 = vld [vmem:[%s2744_s18 + $0x42] sm:$0x1] }
  0x8e   : > { %vm5772_vm13 = vcmp.ne.f32.partialorder %v3922_v12, %v3922_v12  ;;  %vm5775_vm0 = vcmask 1042434   ;;  %v1141_v36 = vrot.slane %v1108_v41, 2  ;;  %v1153_v32 = vrot.slane %v1114_v1, 4 }
  0x8f   : > { %vm4144_vm9 = vmand %vm5772_vm13, %vm4052_vm14  ;;  %v1131_v7 = vsel %vm5775_vm0, %v1129_v23, %v1128_v50  ;;  %vm5776_vm6 = vcmp.ne.f32.partialorder %v3947_v38, %v3947_v38  ;;  %v753_v16 = vshra.s32 %v3653_v45, 8  ;;  %vm5779_vm14 = vcmask 1043459  }
  0x90   : > { %vm4156_vm8 = vmand %vm5776_vm6, %vm4065_vm15  ;;  %v1134_v42 = vsel %vm5779_vm14, %v1132_v4, %v1131_v7  ;;  %v1144_v55 = vrot.slane %v1109_v40, 1  ;;  %vm5780_vm13 = vcmask 1041409   ;;  %v1155_v1 = vrot.slane %v1115_v44, 3 }
  0x91   : > { %v1148_v41 = vsel %vm5780_vm13, %v1147_v56, %v1110_v62  ;;  %vm5781_vm7 = vcmp.ne.f32.partialorder %v3970_v2, %v3970_v2  ;;  %vm5784_vm6 = vcmask 1044484   ;;  %vm5785_vm2 = vmmov %vm5775_vm0  ;;  %v1157_v40 = vrot.slane %v1116_v39, 2 }
  0x92   : > { %vm4170_vm15 = vmand %vm5781_vm7, %vm4078_vm11  ;;  %v1137_v47 = vsel %vm5784_vm6, %v1135_v57, %v1134_v42  ;;  %v1150_v4 = vsel %vm5785_vm2, %v1149_v14, %v1148_v41  ;;  %vm272_vm14 = vcmp.gt.f32.partialorder %v4044_v58, %v3872_v33  ;;  %vm5786_vm13 = vcmp.ne.f32.partialorder %v3993_v28, %v3993_v28 }
  0x93   : > { %vm4183_vm0 = vmand %vm5786_vm13, %vm4091_vm4  ;;  %vm5789_vm11 = vcmask 1045509   ;;  %vm5790_vm7 = vcmask 1043459   ;;  %v1159_v23 = vrot.slane %v1117_v10, 1  ;;  %vm5791_vm2 = vcmp.ne.f32.partialorder %v4016_v13, %v4016_v13 }
  0x94   : > { %v1140_v44 = vsel %vm5789_vm11, %v1138_v5, %v1137_v47  ;;  %v1152_v43 = vsel %vm5790_vm7, %v1151_v25, %v1150_v4  ;;  %vm4195_vm6 = vmand %vm5791_vm2, %vm4101_vm1  ;;  %v754_v39 = vshra.s32 %v3681_v49, 8  ;;  %vm5794_vm4 = vcmask 1046534   ;;  %v4391_v5 = vld [vmem:[%s2744_s18 + $0x56] sm:$0x1] }
  0x95   : > { %v1143_v57 = vsel %vm5794_vm4, %v1141_v36, %v1140_v44  ;;  %vm5795_vm13 = vcmask 1044484   ;;  %vm5796_vm11 = vcmp.ne.f32.partialorder %v4030_v29, %v4030_v29  ;;  %v755_v48 = vshra.s32 %v3713_v53, 8 }
  0x96   : > { %v1154_v50 = vsel %vm5795_vm13, %v1153_v32, %v1152_v43  ;;  %vm4207_vm7 = vmand %vm5796_vm11, %vm4111_vm12  ;;  %vm5799_vm1 = vcmask 1047559   ;;  %vm5800_vm2 = vcmask 1045509   ;;  %vm5801_vm4 = vcmp.ne.f32.partialorder %v4044_v58, %v4044_v58 }
  0x97   : > { %v1146_v56 = vsel %vm5799_vm1, %v1144_v55, %v1143_v57  ;;  %v1156_v14 = vsel %vm5800_vm2, %v1155_v1, %v1154_v50  ;;  %vm4220_vm13 = vmand %vm5801_vm4, %vm4121_vm10  ;;  %v756_v25 = vshra.s32 %v3743_v6, 8  ;;  %v757_v7 = vshra.s32 %v3766_v27, 8  ;;  %v4318_v50 = vld [vmem:[%s2744_s18 + $0x4a] sm:$0x1] }
  0x98   : > { %vm5804_vm12 = vcmask 1046534   ;;  %vm5805_vm11 = vcmp.gt.f32.partialorder %v3897_v21, %v3685_v22  ;;  %v5806_v37 = vmov 0  ;;  %v758_v32 = vshra.s32 %v3791_v30, 8 }
  0x99   : > { %v1158_v36 = vsel %vm5804_vm12, %v1157_v40, %v1156_v14  ;;  %vm4232_vm1 = vmor %vm5805_vm11, %vm4132_vm5  ;;  %v759_v42 = vshra.s32 %v3816_v60, 8  ;;  %v760_v55 = vshra.s32 %v3839_v11, 8  ;;  %vm5809_vm10 = vcmask 1047559  }
  0x9a   : > { %v5807_v37 = vsel %vm4232_vm1, 4294967295, %v5806_v37  ;;  %v1160_v41 = vsel %vm5809_vm10, %v1159_v23, %v1158_v36  ;;  %vm5810_vm2 = vcmp.gt.f32.partialorder %v3922_v12, %v3717_v63  ;;  %v5811_v61 = vmov 0 }
  0x9b   : > { %5808 = vst [vmem:[#allocation39_spill] sm:$0xff] %v5807_v37  ;;  %vm4245_vm4 = vmor %vm5810_vm2, %vm4144_vm9  ;;  %v761_v1 = vshra.s32 %v3864_v0, 8  ;;  %v762_v47 = vshra.s32 %v3889_v18, 8  ;;  %v763_v4 = vshra.s32 %v3914_v34, 8  ;;  %v4252_v40 = vpack.c.b16 %v1160_v41, %v1146_v56  ;;  %v4404_v41 = vld [vmem:[%s2744_s18 + $0x5a] sm:$0x1] }
  0x9c   : > { %v5812_v61 = vsel %vm4245_vm4, 4294967295, %v5811_v61  ;;  %vm5815_vm5 = vcmp.gt.f32.partialorder %v3947_v38, %v3749_v35  ;;  %v5816_v20 = vmov 0  ;;  %v4267_v44 = vsel %vm4232_vm1, %v3897_v21, %v3685_v22  ;;  %v4295_v22 = vld [vmem:[%s2744_s18 + $0x46] sm:$0x1] }
  0x9d   : > { %5813 = vst [vmem:[#allocation40_spill] sm:$0xff] %v5812_v61  ;;  %5814 = vst [vmem:[#allocation41_spill] sm:$0xff] %v4252_v40  ;;  %v4273_v43 = vsel %vm4245_vm4, %v3922_v12, %v3717_v63  ;;  %v764_v23 = vshra.s32 %v3939_v15, 8  ;;  %vm5819_vm9 = vcmp.gt.f32.partialorder %v3970_v2, %v3772_v51  ;;  %v5820_v57 = vmov 0 }
  0x9e   : > { %vm4259_vm12 = vmor %vm5815_vm5, %vm4156_vm8  ;;  %v765_v21 = vshra.s32 %v3964_v46, 8  ;;  %v766_v12 = vshra.s32 %v3987_v52, 8  ;;  %v767_v26 = vshra.s32 %v4010_v54, 8  ;;  %vm5823_vm11 = vcmask 130048  }
  0x9f   : > { %v5817_v20 = vsel %vm4259_vm12, 4294967295, %v5816_v20  ;;  %vm4284_vm8 = vmor %vm5819_vm9, %vm4170_vm15  ;;  %v4292_v63 = vsel %vm4259_vm12, %v3947_v38, %v3749_v35  ;;  %2490 = vmatprep.mubr.msk.bf16.mxu0 %vm5823_vm11, %v4252_v40  ;;  %vm5824_vm15 = vcmp.gt.f32.partialorder %v3993_v28, %v3797_v24  ;;  %v5825_v35 = vmov 0 }
  0xa0   : > { %5818 = vst [vmem:[#allocation42_spill] sm:$0xff] %v5817_v20  ;;  %v5821_v57 = vsel %vm4284_vm8, 4294967295, %v5820_v57  ;;  %vm4307_vm10 = vmor %vm5824_vm15, %vm4183_vm0  ;;  %v4315_v38 = vsel %vm4284_vm8, %v3970_v2, %v3772_v51  ;;  %v768_v56 = vshra.s32 %v4024_v8, 8  ;;  %v4321_v14 = vand.u32 255, %v753_v16  ;;  %v4341_v2 = vld [vmem:[%s2744_s18 + $0x4e] sm:$0x1] }
  0xa1   : > { %5822 = vst [vmem:[#allocation43_spill] sm:$0xff] %v5821_v57  ;;  %v5826_v35 = vsel %vm4307_vm10, 4294967295, %v5825_v35  ;;  %v4323_v19 = vand.u32 255, %v754_v39  ;;  %vm5828_vm0 = vcmp.gt.f32.partialorder %v4016_v13, %v3822_v17  ;;  %v5829_v36 = vmov 0 }
  0xa2   : > { %5827 = vst [vmem:[#allocation44_spill] sm:$0xff] %v5826_v35  ;;  %vm4330_vm2 = vmor %vm5828_vm0, %vm4195_vm6  ;;  %v4338_v51 = vsel %vm4307_vm10, %v3993_v28, %v3797_v24  ;;  %vm529_vm9 = vcmp.ne.f32.partialorder %v4267_v44, %v4267_v44  ;;  %vm530_vm6 = vcmp.ne.f32.partialorder %v4273_v43, %v4273_v43  ;;  %v4349_v16 = vand.u32 255, %v755_v48 }
  0xa3   : > { %v5830_v36 = vsel %vm4330_vm2, 4294967295, %v5829_v36  ;;  %vm5832_vm11 = vcmp.gt.f32.partialorder %v4030_v29, %v3847_v9  ;;  %v5833_v24 = vmov 0  ;;  %v4364_v28 = vsel %vm4330_vm2, %v4016_v13, %v3822_v17  ;;  %vm4431_vm0 = vmxor %vm530_vm6, %vm5740_vm3 }
  0xa4   : > { %5831 = vst [vmem:[#allocation45_spill] sm:$0xff] %v5830_v36  ;;  %vm4356_vm15 = vmor %vm5832_vm11, %vm4207_vm7  ;;  %vm531_vm5 = vcmp.ne.f32.partialorder %v4292_v63, %v4292_v63  ;;  %v780_v39 = vand.u32 255, %v756_v25  ;;  %v5836_v17 = vmov 0  ;;  %v781_v48 = vand.u32 255, %v757_v7 }
  0xa5   : > { %v5834_v24 = vsel %vm4356_vm15, 4294967295, %v5833_v24  ;;  %vm4380_vm11 = vmor %vm272_vm14, %vm4220_vm13  ;;  %v4388_v13 = vsel %vm4356_vm15, %v4030_v29, %v3847_v9  ;;  %v782_v31 = vand.u32 255, %v758_v32  ;;  %v4421_v29 = vld [vmem:[%s2744_s18 + $0x5e] sm:$0x1]  ;;  %v784_v7 = vand.u32 255, %v760_v55 }
  0xa6   : > { %5835 = vst [vmem:[#allocation46_spill] sm:$0xff] %v5834_v24  ;;  %v5837_v17 = vsel %vm4380_vm11, 4294967295, %v5836_v17  ;;  %v4401_v25 = vsel %vm4380_vm11, %v4044_v58, %v3872_v33  ;;  %vm4416_vm7 = vmxor %vm529_vm9, %vm5740_vm3  ;;  %v783_v33 = vand.u32 255, %v759_v42  ;;  %v785_v32 = vand.u32 255, %v761_v1 }
  0xa7   : > { %5838 = vst [vmem:[#allocation47_spill] sm:$0xff] %v5837_v17  ;;  %v786_v10 = vand.u32 255, %v762_v47  ;;  %vm4441_vm14 = vmxor %vm531_vm5, %vm5740_vm3  ;;  %v787_v62 = vand.u32 255, %v763_v4  ;;  %v788_v17 = vand.u32 255, %v764_v23  ;;  %v789_v24 = vand.u32 255, %v765_v21 }
  0xa8   : > { %v790_v36 = vand.u32 255, %v766_v12  ;;  %vm5845_vm13 = vcmp.ne.f32.partialorder %v4315_v38, %v4315_v38  ;;  %v791_v1 = vand.u32 255, %v767_v26  ;;  %v792_v47 = vand.u32 255, %v768_v56 }
  0xa9   : > { %vm4451_vm9 = vmxor %vm5845_vm13, %vm5740_vm3  ;;  %v801_v35 = vcvt.s32.f32 %v4321_v14  ;;  %v802_v4 = vcvt.s32.f32 %v4323_v19  ;;  %vm5848_vm6 = vcmp.ne.f32.partialorder %v4338_v51, %v4338_v51  ;;  %v803_v21 = vcvt.s32.f32 %v4349_v16 }
  0xaa   : > { %vm4463_vm11 = vmxor %vm5848_vm6, %vm5740_vm3  ;;  %v804_v12 = vcvt.s32.f32 %v780_v39  ;;  %v805_v26 = vcvt.s32.f32 %v781_v48  ;;  %v806_v56 = vcvt.s32.f32 %v782_v31  ;;  %vm5851_vm5 = vcmp.ne.f32.partialorder %v4364_v28, %v4364_v28 }
  0xab   : > { %vm4474_vm15 = vmxor %vm5851_vm5, %vm5740_vm3  ;;  %v807_v19 = vcvt.s32.f32 %v783_v33  ;;  %v808_v57 = vcvt.s32.f32 %v784_v7  ;;  %v809_v20 = vcvt.s32.f32 %v785_v32  ;;  %v810_v61 = vcvt.s32.f32 %v786_v10 }
  0xac   : > { %vm5854_vm2 = vcmp.ne.f32.partialorder %v4388_v13, %v4388_v13  ;;  %v811_v39 = vcvt.s32.f32 %v787_v62  ;;  %v812_v48 = vcvt.s32.f32 %v788_v17  ;;  %v813_v31 = vcvt.s32.f32 %v789_v24 }
  0xad   : > { %vm4484_vm13 = vmxor %vm5854_vm2, %vm5740_vm3  ;;  %v814_v37 = vcvt.s32.f32 %v790_v36  ;;  %vm5857_vm10 = vcmp.ne.f32.partialorder %v4401_v25, %v4401_v25  ;;  %v815_v33 = vcvt.s32.f32 %v791_v1  ;;  %v816_v7 = vcvt.s32.f32 %v792_v47 }
  0xae   : > { %vm4494_vm6 = vmxor %vm5857_vm10, %vm5740_vm3  ;;  %v825_v32 = vpack.c.bf16 %v801_v35, %v801_v35  ;;  %v826_v40 = vpack.c.bf16 %v802_v4, %v802_v4  ;;  %vm5860_vm5 = vcmp.ne.f32.partialorder %v4276_v3, %v4276_v3  ;;  %v827_v36 = vpack.c.bf16 %v803_v21, %v803_v21 }
  0xaf   : > { %vm4505_vm8 = vmand %vm5860_vm5, %vm4416_vm7  ;;  %v828_v24 = vpack.c.bf16 %v804_v12, %v804_v12  ;;  %v829_v17 = vpack.c.bf16 %v805_v26, %v805_v26  ;;  %v830_v49 = vpack.c.bf16 %v806_v56, %v806_v56  ;;  %vm5863_vm2 = vcmp.ne.f32.partialorder %v4295_v22, %v4295_v22 }
  0xb0   : > { %vm4516_vm3 = vmand %vm5863_vm2, %vm4431_vm0  ;;  %v831_v9 = vpack.c.bf16 %v807_v19, %v807_v19  ;;  %v832_v1 = vpack.c.bf16 %v808_v57, %v808_v57  ;;  %v833_v47 = vpack.c.bf16 %v809_v20, %v809_v20  ;;  %v834_v4 = vpack.c.bf16 %v810_v61, %v810_v61 }
  0xb1   : > { %vm5866_vm5 = vcmp.ne.f32.partialorder %v4318_v50, %v4318_v50  ;;  %v835_v21 = vpack.c.bf16 %v811_v39, %v811_v39  ;;  %v4531_v12 = vpack.c.bf16 %v812_v48, %v812_v48  ;;  %v4533_v26 = vpack.c.bf16 %v813_v31, %v813_v31 }
  0xb2   : > { %vm4527_vm10 = vmand %vm5866_vm5, %vm4441_vm14  ;;  %v4535_v57 = vpack.c.bf16 %v814_v37, %v814_v37  ;;  %vm5869_vm2 = vcmp.ne.f32.partialorder %v4341_v2, %v4341_v2  ;;  %v4548_v20 = vpack.c.bf16 %v815_v33, %v815_v33  ;;  %v4550_v42 = vpack.c.bf16 %v816_v7, %v816_v7 }
  0xb3   : > { %vm4544_vm7 = vmand %vm5869_vm2, %vm4451_vm9  ;;  %v1256_v56 = vunpack.c.l.b16 %v825_v32  ;;  %v1257_v19 = vunpack.c.l.b16 %v826_v40  ;;  %vm5872_vm5 = vcmp.ne.f32.partialorder %v4367_v59, %v4367_v59  ;;  %v1258_v55 = vunpack.c.l.b16 %v827_v36 }
  0xb4   : > { %vm4559_vm0 = vmand %vm5872_vm5, %vm4463_vm11  ;;  %v1259_v39 = vunpack.c.l.b16 %v828_v24  ;;  %v1260_v48 = vunpack.c.l.b16 %v829_v17  ;;  %v1261_v31 = vunpack.c.l.b16 %v830_v49  ;;  %vm5875_vm9 = vcmp.ne.f32.partialorder %v4391_v5, %v4391_v5 }
  0xb5   : > { %vm4568_vm2 = vmand %vm5875_vm9, %vm4474_vm15  ;;  %v1262_v23 = vunpack.c.l.b16 %v831_v9  ;;  %v1263_v33 = vunpack.c.l.b16 %v832_v1  ;;  %v1264_v7 = vunpack.c.l.b16 %v833_v47  ;;  %v1265_v32 = vunpack.c.l.b16 %v834_v4 }
  0xb6   : > { %vm5878_vm11 = vcmp.ne.f32.partialorder %v4404_v41, %v4404_v41  ;;  %v1266_v14 = vunpack.c.l.b16 %v835_v21  ;;  %vm5881_vm15 = vcmp.ne.f32.partialorder %v4421_v29, %v4421_v29  ;;  %v1280_v47 = vrot.slane %v1257_v19, 7 }
  0xb7   : > { %vm4577_vm5 = vmand %vm5878_vm11, %vm4484_vm13  ;;  %v1282_v4 = vrot.slane %v1258_v55, 6  ;;  %vm5884_vm13 = vcmp.gt.f32.partialorder %v4276_v3, %v4267_v44  ;;  %v1284_v21 = vrot.slane %v1259_v39, 5  ;;  %v1286_v17 = vrot.slane %v1260_v48, 4 }
  0xb8   : > { %vm4589_vm9 = vmand %vm5881_vm15, %vm4494_vm6  ;;  %v1288_v24 = vrot.slane %v1261_v31, 3  ;;  %v1290_v36 = vrot.slane %v1262_v23, 2  ;;  %vm5887_vm6 = vcmp.gt.f32.partialorder %v4295_v22, %v4273_v43  ;;  %v5888_v19 = vmov 0 }
  0xb9   : > { %vm4600_vm11 = vmor %vm5884_vm13, %vm4505_vm8  ;;  %vm5891_vm8 = vcmask 1041409   ;;  %v1292_v39 = vrot.slane %v1263_v33, 1  ;;  %v1294_v48 = vrot.slane %v1265_v32, 7  ;;  %vm5892_vm13 = vcmp.gt.f32.partialorder %v4318_v50, %v4292_v63 }
  0xba   : > { %vm4609_vm15 = vmor %vm5887_vm6, %vm4516_vm3  ;;  %v4617_v62 = vsel %vm4600_vm11, %v4276_v3, %v4267_v44  ;;  %v1281_v55 = vsel %vm5891_vm8, %v1280_v47, %v1256_v56  ;;  %v5893_v35 = vmov 0  ;;  %vm5896_vm3 = vcmask 1042434  }
  0xbb   : > { %v5889_v19 = vsel %vm4609_vm15, 4294967295, %v5888_v19  ;;  %vm4625_vm14 = vmor %vm5892_vm13, %vm4527_vm10  ;;  %v4633_v31 = vsel %vm4609_vm15, %v4295_v22, %v4273_v43  ;;  %v697_v44 = vand.u32 255, %v4617_v62  ;;  %v1283_v3 = vsel %vm5896_vm3, %v1282_v4, %v1281_v55 }
  0xbc   : > { %5890 = vst [vmem:[#allocation48_spill] sm:$0xff] %v5889_v19  ;;  %v5894_v35 = vsel %vm4625_vm14, 4294967295, %v5893_v35  ;;  %v1296_v56 = vrot.slane %v1266_v14, 6  ;;  %vm5897_vm6 = vcmp.gt.f32.partialorder %v4341_v2, %v4315_v38  ;;  %v5898_v58 = vmov 0 }
  0xbd   : > { %5895 = vst [vmem:[#allocation49_spill] sm:$0xff] %v5894_v35  ;;  %vm4642_vm10 = vmor %vm5897_vm6, %vm4544_vm7  ;;  %v4650_v43 = vsel %vm4625_vm14, %v4318_v50, %v4292_v63  ;;  %v698_v22 = vand.u32 255, %v4633_v31  ;;  %vm5901_vm8 = vcmask 1043459   ;;  %vm5902_vm13 = vcmask 1041409  }
  0xbe   : > { %v5899_v58 = vsel %vm4642_vm10, 4294967295, %v5898_v58  ;;  %v1285_v23 = vsel %vm5901_vm8, %v1284_v21, %v1283_v3  ;;  %v1295_v33 = vsel %vm5902_vm13, %v1294_v48, %v1264_v7  ;;  %vm5903_vm7 = vcmp.gt.f32.partialorder %v4367_v59, %v4338_v51 }
  0xbf   : > { %5900 = vst [vmem:[#allocation50_spill] sm:$0xff] %v5899_v58  ;;  %vm4660_vm3 = vmor %vm5903_vm7, %vm4559_vm0  ;;  %v5904_v61 = vmov 0  ;;  %v4668_v63 = vsel %vm4642_vm10, %v4341_v2, %v4315_v38  ;;  %v699_v50 = vand.u32 255, %v4650_v43  ;;  %v721_v32 = vcvt.s32.f32 %v697_v44 }
  0xc0   : > { %v5905_v61 = vsel %vm4660_vm3, 4294967295, %v5904_v61  ;;  %vm5907_vm6 = vcmask 1044484   ;;  %vm5908_vm8 = vcmp.gt.f32.partialorder %v4391_v5, %v4364_v28  ;;  %v5909_v37 = vmov 0 }
  0xc1   : > { %5906 = vst [vmem:[#allocation51_spill] sm:$0xff] %v5905_v61  ;;  %v1287_v7 = vsel %vm5907_vm6, %v1286_v17, %v1285_v23  ;;  %vm4677_vm0 = vmor %vm5908_vm8, %vm4568_vm2  ;;  %v4685_v38 = vsel %vm4660_vm3, %v4367_v59, %v4338_v51  ;;  %v700_v2 = vand.u32 255, %v4668_v63  ;;  %v722_v14 = vcvt.s32.f32 %v698_v22 }
  0xc2   : > { %v5910_v37 = vsel %vm4677_vm0, 4294967295, %v5909_v37  ;;  %vm5912_vm13 = vcmask 1045509   ;;  %vm5913_vm7 = vcmp.gt.f32.partialorder %v4404_v41, %v4388_v13  ;;  %v5914_v40 = vmov 0 }
  0xc3   : > { %5911 = vst [vmem:[#allocation52_spill] sm:$0xff] %v5910_v37  ;;  %v1289_v17 = vsel %vm5912_vm13, %v1288_v24, %v1287_v7  ;;  %vm4694_vm2 = vmor %vm5913_vm7, %vm4577_vm5  ;;  %v4702_v51 = vsel %vm4677_vm0, %v4391_v5, %v4364_v28  ;;  %v701_v59 = vand.u32 255, %v4685_v38  ;;  %v723_v47 = vcvt.s32.f32 %v699_v50 }
  0xc4   : > { %v5915_v40 = vsel %vm4694_vm2, 4294967295, %v5914_v40  ;;  %v745_v4 = vpack.c.bf16 %v721_v32, %v721_v32  ;;  %vm5917_vm6 = vcmp.gt.f32.partialorder %v4421_v29, %v4401_v25  ;;  %v5918_v49 = vmov 0 }
  0xc5   : > { %5916 = vst [vmem:[#allocation53_spill] sm:$0xff] %v5915_v40  ;;  %vm4710_vm8 = vmor %vm5917_vm6, %vm4589_vm9  ;;  %v4718_v24 = vsel %vm4694_vm2, %v4404_v41, %v4388_v13  ;;  %v702_v28 = vand.u32 255, %v4702_v51  ;;  %v724_v5 = vcvt.s32.f32 %v700_v2  ;;  %v746_v21 = vpack.c.bf16 %v722_v14, %v722_v14 }
  0xc6   : > { %v5919_v49 = vsel %vm4710_vm8, 4294967295, %v5918_v49  ;;  %v4725_v16 = vsel %vm4710_vm8, %v4421_v29, %v4401_v25  ;;  %v703_v55 = vand.u32 255, %v4718_v24  ;;  %v725_v48 = vcvt.s32.f32 %v701_v59 }
  0xc7   : > { %5920 = vst [vmem:[#allocation54_spill] sm:$0xff] %v5919_v49  ;;  %v747_v44 = vpack.c.bf16 %v723_v47, %v723_v47  ;;  %v704_v3 = vand.u32 255, %v4725_v16  ;;  %v726_v22 = vcvt.s32.f32 %v702_v28  ;;  %v748_v23 = vpack.c.bf16 %v724_v5, %v724_v5 }
  0xc8   : > { %v1118_v13 = vunpack.c.l.b16 %v745_v4  ;;  %v727_v41 = vcvt.s32.f32 %v703_v55  ;;  %v749_v50 = vpack.c.bf16 %v725_v48, %v725_v48  ;;  %v1119_v32 = vunpack.c.l.b16 %v746_v21 }
  0xc9   : > { %v1120_v7 = vunpack.c.l.b16 %v747_v44  ;;  %v728_v2 = vcvt.s32.f32 %v704_v3  ;;  %v750_v14 = vpack.c.bf16 %v726_v22, %v726_v22  ;;  %v1121_v1 = vunpack.c.l.b16 %v748_v23 }
  0xca   : > { %vm5921_vm5 = vcmask 1046534   ;;  %v751_v25 = vpack.c.bf16 %v727_v41, %v727_v41  ;;  %v1122_v29 = vunpack.c.l.b16 %v749_v50  ;;  %v1161_v49 = vrot.slane %v1119_v32, 7 }
  0xcb   : > { %v1291_v9 = vsel %vm5921_vm5, %v1290_v36, %v1289_v17  ;;  %v1163_v40 = vrot.slane %v1120_v7, 6  ;;  %v752_v59 = vpack.c.bf16 %v728_v2, %v728_v2  ;;  %v1123_v47 = vunpack.c.l.b16 %v750_v14 }
  0xcc   : > { %v1165_v37 = vrot.slane %v1121_v1, 5  ;;  %vm5922_vm9 = vcmask 1047559   ;;  %v1124_v5 = vunpack.c.l.b16 %v751_v25  ;;  %vm5923_vm13 = vcmask 1041409   ;;  %v6110_v10 = vld [vmem:[#allocation53_spill] sm:$0xff] }
  0xcd   : > { %v1293_v28 = vsel %vm5922_vm9, %v1292_v39, %v1291_v9  ;;  %v1162_v4 = vsel %vm5923_vm13, %v1161_v49, %v1118_v13  ;;  %v1167_v55 = vrot.slane %v1122_v29, 4  ;;  %vm5924_vm7 = vcmask 1042434  }
  0xce   : > { %v1297_v21 = vsel %vm5924_vm7, %v1296_v56, %v1295_v33  ;;  %v1125_v48 = vunpack.c.l.b16 %v752_v59  ;;  %vm5925_vm6 = vmmov %vm5924_vm7  ;;  %v1169_v3 = vrot.slane %v1123_v47, 3  ;;  %v5926_v36 = vunpack.c.l.b16 %v4531_v12 }
  0xcf   : > { %v1164_v44 = vsel %vm5925_vm6, %v1163_v40, %v1162_v4  ;;  %vm5927_vm5 = vcmask 1043459   ;;  %v1171_v23 = vrot.slane %v1124_v5, 2  ;;  %v5928_v1 = vunpack.c.l.b16 %v4533_v26 }
  0xd0   : > { %v1298_v17 = vrot.slane %v5926_v36, 5  ;;  %v1166_v22 = vsel %vm5927_vm5, %v1165_v37, %v1164_v44  ;;  %v5929_v9 = vunpack.c.l.b16 %v4535_v57  ;;  %vm5930_vm9 = vcmask 1044484   ;;  %vm5931_vm13 = vmmov %vm5927_vm5 }
  0xd1   : > { %v1300_v41 = vrot.slane %v5928_v1, 4  ;;  %v1168_v49 = vsel %vm5930_vm9, %v1167_v55, %v1166_v22  ;;  %v1173_v13 = vrot.slane %v1125_v48, 1  ;;  %v5932_v33 = vunpack.c.l.b16 %v4548_v20  ;;  %vm5934_vm6 = vmmov %vm5930_vm9  ;;  %v5944_v1 = vld [vmem:[#allocation5_spill] sm:$0xff] }
  0xd2   : > { %v1302_v39 = vrot.slane %v5929_v9, 3  ;;  %v1299_v56 = vsel %vm5931_vm13, %v1298_v17, %v1297_v21  ;;  %vm5933_vm7 = vcmask 1045509   ;;  %v5935_v37 = vunpack.c.l.b16 %v4550_v42 }
  0xd3   : > { %v1304_v40 = vrot.slane %v5932_v33, 2  ;;  %v1170_v12 = vsel %vm5933_vm7, %v1169_v3, %v1168_v49  ;;  %v1301_v50 = vsel %vm5934_vm6, %v1300_v41, %v1299_v56  ;;  %v769_v26 = vshra.s32 %v4617_v62, 8  ;;  %vm5937_vm8 = vmmov %vm5933_vm7 }
  0xd4   : > { %v1306_v32 = vrot.slane %v5935_v37, 1  ;;  %vm5936_vm5 = vcmask 1046534   ;;  %v1303_v7 = vsel %vm5937_vm8, %v1302_v39, %v1301_v50  ;;  %v770_v2 = vshra.s32 %v4633_v31, 8 }
  0xd5   : > { %v1172_v57 = vsel %vm5936_vm5, %v1171_v23, %v1170_v12  ;;  %v771_v14 = vshra.s32 %v4650_v43, 8  ;;  %vm5938_vm9 = vcmask 1047559   ;;  %vm5939_vm13 = vmmov %vm5936_vm5  ;;  %v772_v29 = vshra.s32 %v4668_v63, 8 }
  0xd6   : > { %v1174_v20 = vsel %vm5938_vm9, %v1173_v13, %v1172_v57  ;;  %v1305_v25 = vsel %vm5939_vm13, %v1304_v40, %v1303_v7  ;;  %v773_v59 = vshra.s32 %v4685_v38, 8  ;;  %vm5940_vm7 = vmmov %vm5938_vm9  ;;  %v774_v5 = vshra.s32 %v4702_v51, 8 }
  0xd7   : > { %v4758_v42 = vpack.c.b16 %v1174_v20, %v1174_v20  ;;  %v1307_v47 = vsel %vm5940_vm7, %v1306_v32, %v1305_v25  ;;  %v775_v4 = vshra.s32 %v4718_v24, 8  ;;  %v776_v21 = vshra.s32 %v4725_v16, 8 }
  0xd8   : > { %v4763_v55 = vpack.c.b16 %v1307_v47, %v1293_v28  ;;  %v793_v48 = vand.u32 255, %v769_v26  ;;  %v794_v44 = vand.u32 255, %v770_v2  ;;  %vm5942_vm8 = vcmask 130048  }
  0xd9   : > { %2491 = vmatmul.mubr.msk.bf16.vlgmr.msra.gmra.mrb[0].mxu0 %vm5942_vm8, %v4758_v42  ;;  %v795_v3 = vand.u32 255, %v771_v14  ;;  %v796_v36 = vand.u32 255, %v772_v29  ;;  %v797_v17 = vand.u32 255, %v773_v59  ;;  %v798_v22 = vand.u32 255, %v774_v5  ;;  %vm5946_vm5 = vmmov %vm5942_vm8 }
  0xda   : > { %5941 = vst [vmem:[#allocation55_spill] sm:$0xff] %v4763_v55  ;;  %v5943_v23 = vmov 1.0|1.0   ;;  %vm5945_vm6 = vnez %v5944_v1  ;;  %2496 = vmatprep.mubr.msk.bf16.mxu1 %vm5946_vm5, %v4763_v55  ;;  %v799_v28 = vand.u32 255, %v775_v4  ;;  %v800_v41 = vand.u32 255, %v776_v21 }
  0xdb   : > { %2501 = vmatpush3.bf16.msk.msra.mxu0 %vm5945_vm6, %v5943_v23  ;;  %v817_v9 = vcvt.s32.f32 %v793_v48  ;;  %v818_v39 = vcvt.s32.f32 %v794_v44  ;;  %v819_v49 = vcvt.s32.f32 %v795_v3  ;;  %v820_v13 = vcvt.s32.f32 %v796_v36 }
  0xdc   : > { %v821_v56 = vcvt.s32.f32 %v797_v17  ;;  %v822_v33 = vcvt.s32.f32 %v798_v22  ;;  %2512 = vmatprep.subr.msk.bf16.mxu0 %vm5945_vm6, %v5943_v23  ;;  %v823_v40 = vcvt.s32.f32 %v799_v28  ;;  %v824_v12 = vcvt.s32.f32 %v800_v41 }
  0xdd   : > { %v841_v50 = vpack.c.bf16 %v817_v9, %v817_v9  ;;  %v842_v37 = vpack.c.bf16 %v818_v39, %v818_v39  ;;  %v843_v32 = vpack.c.bf16 %v819_v49, %v819_v49  ;;  %v844_v26 = vpack.c.bf16 %v820_v13, %v820_v13 }
  0xde   : > { %v845_v57 = vpack.c.bf16 %v821_v56, %v821_v56  ;;  %v846_v7 = vpack.c.bf16 %v822_v33, %v822_v33  ;;  %v847_v2 = vpack.c.bf16 %v823_v40, %v823_v40  ;;  %v848_v14 = vpack.c.bf16 %v824_v12, %v824_v12 }
  0xdf   : > { %v1272_v20 = vunpack.c.l.b16 %v841_v50  ;;  %v1273_v25 = vunpack.c.l.b16 %v842_v37  ;;  %v1274_v29 = vunpack.c.l.b16 %v843_v32  ;;  %v1275_v59 = vunpack.c.l.b16 %v844_v26 }
  0xe0   : > { %v1276_v47 = vunpack.c.l.b16 %v845_v57  ;;  %v1277_v5 = vunpack.c.l.b16 %v846_v7  ;;  %v1278_v4 = vunpack.c.l.b16 %v847_v2  ;;  %v1279_v21 = vunpack.c.l.b16 %v848_v14 }
  0xe1   : > { %v1308_v48 = vrot.slane %v1273_v25, 7  ;;  %v851_v44 = vshra.s32 %v3713_v53, 16  ;;  %v1310_v3 = vrot.slane %v1274_v29, 6  ;;  %v1312_v36 = vrot.slane %v1275_v59, 5 }
  0xe2   : > { %v1314_v17 = vrot.slane %v1276_v47, 4  ;;  %v1316_v22 = vrot.slane %v1277_v5, 3  ;;  %vm5947_vm9 = vcmask 1041409   ;;  %v1318_v41 = vrot.slane %v1278_v4, 2  ;;  %v5954_v5 = vld [vmem:[#allocation25_spill] sm:$0xff] }
  0xe3   : > { %v1309_v28 = vsel %vm5947_vm9, %v1308_v48, %v1272_v20  ;;  %v1320_v9 = vrot.slane %v1279_v21, 1  ;;  %v852_v39 = vshra.s32 %v3743_v6, 16  ;;  %vm5948_vm13 = vcmask 1042434  }
  0xe4   : > { %v1311_v49 = vsel %vm5948_vm13, %v1310_v3, %v1309_v28  ;;  %v853_v13 = vshra.s32 %v3766_v27, 16  ;;  %v854_v56 = vshra.s32 %v3791_v30, 16  ;;  %v855_v33 = vshra.s32 %v3816_v60, 16 }
  0xe5   : > { %vm5949_vm7 = vcmask 1043459   ;;  %v856_v12 = vshra.s32 %v3839_v11, 16  ;;  %v857_v50 = vshra.s32 %v3864_v0, 16  ;;  %v858_v37 = vshra.s32 %v3889_v18, 16 }
  0xe6   : > { %v1313_v40 = vsel %vm5949_vm7, %v1312_v36, %v1311_v49  ;;  %vm5950_vm8 = vcmask 1044484   ;;  %v859_v26 = vshra.s32 %v3914_v34, 16  ;;  %v860_v57 = vshra.s32 %v3939_v15, 16 }
  0xe7   : > { %v1315_v32 = vsel %vm5950_vm8, %v1314_v17, %v1313_v40  ;;  %v861_v7 = vshra.s32 %v3964_v46, 16  ;;  %vm5951_vm5 = vcmask 1045509   ;;  %v862_v14 = vshra.s32 %v3987_v52, 16 }
  0xe8   : > { %v1317_v2 = vsel %vm5951_vm5, %v1316_v22, %v1315_v32  ;;  %v863_v20 = vshra.s32 %v4010_v54, 16  ;;  %v864_v25 = vshra.s32 %v4024_v8, 16  ;;  %vm5952_vm9 = vcmask 1046534  }
  0xe9   : > { %v1319_v29 = vsel %vm5952_vm9, %v1318_v41, %v1317_v2  ;;  %v5953_v59 = vshra.s32 %v3653_v45, 16  ;;  %v5955_v4 = vshra.s32 %v5954_v5, 16  ;;  %v875_v48 = vand.u32 255, %v851_v44 }
  0xea   : > { %vm5956_vm13 = vcmask 1047559   ;;  %v876_v36 = vand.u32 255, %v852_v39  ;;  %v877_v17 = vand.u32 255, %v853_v13  ;;  %v878_v22 = vand.u32 255, %v854_v56 }
  0xeb   : > { %v873_v47 = vand.u32 255, %v5953_v59  ;;  %v874_v21 = vand.u32 255, %v5955_v4  ;;  %v1321_v3 = vsel %vm5956_vm13, %v1320_v9, %v1319_v29  ;;  %v879_v49 = vand.u32 255, %v855_v33 }
  0xec   : > { %v4801_v28 = vpack.c.b16 %v1321_v3, %v1321_v3  ;;  %v880_v40 = vand.u32 255, %v856_v12  ;;  %v881_v32 = vand.u32 255, %v857_v50  ;;  %v882_v55 = vand.u32 255, %v858_v37 }
  0xed   : > { %v883_v61 = vand.u32 255, %v859_v26  ;;  %v884_v41 = vand.u32 255, %v860_v57  ;;  %v885_v2 = vand.u32 255, %v861_v7  ;;  %vm5958_vm7 = vcmask 130048  }
  0xee   : > { %5957 = vst [vmem:[#allocation5_spill] sm:$0xff] %v4801_v28  ;;  %2497 = vmatmul.mubr.msk.bf16.vlgmr.msra.gmra.mrb[0].mxu1 %vm5958_vm7, %v4801_v28  ;;  %v886_v59 = vand.u32 255, %v862_v14  ;;  %v887_v4 = vand.u32 255, %v863_v20  ;;  %v888_v44 = vand.u32 255, %v864_v25  ;;  %v897_v58 = vcvt.s32.f32 %v873_v47 }
  0xef   : > { %2507 = vmatpush3.bf16.msk.msra.mxu1 %vm5945_vm6, %v5943_v23  ;;  %v898_v9 = vcvt.s32.f32 %v874_v21  ;;  %v899_v39 = vcvt.s32.f32 %v875_v48  ;;  %v900_v13 = vcvt.s32.f32 %v876_v36  ;;  %v901_v56 = vcvt.s32.f32 %v877_v17 }
  0xf0   : > { %v902_v33 = vcvt.s32.f32 %v878_v22  ;;  %v903_v12 = vcvt.s32.f32 %v879_v49  ;;  %v904_v50 = vcvt.s32.f32 %v880_v40  ;;  %v905_v37 = vcvt.s32.f32 %v881_v32 }
  0xf1   : > { %v906_v26 = vcvt.s32.f32 %v882_v55  ;;  %v907_v57 = vcvt.s32.f32 %v883_v61  ;;  %v908_v7 = vcvt.s32.f32 %v884_v41  ;;  %v909_v29 = vcvt.s32.f32 %v885_v2 }
  0xf2   : > { %v910_v14 = vcvt.s32.f32 %v886_v59  ;;  %v911_v20 = vcvt.s32.f32 %v887_v4  ;;  %v912_v25 = vcvt.s32.f32 %v888_v44  ;;  %v921_v47 = vpack.c.bf16 %v897_v58, %v897_v58 }
  0xf3   : > { %v922_v3 = vpack.c.bf16 %v898_v9, %v898_v9  ;;  %v923_v28 = vpack.c.bf16 %v899_v39, %v899_v39  ;;  %v924_v35 = vpack.c.bf16 %v900_v13, %v900_v13  ;;  %v925_v19 = vpack.c.bf16 %v901_v56, %v901_v56 }
  0xf4   : > { %v926_v21 = vpack.c.bf16 %v902_v33, %v902_v33  ;;  %v927_v48 = vpack.c.bf16 %v903_v12, %v903_v12  ;;  %v928_v36 = vpack.c.bf16 %v904_v50, %v904_v50  ;;  %v929_v17 = vpack.c.bf16 %v905_v37, %v905_v37 }
  0xf5   : > { %v930_v22 = vpack.c.bf16 %v906_v26, %v906_v26  ;;  %v931_v49 = vpack.c.bf16 %v907_v57, %v907_v57  ;;  %v932_v40 = vpack.c.bf16 %v908_v7, %v908_v7  ;;  %v933_v32 = vpack.c.bf16 %v909_v29, %v909_v29 }
  0xf6   : > { %v934_v55 = vpack.c.bf16 %v910_v14, %v910_v14  ;;  %v935_v61 = vpack.c.bf16 %v911_v20, %v911_v20  ;;  %v936_v41 = vpack.c.bf16 %v912_v25, %v912_v25  ;;  %v1402_v2 = vunpack.c.l.b16 %v921_v47 }
  0xf7   : > { %v1403_v59 = vunpack.c.l.b16 %v922_v3  ;;  %v1404_v4 = vunpack.c.l.b16 %v923_v28  ;;  %v1405_v44 = vunpack.c.l.b16 %v924_v35  ;;  %v1406_v58 = vunpack.c.l.b16 %v925_v19 }
  0xf8   : > { %v1407_v9 = vunpack.c.l.b16 %v926_v21  ;;  %v1408_v39 = vunpack.c.l.b16 %v927_v48  ;;  %v1409_v13 = vunpack.c.l.b16 %v928_v36  ;;  %v1410_v56 = vunpack.c.l.b16 %v929_v17 }
  0xf9   : > { %v1411_v33 = vunpack.c.l.b16 %v930_v22  ;;  %v1412_v12 = vunpack.c.l.b16 %v931_v49  ;;  %v1413_v50 = vunpack.c.l.b16 %v932_v40  ;;  %v1414_v37 = vunpack.c.l.b16 %v933_v32 }
  0xfa   : > { %v1415_v26 = vunpack.c.l.b16 %v934_v55  ;;  %v1416_v57 = vunpack.c.l.b16 %v935_v61  ;;  %v1417_v7 = vunpack.c.l.b16 %v936_v41  ;;  %v1426_v29 = vrot.slane %v1403_v59, 7 }
  0xfb   : > { %v1428_v14 = vrot.slane %v1404_v4, 6  ;;  %v1430_v20 = vrot.slane %v1405_v44, 5  ;;  %v1432_v25 = vrot.slane %v1406_v58, 4  ;;  %v1434_v47 = vrot.slane %v1407_v9, 3 }
  0xfc   : > { %vm5959_vm8 = vcmask 1041409   ;;  %v1436_v35 = vrot.slane %v1408_v39, 2  ;;  %v1438_v19 = vrot.slane %v1409_v13, 1  ;;  %v1440_v3 = vrot.slane %v1411_v33, 7 }
  0xfd   : > { %v1427_v28 = vsel %vm5959_vm8, %v1426_v29, %v1402_v2  ;;  %vm5960_vm5 = vcmask 1042434   ;;  %v1442_v48 = vrot.slane %v1412_v12, 6  ;;  %v1444_v36 = vrot.slane %v1413_v50, 5  ;;  %vm5962_vm13 = vmmov %vm5959_vm8 }
  0xfe   : > { %v1429_v21 = vsel %vm5960_vm5, %v1428_v14, %v1427_v28  ;;  %v1446_v17 = vrot.slane %v1414_v37, 4  ;;  %vm5961_vm9 = vcmask 1043459   ;;  %v1441_v49 = vsel %vm5962_vm13, %v1440_v3, %v1410_v56  ;;  %vm5964_vm2 = vmmov %vm5960_vm5 }
  0xff   : > { %v1431_v22 = vsel %vm5961_vm9, %v1430_v20, %v1429_v21  ;;  %v1448_v40 = vrot.slane %v1415_v26, 3  ;;  %v1450_v32 = vrot.slane %v1416_v57, 2  ;;  %vm5963_vm7 = vcmask 1044484   ;;  %vm5966_vm0 = vmmov %vm5961_vm9 }
 0x100   : > { %v1433_v55 = vsel %vm5963_vm7, %v1432_v25, %v1431_v22  ;;  %v1443_v61 = vsel %vm5964_vm2, %v1442_v48, %v1441_v49  ;;  %v1452_v41 = vrot.slane %v1417_v7, 1  ;;  %v865_v2 = vshra.s32 %v4617_v62, 16  ;;  %vm5968_vm9 = vmmov %vm5963_vm7 }
 0x101   : > { %vm5965_vm8 = vcmask 1045509   ;;  %v1445_v4 = vsel %vm5966_vm0, %v1444_v36, %v1443_v61  ;;  %v866_v44 = vshra.s32 %v4633_v31, 16  ;;  %v867_v58 = vshra.s32 %v4650_v43, 16 }
 0x102   : > { %v1435_v59 = vsel %vm5965_vm8, %v1434_v47, %v1433_v55  ;;  %vm5967_vm5 = vcmask 1046534   ;;  %v1447_v39 = vsel %vm5968_vm9, %v1446_v17, %v1445_v4  ;;  %v868_v13 = vshra.s32 %v4668_v63, 16  ;;  %vm5970_vm13 = vmmov %vm5965_vm8 }
 0x103   : > { %v1437_v9 = vsel %vm5967_vm5, %v1436_v35, %v1435_v59  ;;  %v869_v56 = vshra.s32 %v4685_v38, 16  ;;  %vm5969_vm2 = vcmask 1047559   ;;  %v1449_v12 = vsel %vm5970_vm13, %v1448_v40, %v1447_v39  ;;  %vm5971_vm0 = vmmov %vm5967_vm5 }
 0x104   : > { %v1439_v33 = vsel %vm5969_vm2, %v1438_v19, %v1437_v9  ;;  %v870_v50 = vshra.s32 %v4702_v51, 16  ;;  %v871_v37 = vshra.s32 %v4718_v24, 16  ;;  %v1451_v26 = vsel %vm5971_vm0, %v1450_v32, %v1449_v12  ;;  %vm5972_vm7 = vmmov %vm5969_vm2 }
 0x105   : > { %v872_v57 = vshra.s32 %v4725_v16, 16  ;;  %v889_v7 = vand.u32 255, %v865_v2  ;;  %v890_v29 = vand.u32 255, %v866_v44  ;;  %v1453_v14 = vsel %vm5972_vm7, %v1452_v41, %v1451_v26 }
 0x106   : > { %v891_v20 = vand.u32 255, %v867_v58  ;;  %v892_v25 = vand.u32 255, %v868_v13  ;;  %v893_v47 = vand.u32 255, %v869_v56  ;;  %v4830_v28 = vpack.c.b16 %v1453_v14, %v1439_v33 }
 0x107   : > { %v894_v35 = vand.u32 255, %v870_v50  ;;  %v895_v19 = vand.u32 255, %v871_v37  ;;  %v896_v3 = vand.u32 255, %v872_v57  ;;  %v913_v21 = vcvt.s32.f32 %v889_v7 }
 0x108   : > { %v914_v48 = vcvt.s32.f32 %v890_v29  ;;  %v915_v36 = vcvt.s32.f32 %v891_v20  ;;  %v916_v17 = vcvt.s32.f32 %v892_v25  ;;  %vm5973_vm8 = vcmask 130048  }
 0x109   : > { %2502 = vmatprep.mubr.msk.bf16.mxu0 %vm5973_vm8, %v4830_v28  ;;  %v917_v22 = vcvt.s32.f32 %v893_v47  ;;  %v918_v49 = vcvt.s32.f32 %v894_v35  ;;  %v919_v40 = vcvt.s32.f32 %v895_v19  ;;  %v920_v32 = vcvt.s32.f32 %v896_v3 }
 0x10a   : > { %v937_v55 = vpack.c.bf16 %v913_v21, %v913_v21  ;;  %v938_v61 = vpack.c.bf16 %v914_v48, %v914_v48  ;;  %v939_v41 = vpack.c.bf16 %v915_v36, %v915_v36  ;;  %v940_v2 = vpack.c.bf16 %v916_v17, %v916_v17 }
 0x10b   : > { %v941_v59 = vpack.c.bf16 %v917_v22, %v917_v22  ;;  %v942_v4 = vpack.c.bf16 %v918_v49, %v918_v49  ;;  %v943_v44 = vpack.c.bf16 %v919_v40, %v919_v40  ;;  %v944_v58 = vpack.c.bf16 %v920_v32, %v920_v32 }
 0x10c   : > { %v1418_v9 = vunpack.c.l.b16 %v937_v55  ;;  %v1419_v39 = vunpack.c.l.b16 %v938_v61  ;;  %v1420_v13 = vunpack.c.l.b16 %v939_v41  ;;  %v1421_v56 = vunpack.c.l.b16 %v940_v2 }
 0x10d   : > { %v1422_v33 = vunpack.c.l.b16 %v941_v59  ;;  %v1423_v12 = vunpack.c.l.b16 %v942_v4  ;;  %v1424_v50 = vunpack.c.l.b16 %v943_v44  ;;  %v1425_v37 = vunpack.c.l.b16 %v944_v58 }
 0x10e   : > { %v1454_v26 = vrot.slane %v1419_v39, 7  ;;  %v1456_v57 = vrot.slane %v1420_v13, 6  ;;  %v1458_v7 = vrot.slane %v1421_v56, 5  ;;  %v2385_v29 = vshrl.u32 %v3653_v45, 24 }
 0x10f   : > { %v1460_v14 = vrot.slane %v1422_v33, 4  ;;  %v1462_v20 = vrot.slane %v1423_v12, 3  ;;  %v1464_v25 = vrot.slane %v1424_v50, 2  ;;  %v1466_v47 = vrot.slane %v1425_v37, 1 }
 0x110   : > { %vm5974_vm5 = vcmask 1041409   ;;  %v2386_v19 = vshrl.u32 %v5954_v5, 24  ;;  %v2387_v3 = vshrl.u32 %v3713_v53, 24  ;;  %v2388_v21 = vshrl.u32 %v3743_v6, 24 }
 0x111   : > { %v1455_v35 = vsel %vm5974_vm5, %v1454_v26, %v1418_v9  ;;  %vm5975_vm9 = vcmask 1042434   ;;  %v2389_v36 = vshrl.u32 %v3766_v27, 24  ;;  %v2390_v17 = vshrl.u32 %v3791_v30, 24 }
 0x112   : > { %v1457_v48 = vsel %vm5975_vm9, %v1456_v57, %v1455_v35  ;;  %v2391_v45 = vshrl.u32 %v3816_v60, 24  ;;  %vm5976_vm2 = vcmask 1043459   ;;  %v2392_v49 = vshrl.u32 %v3839_v11, 24 }
 0x113   : > { %v1459_v22 = vsel %vm5976_vm2, %v1458_v7, %v1457_v48  ;;  %v2393_v40 = vshrl.u32 %v3864_v0, 24  ;;  %v2394_v5 = vshrl.u32 %v3889_v18, 24  ;;  %vm5977_vm13 = vcmask 1044484  }
 0x114   : > { %v1461_v53 = vsel %vm5977_vm13, %v1460_v14, %v1459_v22  ;;  %v2395_v6 = vshrl.u32 %v3914_v34, 24  ;;  %v2396_v32 = vshrl.u32 %v3939_v15, 24  ;;  %v2397_v27 = vshrl.u32 %v3964_v46, 24 }
 0x115   : > { %vm5978_vm0 = vcmask 1045509   ;;  %v2398_v60 = vshrl.u32 %v3987_v52, 24  ;;  %v2399_v55 = vshrl.u32 %v4010_v54, 24  ;;  %v2400_v11 = vshrl.u32 %v4024_v8, 24 }
 0x116   : > { %v1463_v30 = vsel %vm5978_vm0, %v1462_v20, %v1461_v53  ;;  %vm5979_vm7 = vcmask 1046534   ;;  %v993_v61 = vcvt.s32.f32 %v2385_v29  ;;  %v994_v18 = vcvt.s32.f32 %v2386_v19 }
 0x117   : > { %v1465_v0 = vsel %vm5979_vm7, %v1464_v25, %v1463_v30  ;;  %v995_v41 = vcvt.s32.f32 %v2387_v3  ;;  %vm5980_vm8 = vcmask 1047559   ;;  %v996_v34 = vcvt.s32.f32 %v2388_v21  ;;  %vm5985_vm7 = vmmov %vm5975_vm9 }
 0x118   : > { %v1467_v2 = vsel %vm5980_vm8, %v1466_v47, %v1465_v0  ;;  %v997_v59 = vcvt.s32.f32 %v2389_v36  ;;  %v998_v15 = vcvt.s32.f32 %v2390_v17  ;;  %v999_v46 = vcvt.s32.f32 %v2391_v45 }
 0x119   : > { %v4857_v4 = vpack.c.b16 %v1467_v2, %v1467_v2  ;;  %v1000_v44 = vcvt.s32.f32 %v2392_v49  ;;  %v1001_v58 = vcvt.s32.f32 %v2393_v40  ;;  %v1002_v52 = vcvt.s32.f32 %v2394_v5 }
 0x11a   : > { %v1003_v9 = vcvt.s32.f32 %v2395_v6  ;;  %v1004_v54 = vcvt.s32.f32 %v2396_v32  ;;  %v1005_v39 = vcvt.s32.f32 %v2397_v27  ;;  %vm5981_vm5 = vcmask 130048  }
 0x11b   : > { %2503 = vmatmul.mubr.msk.bf16.vlgmr.msra.gmra.mrb[4].mxu0 %vm5981_vm5, %v4857_v4  ;;  %v1006_v8 = vcvt.s32.f32 %v2398_v60  ;;  %v1007_v13 = vcvt.s32.f32 %v2399_v55  ;;  %v1008_v56 = vcvt.s32.f32 %v2400_v11  ;;  %v1017_v33 = vpack.c.bf16 %v993_v61, %v993_v61  ;;  %vm5987_vm5 = vmmov %vm5976_vm2 }
 0x11c   : > { %2513 = vmatpush3.bf16.msk.msra.mxu0 %vm5945_vm6, %v5943_v23  ;;  %v1018_v12 = vpack.c.bf16 %v994_v18, %v994_v18  ;;  %v1019_v50 = vpack.c.bf16 %v995_v41, %v995_v41  ;;  %v1020_v37 = vpack.c.bf16 %v996_v34, %v996_v34  ;;  %v1021_v26 = vpack.c.bf16 %v997_v59, %v997_v59 }
 0x11d   : > { %v1022_v57 = vpack.c.bf16 %v998_v15, %v998_v15  ;;  %v1023_v7 = vpack.c.bf16 %v999_v46, %v999_v46  ;;  %v1024_v29 = vpack.c.bf16 %v1000_v44, %v1000_v44  ;;  %v1025_v14 = vpack.c.bf16 %v1001_v58, %v1001_v58 }
 0x11e   : > { %v1026_v20 = vpack.c.bf16 %v1002_v52, %v1002_v52  ;;  %v1027_v25 = vpack.c.bf16 %v1003_v9, %v1003_v9  ;;  %v1028_v47 = vpack.c.bf16 %v1004_v54, %v1004_v54  ;;  %v1029_v35 = vpack.c.bf16 %v1005_v39, %v1005_v39 }
 0x11f   : > { %v1030_v19 = vpack.c.bf16 %v1006_v8, %v1006_v8  ;;  %v1031_v3 = vpack.c.bf16 %v1007_v13, %v1007_v13  ;;  %v1032_v21 = vpack.c.bf16 %v1008_v56, %v1008_v56  ;;  %v1548_v48 = vunpack.c.l.b16 %v1017_v33 }
 0x120   : > { %v1549_v36 = vunpack.c.l.b16 %v1018_v12  ;;  %v1550_v17 = vunpack.c.l.b16 %v1019_v50  ;;  %v1551_v1 = vunpack.c.l.b16 %v1020_v37  ;;  %v1552_v45 = vunpack.c.l.b16 %v1021_v26 }
 0x121   : > { %v1553_v22 = vunpack.c.l.b16 %v1022_v57  ;;  %v1554_v49 = vunpack.c.l.b16 %v1023_v7  ;;  %v1555_v40 = vunpack.c.l.b16 %v1024_v29  ;;  %v1556_v5 = vunpack.c.l.b16 %v1025_v14 }
 0x122   : > { %v1557_v53 = vunpack.c.l.b16 %v1026_v20  ;;  %v1558_v6 = vunpack.c.l.b16 %v1027_v25  ;;  %v1559_v32 = vunpack.c.l.b16 %v1028_v47  ;;  %v1560_v27 = vunpack.c.l.b16 %v1029_v35 }
 0x123   : > { %v1561_v30 = vunpack.c.l.b16 %v1030_v19  ;;  %v1562_v60 = vunpack.c.l.b16 %v1031_v3  ;;  %v1563_v55 = vunpack.c.l.b16 %v1032_v21  ;;  %v1572_v11 = vrot.slane %v1549_v36, 7 }
 0x124   : > { %v1574_v0 = vrot.slane %v1550_v17, 6  ;;  %v1576_v61 = vrot.slane %v1551_v1, 5  ;;  %v1578_v18 = vrot.slane %v1552_v45, 4  ;;  %v1580_v41 = vrot.slane %v1553_v22, 3 }
 0x125   : > { %vm5982_vm6 = vcmask 1041409   ;;  %v1582_v34 = vrot.slane %v1554_v49, 2  ;;  %v1584_v59 = vrot.slane %v1555_v40, 1  ;;  %v1586_v15 = vrot.slane %v1557_v53, 7 }
 0x126   : > { %v1573_v2 = vsel %vm5982_vm6, %v1572_v11, %v1548_v48  ;;  %v1588_v44 = vrot.slane %v1558_v6, 6  ;;  %v1590_v58 = vrot.slane %v1559_v32, 5  ;;  %v1592_v52 = vrot.slane %v1560_v27, 4  ;;  %vm5983_vm13 = vmmov %vm5982_vm6 }
 0x127   : > { %v1575_v46 = vsel %vm5975_vm9, %v1574_v0, %v1573_v2  ;;  %v1587_v54 = vsel %vm5983_vm13, %v1586_v15, %v1556_v5  ;;  %v1594_v39 = vrot.slane %v1561_v30, 3  ;;  %v1596_v8 = vrot.slane %v1562_v60, 2  ;;  %v5995_v2 = vld [vmem:[#allocation4_spill] sm:$0xff] }
 0x128   : > { %v1577_v9 = vsel %vm5976_vm2, %v1576_v61, %v1575_v46  ;;  %vm5984_vm0 = vcmask 1044484   ;;  %v1589_v56 = vsel %vm5985_vm7, %v1588_v44, %v1587_v54  ;;  %v1598_v33 = vrot.slane %v1563_v55, 1 }
 0x129   : > { %v1579_v13 = vsel %vm5984_vm0, %v1578_v18, %v1577_v9  ;;  %v2401_v12 = vshrl.u32 %v4617_v62, 24  ;;  %vm5986_vm8 = vcmask 1045509   ;;  %v1591_v37 = vsel %vm5987_vm5, %v1590_v58, %v1589_v56  ;;  %vm5989_vm9 = vmmov %vm5984_vm0  ;;  %v5998_v9 = vld [vmem:[#allocation3_spill] sm:$0xff] }
 0x12a   : > { %v1581_v50 = vsel %vm5986_vm8, %v1580_v41, %v1579_v13  ;;  %v2402_v26 = vshrl.u32 %v4633_v31, 24  ;;  %v2403_v57 = vshrl.u32 %v4650_v43, 24  ;;  %vm5988_vm6 = vcmask 1046534   ;;  %vm5991_vm13 = vmmov %vm5986_vm8  ;;  %v6002_v13 = vld [vmem:[#allocation6_spill] sm:$0xff] }
 0x12b   : > { %v1583_v7 = vsel %vm5988_vm6, %v1582_v34, %v1581_v50  ;;  %v1593_v29 = vsel %vm5989_vm9, %v1592_v52, %v1591_v37  ;;  %v2404_v14 = vshrl.u32 %v4668_v63, 24  ;;  %v2405_v20 = vshrl.u32 %v4685_v38, 24  ;;  %vm5992_vm0 = vmmov %vm5988_vm6  ;;  %v5997_v52 = vld [vmem:[#allocation2_spill] sm:$0xff]  ;;  %v6006_v50 = vld [vmem:[#allocation8_spill] sm:$0xff] }
 0x12c   : > { %vm5990_vm2 = vcmask 1047559   ;;  %v1595_v62 = vsel %vm5991_vm13, %v1594_v39, %v1593_v29  ;;  %v2406_v47 = vshrl.u32 %v4702_v51, 24  ;;  %v2407_v35 = vshrl.u32 %v4718_v24, 24  ;;  %v6011_v29 = vld [vmem:[#allocation10_spill] sm:$0xff] }
 0x12d   : > { %v1585_v25 = vsel %vm5990_vm2, %v1584_v59, %v1583_v7  ;;  %v1597_v31 = vsel %vm5992_vm0, %v1596_v8, %v1595_v62  ;;  %v2408_v43 = vshrl.u32 %v4725_v16, 24  ;;  %v1009_v19 = vcvt.s32.f32 %v2401_v12  ;;  %vm5993_vm7 = vmmov %vm5990_vm2 }
 0x12e   : > { %v1010_v3 = vcvt.s32.f32 %v2402_v26  ;;  %v1599_v21 = vsel %vm5993_vm7, %v1598_v33, %v1597_v31  ;;  %v1011_v48 = vcvt.s32.f32 %v2403_v57  ;;  %v1012_v63 = vcvt.s32.f32 %v2404_v14  ;;  %v6004_v33 = vld [vmem:[#allocation7_spill] sm:$0xff]  ;;  %v6009_v57 = vld [vmem:[#allocation9_spill] sm:$0xff] }
 0x12f   : > { %v1013_v36 = vcvt.s32.f32 %v2405_v20  ;;  %v4886_v38 = vpack.c.b16 %v1599_v21, %v1585_v25  ;;  %v1014_v17 = vcvt.s32.f32 %v2406_v47  ;;  %v1015_v1 = vcvt.s32.f32 %v2407_v35  ;;  %v6013_v20 = vld [vmem:[#allocation11_spill] sm:$0xff]  ;;  %v6016_v47 = vld [vmem:[#allocation12_spill] sm:$0xff]  ;;  %v6018_v31 = vld [vmem:[#allocation13_spill] sm:$0xff] }
 0x130   : > { %v1016_v45 = vcvt.s32.f32 %v2408_v43  ;;  %v1033_v22 = vpack.c.bf16 %v1009_v19, %v1009_v19  ;;  %v1034_v51 = vpack.c.bf16 %v1010_v3, %v1010_v3  ;;  %v1035_v49 = vpack.c.bf16 %v1011_v48, %v1011_v48  ;;  %v6020_v19 = vld [vmem:[#allocation14_spill] sm:$0xff]  ;;  %v6023_v48 = vld [vmem:[#allocation15_spill] sm:$0xff] }
 0x131   : > { %v1036_v24 = vpack.c.bf16 %v1012_v63, %v1012_v63  ;;  %vm5994_vm8 = vcmask 130048   ;;  %v1037_v16 = vpack.c.bf16 %v1013_v36, %v1013_v36  ;;  %v1038_v40 = vpack.c.bf16 %v1014_v17, %v1014_v17  ;;  %v6025_v36 = vld [vmem:[#allocation16_spill] sm:$0xff] }
 0x132   : > { %2508 = vmatprep.mubr.msk.bf16.mxu1 %vm5994_vm8, %v4886_v38  ;;  %v1039_v5 = vpack.c.bf16 %v1015_v1, %v1015_v1  ;;  %v1040_v53 = vpack.c.bf16 %v1016_v45, %v1016_v45  ;;  %v1564_v6 = vunpack.c.l.b16 %v1033_v22  ;;  %v1565_v32 = vunpack.c.l.b16 %v1034_v51  ;;  %v6027_v1 = vld [vmem:[#allocation17_spill] sm:$0xff]  ;;  %v6030_v51 = vld [vmem:[#allocation18_spill] sm:$0xff] }
 0x133   : > { %v1566_v27 = vunpack.c.l.b16 %v1035_v49  ;;  %v1567_v30 = vunpack.c.l.b16 %v1036_v24  ;;  %v1568_v60 = vunpack.c.l.b16 %v1037_v16  ;;  %v1569_v55 = vunpack.c.l.b16 %v1038_v40  ;;  %v6032_v24 = vld [vmem:[#allocation19_spill] sm:$0xff]  ;;  %v6034_v40 = vld [vmem:[#allocation20_spill] sm:$0xff] }
 0x134   : > { %v1570_v11 = vunpack.c.l.b16 %v1039_v5  ;;  %v1571_v0 = vunpack.c.l.b16 %v1040_v53  ;;  %v1600_v61 = vrot.slane %v1565_v32, 7  ;;  %v1849_v34 = vadd.s32 1, %v5995_v2 }
 0x135   : > { %v1602_v18 = vrot.slane %v1566_v27, 6  ;;  %v1604_v41 = vrot.slane %v1567_v30, 5  ;;  %v1606_v59 = vrot.slane %v1568_v60, 4  ;;  %v1608_v15 = vrot.slane %v1569_v55, 3  ;;  %v6039_v27 = vld [vmem:[#allocation22_spill] sm:$0xff]  ;;  %v6041_v60 = vld [vmem:[#allocation23_spill] sm:$0xff] }
 0x136   : > { %v1610_v46 = vrot.slane %v1570_v11, 2  ;;  %v1612_v44 = vrot.slane %v1571_v0, 1  ;;  %vm5996_vm5 = vcmask 1041409   ;;  %vm1850_vm6 = vcmp.eq.s32.totalorder %v5997_v52, %v1849_v34  ;;  %v6043_v0 = vld [vmem:[#allocation24_spill] sm:$0xff] }
 0x137   : > { %v1601_v58 = vsel %vm5996_vm5, %v1600_v61, %v1564_v6  ;;  %vm1851_vm9 = vcmp.eq.s32.totalorder %v5998_v9, %v1849_v34  ;;  %vm5999_vm2 = vcmask 1042434   ;;  %v2667_v8 = vmov 0.0   ;;  %v6037_v6 = vld [vmem:[#allocation21_spill] sm:$0xff]  ;;  %v6047_v34 = vld [vmem:[#allocation27_spill] sm:$0xff] }
 0x138   : > { %v1603_v54 = vsel %vm5999_vm2, %v1602_v18, %v1601_v58  ;;  %vm4895_vm13 = vmpackc.low %vm1851_vm9, %vm1850_vm6  ;;  %vm6003_vm0 = vnez %v6002_v13  ;;  %vm6005_vm7 = vnez %v6004_v33  ;;  %vm6007_vm8 = vnez %v6006_v50  ;;  %v6045_v18 = vld [vmem:[#allocation26_spill] sm:$0xff] }
 0x139   : > { %v393_v56 = vsel %vm6003_vm0, 1.0, %v2667_v8  ;;  %v394_v12 = vsel %vm6005_vm7, 1.0, %v2667_v8  ;;  %v395_v37 = vsel %vm6007_vm8, 1.0, %v2667_v8  ;;  %vm6008_vm5 = vcmask 1043459   ;;  %2518 = vmatprep.subr.msk.bf16.mxu1 %vm4895_vm13, %v5943_v23  ;;  %2524 = vmatprep.subr.msk.bf16.mxu0 %vm4895_vm13, %v5943_v23 }
 0x13a   : > { %v1605_v26 = vsel %vm6008_vm5, %v1604_v41, %v1603_v54  ;;  %vm6010_vm6 = vnez %v6009_v57  ;;  %vm6012_vm9 = vnez %v6011_v29  ;;  %vm6014_vm2 = vnez %v6013_v20  ;;  %v6053_v54 = vld [vmem:[#allocation30_spill] sm:$0xff]  ;;  %v6064_v29 = vld [vmem:[#allocation35_spill] sm:$0xff]  ;;  %v6066_v20 = vld [vmem:[#allocation36_spill] sm:$0xff] }
 0x13b   : > { %v396_v7 = vsel %vm6010_vm6, 1.0, %v2667_v8  ;;  %v397_v14 = vsel %vm6012_vm9, 1.0, %v2667_v8  ;;  %v398_v25 = vsel %vm6014_vm2, 1.0, %v2667_v8  ;;  %vm6015_vm0 = vcmask 1044484   ;;  %v6062_v57 = vld [vmem:[#allocation34_spill] sm:$0xff] }
 0x13c   : > { %v1607_v62 = vsel %vm6015_vm0, %v1606_v59, %v1605_v26  ;;  %vm6017_vm7 = vnez %v6016_v47  ;;  %vm6019_vm8 = vnez %v6018_v31  ;;  %vm6021_vm5 = vnez %v6020_v19  ;;  %v6072_v19 = vld [vmem:[#allocation41_spill] sm:$0xff] }
 0x13d   : > { %v399_v35 = vsel %vm6017_vm7, 1.0, %v2667_v8  ;;  %v400_v43 = vsel %vm6019_vm8, 1.0, %v2667_v8  ;;  %v401_v3 = vsel %vm6021_vm5, 1.0, %v2667_v8  ;;  %vm6022_vm6 = vcmask 1045509  }
 0x13e   : > { %v1609_v21 = vsel %vm6022_vm6, %v1608_v15, %v1607_v62  ;;  %vm6024_vm9 = vnez %v6023_v48  ;;  %vm6026_vm2 = vnez %v6025_v36  ;;  %vm6028_vm0 = vnez %v6027_v1  ;;  %v6049_v15 = vld [vmem:[#allocation28_spill] sm:$0xff]  ;;  %v6068_v62 = vld [vmem:[#allocation37_spill] sm:$0xff] }
 0x13f   : > { %v402_v63 = vsel %vm6024_vm9, 1.0, %v2667_v8  ;;  %v403_v17 = vsel %vm6026_vm2, 1.0, %v2667_v8  ;;  %v404_v45 = vsel %vm6028_vm0, 1.0, %v2667_v8  ;;  %vm6029_vm7 = vcmask 1046534  }
 0x140   : > { %v1611_v22 = vsel %vm6029_vm7, %v1610_v46, %v1609_v21  ;;  %vm6031_vm8 = vnez %v6030_v51  ;;  %vm6033_vm5 = vnez %v6032_v24  ;;  %vm6035_vm6 = vnez %v6034_v40 }
 0x141   : > { %v405_v49 = vsel %vm6031_vm8, 1.0, %v2667_v8  ;;  %v406_v16 = vsel %vm6033_vm5, 1.0, %v2667_v8  ;;  %v407_v5 = vsel %vm6035_vm6, 1.0, %v2667_v8  ;;  %vm6036_vm9 = vcmask 1047559  }
 0x142   : > { %v1613_v53 = vsel %vm6036_vm9, %v1612_v44, %v1611_v22  ;;  %vm6038_vm2 = vnez %v6037_v6  ;;  %vm6040_vm0 = vnez %v6039_v27  ;;  %vm6042_vm7 = vnez %v6041_v60  ;;  %v6051_v44 = vld [vmem:[#allocation29_spill] sm:$0xff] }
 0x143   : > { %v408_v32 = vsel %vm6038_vm2, 1.0, %v2667_v8  ;;  %v609_v30 = vsel %vm6040_vm0, 2.0, %v393_v56  ;;  %v610_v55 = vsel %vm6042_vm7, 2.0, %v394_v12  ;;  %v4962_v11 = vpack.c.b16 %v1613_v53, %v1613_v53  ;;  %v6055_v56 = vld [vmem:[#allocation31_spill] sm:$0xff]  ;;  %v6058_v12 = vld [vmem:[#allocation32_spill] sm:$0xff] }
 0x144   : > { %vm6044_vm8 = vnez %v6043_v0  ;;  %vm6046_vm5 = vnez %v6045_v18  ;;  %vm6048_vm6 = vnez %v6047_v34  ;;  %vm6050_vm9 = vnez %v6049_v15 }
 0x145   : > { %v611_v61 = vsel %vm6044_vm8, 2.0, %v395_v37  ;;  %v612_v41 = vsel %vm6046_vm5, 2.0, %v396_v7  ;;  %v613_v59 = vsel %vm6048_vm6, 2.0, %v397_v14  ;;  %v614_v46 = vsel %vm6050_vm9, 2.0, %v398_v25  ;;  %v6060_v37 = vld [vmem:[#allocation33_spill] sm:$0xff] }
 0x146   : > { %vm6052_vm2 = vnez %v6051_v44  ;;  %vm6054_vm0 = vnez %v6053_v54  ;;  %vm6056_vm7 = vnez %v6055_v56  ;;  %vm6057_vm8 = vcmask 130048  }
 0x147   : > { %v615_v58 = vsel %vm6052_vm2, 2.0, %v399_v35  ;;  %v616_v13 = vsel %vm6054_vm0, 2.0, %v400_v43  ;;  %v617_v33 = vsel %vm6056_vm7, 2.0, %v401_v3  ;;  %2509 = vmatmul.mubr.msk.bf16.vlgmr.msra.gmra.mrb[4].mxu1 %vm6057_vm8, %v4962_v11  ;;  %vm6059_vm5 = vnez %v6058_v12  ;;  %v6070_v35 = vld [vmem:[#allocation38_spill] sm:$0xff] }
 0x148   : > { %v618_v50 = vsel %vm6059_vm5, 2.0, %v402_v63  ;;  %vm6061_vm6 = vnez %v6060_v37  ;;  %vm6063_vm9 = vnez %v6062_v57  ;;  %vm6065_vm2 = vnez %v6064_v29  ;;  %2519 = vmatpush3.bf16.msk.msra.mxu1 %vm4895_vm13, %v5943_v23 }
 0x149   : > { %v619_v26 = vsel %vm6061_vm6, 2.0, %v403_v17  ;;  %v620_v7 = vsel %vm6063_vm9, 2.0, %v404_v45  ;;  %v621_v14 = vsel %vm6065_vm2, 2.0, %v405_v49  ;;  %vm6067_vm0 = vnez %v6066_v20  ;;  %2530 = vmatprep.subr.msk.bf16.mxu1 %vm4895_vm13, %v5943_v23 }
 0x14a   : > { %v622_v25 = vsel %vm6067_vm0, 2.0, %v406_v16  ;;  %vm6069_vm7 = vnez %v6068_v62  ;;  %vm6071_vm8 = vnez %v6070_v35  ;;  %v1041_v43 = vpack.c.bf16 %v609_v30, %v609_v30 }
 0x14b   : > { %v623_v47 = vsel %vm6069_vm7, 2.0, %v407_v5  ;;  %v624_v31 = vsel %vm6071_vm8, 2.0, %v408_v32  ;;  %vm6073_vm5 = vcmask 130048   ;;  %v1042_v3 = vpack.c.bf16 %v610_v55, %v610_v55 }
 0x14c   : > { %2520 = vmatprep.mubr.msk.bf16.mxu1 %vm6073_vm5, %v6072_v19  ;;  %v1043_v21 = vpack.c.bf16 %v611_v61, %v611_v61  ;;  %v1044_v48 = vpack.c.bf16 %v612_v41, %v612_v41  ;;  %v1045_v63 = vpack.c.bf16 %v613_v59, %v613_v59  ;;  %v1046_v36 = vpack.c.bf16 %v614_v46, %v614_v46  ;;  %vm6074_vm6 = vmmov %vm6073_vm5 }
 0x14d   : > { %v1047_v17 = vpack.c.bf16 %v615_v58, %v615_v58  ;;  %v1048_v1 = vpack.c.bf16 %v616_v13, %v616_v13  ;;  %v1049_v45 = vpack.c.bf16 %v617_v33, %v617_v33  ;;  %v1050_v22 = vpack.c.bf16 %v618_v50, %v618_v50  ;;  %vm6075_vm9 = vmmov %vm6073_vm5 }
 0x14e   : > { %v1051_v51 = vpack.c.bf16 %v619_v26, %v619_v26  ;;  %v1052_v49 = vpack.c.bf16 %v620_v7, %v620_v7  ;;  %v1053_v24 = vpack.c.bf16 %v621_v14, %v621_v14  ;;  %v1054_v16 = vpack.c.bf16 %v622_v25, %v622_v25 }
 0x14f   : > { %v1055_v40 = vpack.c.bf16 %v623_v47, %v623_v47  ;;  %v1056_v5 = vpack.c.bf16 %v624_v31, %v624_v31  ;;  %v1694_v53 = vunpack.c.l.b16 %v1041_v43  ;;  %v1695_v6 = vunpack.c.l.b16 %v1042_v3  ;;  %2521 = vmatmul.mubr.msk.bf16.vlgmr.msra.gmra.mrb[8].mxu1 %vm6074_vm6, %v4758_v42 }
 0x150   : > { %v1696_v32 = vunpack.c.l.b16 %v1043_v21  ;;  %v1697_v27 = vunpack.c.l.b16 %v1044_v48  ;;  %v1698_v30 = vunpack.c.l.b16 %v1045_v63  ;;  %v1699_v60 = vunpack.c.l.b16 %v1046_v36  ;;  %2531 = vmatpush3.bf16.msk.msra.mxu1 %vm4895_vm13, %v5943_v23  ;;  %2532 = vmatprep.mubr.msk.bf16.mxu1 %vm6075_vm9, %v4830_v28 }
 0x151   : > { %v1700_v55 = vunpack.c.l.b16 %v1047_v17  ;;  %v1701_v0 = vunpack.c.l.b16 %v1048_v1  ;;  %v1702_v61 = vunpack.c.l.b16 %v1049_v45  ;;  %v1703_v18 = vunpack.c.l.b16 %v1050_v22  ;;  %2542 = vmatprep.subr.msk.bf16.mxu1 %vm4895_vm13, %v5943_v23  ;;  %v6089_v45 = vld [vmem:[#allocation43_spill] sm:$0xff] }
 0x152   : > { %v1704_v41 = vunpack.c.l.b16 %v1051_v51  ;;  %v1705_v34 = vunpack.c.l.b16 %v1052_v49  ;;  %v1706_v59 = vunpack.c.l.b16 %v1053_v24  ;;  %v1707_v15 = vunpack.c.l.b16 %v1054_v16  ;;  %v6091_v51 = vld [vmem:[#allocation44_spill] sm:$0xff] }
 0x153   : > { %v1708_v46 = vunpack.c.l.b16 %v1055_v40  ;;  %v1709_v44 = vunpack.c.l.b16 %v1056_v5  ;;  %v1718_v58 = vrot.slane %v1695_v6, 7  ;;  %v1720_v54 = vrot.slane %v1696_v32, 6  ;;  %v6096_v40 = vld [vmem:[#allocation45_spill] sm:$0xff] }
 0x154   : > { %v1722_v13 = vrot.slane %v1697_v27, 5  ;;  %v1724_v56 = vrot.slane %v1698_v30, 4  ;;  %v1726_v33 = vrot.slane %v1699_v60, 3  ;;  %vm6076_vm2 = vcmask 1041409  }
 0x155   : > { %v1719_v42 = vsel %vm6076_vm2, %v1718_v58, %v1694_v53  ;;  %v1728_v12 = vrot.slane %v1700_v55, 2  ;;  %v1730_v50 = vrot.slane %v1701_v0, 1  ;;  %v1732_v37 = vrot.slane %v1703_v18, 7  ;;  %vm6079_vm8 = vmmov %vm6076_vm2  ;;  %v6098_v53 = vld [vmem:[#allocation46_spill] sm:$0xff] }
 0x156   : > { %vm6077_vm0 = vcmask 1042434   ;;  %v1734_v57 = vrot.slane %v1704_v41, 6  ;;  %v1736_v7 = vrot.slane %v1705_v34, 5  ;;  %v1738_v29 = vrot.slane %v1706_v59, 4 }
 0x157   : > { %v1721_v26 = vsel %vm6077_vm0, %v1720_v54, %v1719_v42  ;;  %vm6078_vm7 = vcmask 1043459   ;;  %v1733_v14 = vsel %vm6079_vm8, %v1732_v37, %v1702_v61  ;;  %v1740_v20 = vrot.slane %v1707_v15, 3  ;;  %vm6081_vm6 = vmmov %vm6077_vm0 }
 0x158   : > { %v1723_v28 = vsel %vm6078_vm7, %v1722_v13, %v1721_v26  ;;  %v1742_v25 = vrot.slane %v1708_v46, 2  ;;  %vm6080_vm5 = vcmask 1044484   ;;  %v1735_v47 = vsel %vm6081_vm6, %v1734_v57, %v1733_v14  ;;  %vm6084_vm2 = vmmov %vm6078_vm7  ;;  %v6112_v13 = vld [vmem:[#allocation54_spill] sm:$0xff] }
 0x159   : > { %v1725_v62 = vsel %vm6080_vm5, %v1724_v56, %v1723_v28  ;;  %v1744_v35 = vrot.slane %v1709_v44, 1  ;;  %v409_v43 = vsel %vm4232_vm1, 1.0, %v2667_v8  ;;  %vm6083_vm9 = vcmask 1045509   ;;  %vm6088_vm7 = vmmov %vm6080_vm5  ;;  %v6108_v44 = vld [vmem:[#allocation52_spill] sm:$0xff] }
 0x15a   : > { %v1727_v19 = vsel %vm6083_vm9, %v1726_v33, %v1725_v62  ;;  %v1737_v3 = vsel %vm6084_vm2, %v1736_v7, %v1735_v47  ;;  %v410_v48 = vsel %vm4245_vm4, 1.0, %v2667_v8  ;;  %v411_v36 = vsel %vm4259_vm12, 1.0, %v2667_v8  ;;  %vm6095_vm6 = vmmov %vm6083_vm9 }
 0x15b   : > { %vm6087_vm0 = vcmask 1046534   ;;  %v1739_v1 = vsel %vm6088_vm7, %v1738_v29, %v1737_v3  ;;  %vm6090_vm8 = vnez %v6089_v45  ;;  %vm6092_vm1 = vnez %v6091_v51 }
 0x15c   : > { %v1729_v17 = vsel %vm6087_vm0, %v1728_v12, %v1727_v19  ;;  %v412_v22 = vsel %vm6090_vm8, 1.0, %v2667_v8  ;;  %v413_v49 = vsel %vm6092_vm1, 1.0, %v2667_v8  ;;  %vm6093_vm5 = vcmask 130048   ;;  %vm6100_vm2 = vmmov %vm6087_vm0 }
 0x15d   : > { %2533 = vmatmul.mubr.msk.bf16.vlgmr.msra.gmra.mrb[12].mxu1 %vm6093_vm5, %v4857_v4  ;;  %vm6094_vm4 = vcmask 1047559   ;;  %v1741_v16 = vsel %vm6095_vm6, %v1740_v20, %v1739_v1  ;;  %vm6097_vm12 = vnez %v6096_v40  ;;  %vm6099_vm9 = vnez %v6098_v53  ;;  %v6101_v4 = vld [vmem:[#allocation47_spill] sm:$0xff]  ;;  %v6126_v40 = vld [vmem:[#allocation5_spill] sm:$0xff] }
 0x15e   : > { %v1731_v24 = vsel %vm6094_vm4, %v1730_v50, %v1729_v17  ;;  %v414_v5 = vsel %vm6097_vm12, 1.0, %v2667_v8  ;;  %v415_v6 = vsel %vm6099_vm9, 1.0, %v2667_v8  ;;  %2543 = vmatpush3.bf16.msk.msra.mxu1 %vm4895_vm13, %v5943_v23  ;;  %v1743_v32 = vsel %vm6100_vm2, %v1742_v25, %v1741_v16  ;;  %vm6104_vm7 = vmmov %vm6094_vm4  ;;  %v6124_v16 = vld [vmem:[#allocation55_spill] sm:$0xff] }
 0x15f   : > { %vm6102_vm0 = vnez %v6101_v4  ;;  %v625_v30 = vsel %vm4600_vm11, 2.0, %v409_v43  ;;  %v626_v55 = vsel %vm4609_vm15, 2.0, %v410_v48  ;;  %v1745_v0 = vsel %vm6104_vm7, %v1744_v35, %v1743_v32  ;;  %vm6120_vm12 = vmmov %vm6100_vm2 }
 0x160   : > { %v416_v27 = vsel %vm6102_vm0, 1.0, %v2667_v8  ;;  %v627_v18 = vsel %vm4625_vm14, 2.0, %v411_v36  ;;  %v628_v34 = vsel %vm4642_vm10, 2.0, %v412_v22  ;;  %v629_v15 = vsel %vm4660_vm3, 2.0, %v413_v49  ;;  %vm6114_vm14 = vmmov %vm6093_vm5 }
 0x161   : > { %v1760_v46 = vpack.c.b16 %v1745_v0, %v1731_v24  ;;  %vm6109_vm8 = vnez %v6108_v44  ;;  %vm6111_vm11 = vnez %v6110_v10  ;;  %vm6113_vm15 = vnez %v6112_v13  ;;  %vm6115_vm10 = vmmov %vm6093_vm5 }
 0x162   : > { %v630_v58 = vsel %vm6109_vm8, 2.0, %v414_v5  ;;  %v631_v54 = vsel %vm6111_vm11, 2.0, %v415_v6  ;;  %v632_v56 = vsel %vm6113_vm15, 2.0, %v416_v27  ;;  %v1057_v33 = vpack.c.bf16 %v625_v30, %v625_v30  ;;  %vm6121_vm9 = vmmov %vm6104_vm7 }
 0x163   : > { %v1058_v42 = vpack.c.bf16 %v626_v55, %v626_v55  ;;  %v1059_v12 = vpack.c.bf16 %v627_v18, %v627_v18  ;;  %v1060_v50 = vpack.c.bf16 %v628_v34, %v628_v34  ;;  %2514 = vmatprep.mubr.msk.bf16.mxu0 %vm6114_vm14, %v1760_v46  ;;  %v1061_v37 = vpack.c.bf16 %v629_v15, %v629_v15  ;;  %vm6122_vm2 = vmmov %vm6115_vm10 }
 0x164   : > { %v1062_v26 = vpack.c.bf16 %v630_v58, %v630_v58  ;;  %v1063_v57 = vpack.c.bf16 %v631_v54, %v631_v54  ;;  %v1064_v7 = vpack.c.bf16 %v632_v56, %v632_v56  ;;  %v1710_v29 = vunpack.c.l.b16 %v1057_v33  ;;  %2544 = vmatprep.mubr.msk.bf16.mxu1 %vm6115_vm10, %v1760_v46  ;;  %vm6123_vm0 = vmmov %vm6122_vm2 }
 0x165   : > { %v1711_v28 = vunpack.c.l.b16 %v1058_v42  ;;  %v1712_v14 = vunpack.c.l.b16 %v1059_v12  ;;  %v1713_v20 = vunpack.c.l.b16 %v1060_v50  ;;  %v1714_v25 = vunpack.c.l.b16 %v1061_v37  ;;  %vm6125_vm7 = vmmov %vm6123_vm0 }
 0x166   : > { %v1715_v62 = vunpack.c.l.b16 %v1062_v26  ;;  %v1716_v47 = vunpack.c.l.b16 %v1063_v57  ;;  %v1717_v35 = vunpack.c.l.b16 %v1064_v7  ;;  %vm6116_vm3 = vcmask 1041409   ;;  %vm6127_vm8 = vmmov %vm6123_vm0 }
 0x167   : > { %v1746_v31 = vrot.slane %v1711_v28, 7  ;;  %v1748_v43 = vrot.slane %v1712_v14, 6  ;;  %v1750_v19 = vrot.slane %v1713_v20, 5  ;;  %v1752_v3 = vrot.slane %v1714_v25, 4  ;;  %vm6128_vm11 = vmmov %vm6123_vm0 }
 0x168   : > { %v1754_v48 = vrot.slane %v1715_v62, 3  ;;  %vm6117_vm1 = vcmask 1042434   ;;  %v1756_v36 = vrot.slane %v1716_v47, 2  ;;  %vm6118_vm5 = vcmask 1043459   ;;  %vm6129_vm15 = vmmov %vm6123_vm0 }
 0x169   : > { %v1747_v21 = vsel %vm6116_vm3, %v1746_v31, %v1710_v29  ;;  %v1758_v1 = vrot.slane %v1717_v35, 1  ;;  %vm6119_vm4 = vcmask 1044484  }
 0x16a   : > { %v1749_v63 = vsel %vm6117_vm1, %v1748_v43, %v1747_v21 }
 0x16b   : > { %v1751_v17 = vsel %vm6118_vm5, %v1750_v19, %v1749_v63 }
 0x16c   : > { %v1753_v45 = vsel %vm6119_vm4, %v1752_v3, %v1751_v17 }
 0x16d   : > { %v1755_v22 = vsel %vm6095_vm6, %v1754_v48, %v1753_v45 }
 0x16e   : > { %v1757_v51 = vsel %vm6120_vm12, %v1756_v36, %v1755_v22 }
 0x16f   : > { %v1759_v49 = vsel %vm6121_vm9, %v1758_v1, %v1757_v51  ;;  %v2170_v51 = vadd.s32 16, %v5997_v52 }
 0x170   : > { %v1761_v24 = vpack.c.b16 %v1759_v49, %v1759_v49 }
 0x172   : > { %2515 = vmatmul.mubr.msk.bf16.vlgmr.msra.gmra.mrb[8].mxu0 %vm6122_vm2, %v1761_v24  ;;  %2545 = vmatmul.mubr.msk.bf16.vlgmr.msra.gmra.mrb[16].mxu1 %vm6123_vm0, %v1761_v24 }
 0x173   : > { %2525 = vmatpush3.bf16.msk.msra.mxu0 %vm4895_vm13, %v5943_v23  ;;  %2526 = vmatprep.mubr.msk.bf16.mxu0 %vm6125_vm7, %v6124_v16 }
 0x174   : > { %2536 = vmatprep.subr.msk.bf16.mxu0 %vm4895_vm13, %v5943_v23 }
 0x17a   : > { %2527 = vmatmul.mubr.msk.bf16.vlgmr.msra.gmra.mrb[12].mxu0 %vm6127_vm8, %v6126_v40  ;;  %v2171_v40 = vstv %s2737_s13 }
 0x17b   : > { %2537 = vmatpush3.bf16.msk.msra.mxu0 %vm4895_vm13, %v5943_v23  ;;  %2538 = vmatprep.mubr.msk.bf16.mxu0 %vm6128_vm11, %v4886_v38 }
 0x182   : > { %2539 = vmatmul.mubr.msk.bf16.vlgmr.msra.gmra.mrb[16].mxu0 %vm6129_vm15, %v4962_v11 }
 0x1ac   : > { %v2492_v5 = vpop.f32.mrb[0].mxu0 }
 0x1ad   : > { %v1218_v53 = vpop.f32.mrb[1].mxu0  ;;  %v2552_v27 = vtrunc.f32 %v2492_v5 }
 0x1ae   : > { %v2493_v6 = vpop.f32.mrb[2].mxu0  ;;  %v2548_v55 = vtrunc.f32 %v1218_v53 }
 0x1af   : > { %v1221_v32 = vpop.f32.mrb[3].mxu0  ;;  %v2553_v38 = vcvt.f32.s32 %v2552_v27 }
 0x1b0   : > { %v2550_v23 = vtrunc.f32 %v1221_v32  ;;  %v2549_v15 = vcvt.f32.s32 %v2548_v55 }
 0x1b2   : > { %v2551_v58 = vcvt.f32.s32 %v2550_v23 }
 0x1c1   : > { %v2498_v4 = vpop.f32.mrb[0].mxu1 }
 0x1c2   : > { %v2558_v30 = vtrunc.f32 %v2498_v4  ;;  %v1364_v60 = vpop.f32.mrb[1].mxu1  ;;  %v2174_v4 = vadd.s32 %v2171_v40, %v2170_v51 }
 0x1c3   : > { %v2554_v0 = vtrunc.f32 %v1364_v60  ;;  %v2499_v61 = vpop.f32.mrb[2].mxu1 }
 0x1c4   : > { %v2559_v18 = vcvt.f32.s32 %v2558_v30  ;;  %v1367_v39 = vpop.f32.mrb[3].mxu1  ;;  %v2198_v27 = vsub.s32 0, %v2174_v4  ;;  %v5114_v30 = vadd.s32 %v2171_v40, %v5997_v52  ;;  %vm2197_vm3 = vcmp.lt.s32.totalorder %v2174_v4, 0 }
 0x1c5   : > { %v2555_v41 = vcvt.f32.s32 %v2554_v0  ;;  %v2556_v34 = vtrunc.f32 %v1367_v39  ;;  %v5117_v0 = vadd.s32 %v2171_v40, %v5998_v9 }
 0x1c6   : > { %v1824_v59 = vshll.u32 %v2559_v18, 8  ;;  %v2455_v39 = vmin.u32 %v2198_v27, %v2174_v4  ;;  %v2176_v23 = vsub.s32 0, %v5114_v30  ;;  %vm2175_vm1 = vcmp.lt.s32.totalorder %v5114_v30, 0 }
 0x1c7   : > { %v1822_v11 = vshll.u32 %v2555_v41, 8  ;;  %v2557_v46 = vcvt.f32.s32 %v2556_v34  ;;  %v2187_v41 = vsub.s32 0, %v5117_v0  ;;  %vm2186_vm5 = vcmp.lt.s32.totalorder %v5117_v0, 0 }
 0x1c8   : > { %v1827_v44 = vor.u32 %v2553_v38, %v1824_v59  ;;  %v5121_v34 = vmul.u32.u64.low 2863311531, %v2455_v39  ;;  %v5122_v38 = vmul.u32.u64.high 2863311531, %v2455_v39, %v5121_v34  ;;  %v2453_v59 = vmin.u32 %v2176_v23, %v5114_v30 }
 0x1c9   : > { %v1825_v10 = vor.u32 %v2549_v15, %v1822_v11  ;;  %v1823_v54 = vshll.u32 %v2557_v46, 8  ;;  %v2454_v52 = vmin.u32 %v2187_v41, %v5117_v0 }
 0x1ca   : > { %v5126_v15 = vmul.u32.u64.low 2863311531, %v2453_v59  ;;  %v5127_v11 = vmul.u32.u64.high 2863311531, %v2453_v59, %v5126_v15 }
 0x1cb   : > { %v1826_v13 = vor.u32 %v2551_v58, %v1823_v54  ;;  %v5129_v46 = vmul.u32.u64.low 2863311531, %v2454_v52  ;;  %v5130_v9 = vmul.u32.u64.high 2863311531, %v2454_v52, %v5129_v46 }
 0x1ee   : > { %v2504_v56 = vpop.f32.mrb[4].mxu0 }
 0x1ef   : > { %v2564_v33 = vtrunc.f32 %v2504_v56  ;;  %v1510_v42 = vpop.f32.mrb[5].mxu0 }
 0x1f0   : > { %v2560_v12 = vtrunc.f32 %v1510_v42  ;;  %v2505_v50 = vpop.f32.mrb[6].mxu0  ;;  %v2192_v42 = vshrl.u32 %v5130_v9, 2 }
 0x1f1   : > { %v2565_v37 = vcvt.f32.s32 %v2564_v33  ;;  %v1513_v26 = vpop.f32.mrb[7].mxu0 }
 0x1f2   : > { %v2561_v57 = vcvt.f32.s32 %v2560_v12  ;;  %v2562_v7 = vtrunc.f32 %v1513_v26 }
 0x1f3   : > { %v1833_v29 = vshll.u32 %v2565_v37, 16 }
 0x1f4   : > { %v1831_v28 = vshll.u32 %v2561_v57, 16  ;;  %v2563_v14 = vcvt.f32.s32 %v2562_v7 }
 0x1f5   : > { %v1836_v20 = vor.u32 %v1833_v29, %v1827_v44  ;;  %v2203_v44 = vshrl.u32 %v5122_v38, 2 }
 0x1f6   : > { %v1834_v25 = vor.u32 %v1831_v28, %v1825_v10  ;;  %v1832_v62 = vshll.u32 %v2563_v14, 16  ;;  %v2181_v10 = vshrl.u32 %v5127_v11, 2  ;;  %v2193_v28 = vmul.u32 6, %v2192_v42 }
 0x1f7   : > { %v2204_v58 = vmul.u32 6, %v2203_v44 }
 0x1f8   : > { %v1835_v47 = vor.u32 %v1832_v62, %v1826_v13  ;;  %v2182_v57 = vmul.u32 6, %v2181_v10 }
 0x1f9   : > { %v2205_v26 = vsub.s32 %v2455_v39, %v2204_v58 }
 0x21a   : > { %v2510_v35 = vpop.f32.mrb[4].mxu1 }
 0x21b   : > { %v2570_v31 = vtrunc.f32 %v2510_v35  ;;  %v1656_v43 = vpop.f32.mrb[5].mxu1 }
 0x21c   : > { %v2566_v19 = vtrunc.f32 %v1656_v43  ;;  %v2511_v3 = vpop.f32.mrb[6].mxu1 }
 0x21d   : > { %v2571_v21 = vcvt.f32.s32 %v2570_v31  ;;  %v1659_v48 = vpop.f32.mrb[7].mxu1  ;;  %v2194_v3 = vsub.s32 %v2454_v52, %v2193_v28 }
 0x21e   : > { %v2567_v63 = vcvt.f32.s32 %v2566_v19  ;;  %v2568_v36 = vtrunc.f32 %v1659_v48 }
 0x21f   : > { %v1842_v17 = vshll.u32 %v2571_v21, 24 }
 0x220   : > { %v1840_v1 = vshll.u32 %v2567_v63, 24  ;;  %v2569_v45 = vcvt.f32.s32 %v2568_v36 }
 0x221   : > { %v5099_v22 = vor.u32 %v1842_v17, %v1836_v20  ;;  %v2206_v20 = vsub.s32 0, %v2205_v26 }
 0x222   : > { %v5102_v49 = vor.u32 %v1840_v1, %v1834_v25  ;;  %v1841_v24 = vshll.u32 %v2569_v45, 24  ;;  %v5104_v16 = vpop.f32.mrb[8].mxu1  ;;  %v2183_v25 = vsub.s32 %v2453_v59, %v2182_v57 }
 0x223   : > { %v5107_v5 = vpop.f32.mrb[9].mxu1  ;;  %v2576_v35 = vtrunc.f32 %v5104_v16  ;;  %v5155_v45 = vsel %vm2197_vm3, %v2206_v20, %v2205_v26  ;;  %vm2138_vm2 = vcmp.ne.f32.partialorder %v5099_v22, %v5099_v22  ;;  %v6133_v20 = vmov 0 }
 0x224   : > { %v5109_v53 = vor.u32 %v1841_v24, %v1835_v47  ;;  %v2523_v6 = vpop.f32.mrb[10].mxu1  ;;  %v2572_v21 = vtrunc.f32 %v5107_v5  ;;  %v2184_v51 = vsub.s32 0, %v2183_v25  ;;  %vm2210_vm4 = vcmp.ne.s32.totalorder %v5155_v45, 0 }
 0x225   : > { %v5111_v32 = vpop.f32.mrb[11].mxu1  ;;  %v2577_v4 = vcvt.f32.s32 %v2576_v35  ;;  %vm2213_vm6 = vcmp.lt.s32.totalorder %v5155_v45, 0  ;;  %vm2136_vm7 = vcmp.ne.f32.partialorder %v5102_v49, %v5102_v49 }
 0x226   : > { %v2574_v24 = vtrunc.f32 %v5111_v32  ;;  %v2573_v5 = vcvt.f32.s32 %v2572_v21  ;;  %v5159_v41 = vsel %vm2175_vm1, %v2184_v51, %v2183_v25  ;;  %vm5177_vm0 = vmand %vm2213_vm6, %vm2210_vm4  ;;  %vm2137_vm15 = vcmp.ne.f32.partialorder %v5109_v53, %v5109_v53 }
 0x227   : > { %vm2208_vm12 = vcmp.ne.s32.totalorder %v5159_v41, 0  ;;  %vm2211_vm9 = vcmp.lt.s32.totalorder %v5159_v41, 0  ;;  %vm6135_vm1 = vmmov 1  }
 0x228   : > { %v2575_v30 = vcvt.f32.s32 %v2574_v24  ;;  %vm5190_vm11 = vmand %vm2211_vm9, %vm2208_vm12 }
 0x229   : > { %v6134_v20 = vsel %vm5190_vm11, 4294967295, %v6133_v20  ;;  %vm5202_vm4 = vmxor %vm2136_vm7, %vm6135_vm1 }
 0x230   : > { %v2534_v60 = vpop.f32.mrb[12].mxu1 }
 0x231   : > { %v1987_v55 = vpop.f32.mrb[13].mxu1  ;;  %v2588_v29 = vtrunc.f32 %v2534_v60 }
 0x232   : > { %v2535_v61 = vpop.f32.mrb[14].mxu1  ;;  %v2584_v14 = vtrunc.f32 %v1987_v55  ;;  %v2195_v55 = vsub.s32 0, %v2194_v3 }
 0x233   : > { %v1990_v18 = vpop.f32.mrb[15].mxu1  ;;  %v2589_v19 = vcvt.f32.s32 %v2588_v29 }
 0x234   : > { %v2586_v47 = vtrunc.f32 %v1990_v18  ;;  %v2585_v36 = vcvt.f32.s32 %v2584_v14  ;;  %v5167_v10 = vsel %vm2186_vm5, %v2195_v55, %v2194_v3  ;;  %vm2141_vm5 = vmxor %vm2138_vm2, %vm6135_vm1 }
 0x235   : > { %v2114_v60 = vshll.u32 %v2589_v19, 16  ;;  %vm2209_vm8 = vcmp.ne.s32.totalorder %v5167_v10, 0  ;;  %vm2212_vm3 = vcmp.lt.s32.totalorder %v5167_v10, 0  ;;  %vm5219_vm2 = vmxor %vm2137_vm15, %vm6135_vm1 }
 0x236   : > { %v2587_v6 = vcvt.f32.s32 %v2586_v47  ;;  %v2112_v39 = vshll.u32 %v2585_v36, 16  ;;  %v2219_v47 = vadd.s32 6, %v5155_v45  ;;  %vm5225_vm7 = vmand %vm2212_vm3, %vm2209_vm8 }
 0x238   : > { %v2113_v38 = vshll.u32 %v2587_v6, 16  ;;  %v2222_v21 = vsel %vm5177_vm0, %v2219_v47, %v5155_v45 }
 0x239   : > { %v2232_v45 = vmul.u32 3, %v2222_v21 }
 0x245   : > { %v5134_v54 = vpop.f32.mrb[8].mxu0  ;;  %v5136_v13 = vpop.f32.mrb[16].mxu1 }
 0x246   : > { %v5138_v56 = vpop.f32.mrb[9].mxu0  ;;  %v5142_v33 = vpop.f32.mrb[17].mxu1  ;;  %vm6142_vm15 = vcmp.lt.f32.partialorder %v5136_v13, %v5134_v54 }
 0x247   : > { %v2517_v12 = vpop.f32.mrb[10].mxu0  ;;  %v2547_v50 = vpop.f32.mrb[18].mxu1 }
 0x248   : > { %v5147_v37 = vpop.f32.mrb[11].mxu0  ;;  %v5149_v7 = vpop.f32.mrb[19].mxu1 }
 0x24d   : > { %v2528_v62 = vpop.f32.mrb[12].mxu0 }
 0x24e   : > { %v2582_v31 = vtrunc.f32 %v2528_v62  ;;  %v1939_v43 = vpop.f32.mrb[13].mxu0 }
 0x24f   : > { %v2578_v48 = vtrunc.f32 %v1939_v43  ;;  %v2529_v63 = vpop.f32.mrb[14].mxu0 }
 0x250   : > { %v2583_v17 = vcvt.f32.s32 %v2582_v31  ;;  %v1942_v1 = vpop.f32.mrb[15].mxu0  ;;  %v6136_v31 = vmov 0 }
 0x251   : > { %v2579_v40 = vcvt.f32.s32 %v2578_v48  ;;  %v2580_v16 = vtrunc.f32 %v1942_v1  ;;  %v6137_v31 = vsel %vm5202_vm4, 4294967295, %v6136_v31  ;;  %v2217_v48 = vadd.s32 6, %v5159_v41 }
 0x252   : > { %v2105_v27 = vshll.u32 %v2583_v17, 8 }
 0x253   : > { %v2103_v61 = vshll.u32 %v2579_v40, 8  ;;  %v2581_v18 = vcvt.f32.s32 %v2580_v16 }
 0x254   : > { %v2108_v23 = vor.u32 %v2577_v4, %v2105_v27 }
 0x255   : > { %v2106_v34 = vor.u32 %v2573_v5, %v2103_v61  ;;  %v2104_v32 = vshll.u32 %v2581_v18, 8  ;;  %v2540_v59 = vpop.f32.mrb[16].mxu0 }
 0x256   : > { %v2117_v52 = vor.u32 %v2114_v60, %v2108_v23  ;;  %v2594_v15 = vtrunc.f32 %v2540_v59  ;;  %v2035_v11 = vpop.f32.mrb[17].mxu0 }
 0x257   : > { %v2107_v46 = vor.u32 %v2575_v30, %v2104_v32  ;;  %v2115_v9 = vor.u32 %v2112_v39, %v2106_v34  ;;  %v2590_v44 = vtrunc.f32 %v2035_v11  ;;  %v2541_v58 = vpop.f32.mrb[18].mxu0 }
 0x258   : > { %v2595_v42 = vcvt.f32.s32 %v2594_v15  ;;  %v2038_v12 = vpop.f32.mrb[19].mxu0 }
 0x259   : > { %v2116_v50 = vor.u32 %v2113_v38, %v2107_v46  ;;  %v2591_v26 = vcvt.f32.s32 %v2590_v44  ;;  %v2592_v57 = vtrunc.f32 %v2038_v12 }
 0x25a   : > { %v2123_v29 = vshll.u32 %v2595_v42, 24 }
 0x25b   : > { %v2121_v28 = vshll.u32 %v2591_v26, 24  ;;  %v2593_v14 = vcvt.f32.s32 %v2592_v57 }
 0x25c   : > { %v5197_v25 = vor.u32 %v2123_v29, %v2117_v52 }
 0x25d   : > { %v2124_v62 = vor.u32 %v2121_v28, %v2115_v9  ;;  %v2122_v35 = vshll.u32 %v2593_v14, 24 }
 0x25e   : > { %vm2132_vm6 = vcmp.gt.f32.partialorder %v5197_v25, %v5099_v22  ;;  %vm2135_vm12 = vcmp.ne.f32.partialorder %v5197_v25, %v5197_v25  ;;  %vm2150_vm9 = vcmp.eq.f32.partialorder %v5197_v25, %v5099_v22 }
 0x25f   : > { %vm2144_vm10 = vmand %vm2135_vm12, %vm2141_vm5  ;;  %v2125_v3 = vor.u32 %v2122_v35, %v2116_v50  ;;  %vm2130_vm14 = vcmp.gt.f32.partialorder %v2124_v62, %v5102_v49  ;;  %vm2148_vm13 = vcmp.eq.f32.partialorder %v2124_v62, %v5102_v49  ;;  %vm2133_vm4 = vcmp.ne.f32.partialorder %v2124_v62, %v2124_v62 }
 0x260   : > { %vm2147_vm11 = vmor %vm2132_vm6, %vm2144_vm10  ;;  %vm6145_vm10 = vnez %v6137_v31  ;;  %vm6146_vm12 = vcmp.lt.f32.partialorder %v5142_v33, %v5138_v56 }
 0x261   : > { %vm2156_vm1 = vmand %vm2150_vm9, %vm6142_vm15  ;;  %vm2131_vm8 = vcmp.gt.f32.partialorder %v2125_v3, %v5109_v53  ;;  %vm2149_vm3 = vcmp.eq.f32.partialorder %v2125_v3, %v5109_v53  ;;  %vm2134_vm6 = vcmp.ne.f32.partialorder %v2125_v3, %v2125_v3  ;;  %vm6147_vm9 = vnez %v6134_v20 }
 0x262   : > { %vm5240_vm5 = vmor %vm2147_vm11, %vm2156_vm1  ;;  %vm2226_vm15 = vcmask 64512  }
 0x263   : > { %v2162_v36 = vsel %vm5240_vm5, %v5197_v25, %v5099_v22  ;;  %v2165_v17 = vsel %vm5240_vm5, %v5136_v13, %v5134_v54  ;;  %v2168_v1 = vsel %vm5240_vm5, 1.0, %v2667_v8  ;;  %vm2142_vm0 = vmand %vm2133_vm4, %vm6145_vm10  ;;  %v2220_v22 = vsel %vm6147_vm9, %v2217_v48, %v5159_v41 }
 0x264   : > { %v2606_v51 = vtrunc.f32 %v2165_v17  ;;  %v2612_v24 = vtrunc.f32 %v2168_v1  ;;  %vm2145_vm11 = vmor %vm2130_vm14, %vm2142_vm0  ;;  %v2218_v54 = vadd.s32 6, %v5167_v10  ;;  %v2230_v60 = vmul.u32 3, %v2220_v22  ;;  %2229 = vst.msk [vmem:[%s5265_s24 + $0x10] sm:$0xff] %vm2226_vm15, %v2162_v36 }
 0x265   : > { %vm2154_vm4 = vmand %vm2148_vm13, %vm6146_vm12  ;;  %vm6148_vm5 = vcmp.lt.f32.partialorder %v5149_v7, %v5147_v37 }
 0x266   : > { %v2607_v13 = vcvt.f32.s32 %v2606_v51  ;;  %v2613_v40 = vcvt.f32.s32 %v2612_v24  ;;  %vm2157_vm14 = vmor %vm2145_vm11, %vm2154_vm4 }
 0x267   : > { %v2160_v16 = vsel %vm2157_vm14, %v2124_v62, %v5102_v49  ;;  %v2163_v6 = vsel %vm2157_vm14, %v5142_v33, %v5138_v56  ;;  %v2166_v4 = vsel %vm2157_vm14, 1.0, %v2667_v8  ;;  %vm2143_vm13 = vmand %vm2134_vm6, %vm5219_vm2  ;;  %v2221_v49 = vsel %vm5225_vm7, %v2218_v54, %v5167_v10 }
 0x268   : > { %v2238_v27 = vadd.s32 %v2607_v13, %v2232_v45  ;;  %2227 = vst.msk [vmem:[%s5265_s24] sm:$0xff] %vm2226_vm15, %v2160_v16  ;;  %v2602_v55 = vtrunc.f32 %v2163_v6  ;;  %v2608_v5 = vtrunc.f32 %v2166_v4  ;;  %vm2146_vm1 = vmor %vm2131_vm8, %vm2143_vm13  ;;  %v2248_v33 = vadd.s32 %v2613_v40, %v5995_v2 }
 0x269   : > { %vm2155_vm10 = vmand %vm2149_vm3, %vm6148_vm5  ;;  %v2231_v32 = vmul.u32 3, %v2221_v49 }
 0x26a   : > { %v2241_v56 = vmul.u32 16, %v2238_v27  ;;  %v2603_v61 = vcvt.f32.s32 %v2602_v55  ;;  %v2609_v18 = vcvt.f32.s32 %v2608_v5  ;;  %vm2158_vm2 = vmor %vm2146_vm1, %vm2155_vm10 }
 0x26b   : > { %v2161_v39 = vsel %vm2158_vm2, %v2125_v3, %v5109_v53  ;;  %v2164_v23 = vsel %vm2158_vm2, %v5149_v7, %v5147_v37  ;;  %v2167_v41 = vsel %vm2158_vm2, 1.0, %v2667_v8 }
 0x26c   : > { %v2251_v30 = vadd.s32 %v2248_v33, %v2241_v56  ;;  %v2236_v34 = vadd.s32 %v2603_v61, %v2230_v60  ;;  %2228 = vst.msk [vmem:[%s5265_s24 + $0x8] sm:$0xff] %vm2226_vm15, %v2161_v39  ;;  %v2604_v38 = vtrunc.f32 %v2164_v23  ;;  %v2610_v59 = vtrunc.f32 %v2167_v41 }
 0x26d   : > { %v2246_v15 = vadd.s32 %v2609_v18, %v5995_v2 }
 0x26e   : > { %v2239_v52 = vmul.u32 16, %v2236_v34  ;;  %v2605_v11 = vcvt.f32.s32 %v2604_v38  ;;  %v2611_v53 = vcvt.f32.s32 %v2610_v59  ;;  %2254 = vst.msk [vmem:[%s198_s27 + $0x10] sm:$0xff] %vm2226_vm15, %v2251_v30 }
 0x270   : > { %v2249_v8 = vadd.s32 %v2246_v15, %v2239_v52  ;;  %v2237_v37 = vadd.s32 %v2605_v11, %v2231_v32  ;;  %v2247_v46 = vadd.s32 %v2611_v53, %v5995_v2 }
 0x272   : > { %2252 = vst.msk [vmem:[%s198_s27] sm:$0xff] %vm2226_vm15, %v2249_v8  ;;  %v2240_v7 = vmul.u32 16, %v2237_v37 }
 0x274   : > { %v2250_v9 = vadd.s32 %v2247_v46, %v2240_v7 }
 0x276   : > { %2253 = vst.msk [vmem:[%s198_s27 + $0x8] sm:$0xff] %vm2226_vm15, %v2250_v9 }
 0x277 PF: > { %s13_s11 = sadd.s32 1, %s2663_s11   ;;  %s6149_s9 = smov %s2659_s10 }
 0x278   : > { %p10_p6 = scmp.ge.s32.totalorder %s13_s11, 4   ;;  %s6150_s10 = smov %s6152_s12 }
 0x27a   :  { %12 = sbr.rel (!%p10_p6) target bundleno = 2 (0x2), region = 66 }

</bundles_post_ra>
